<compile_context>
chip_gen: v5e
topology: v5e:2x2
jax: 0.10.0
libtpu: 0.0.40
codegen_flags: <defaults>
</compile_context>

<pallas_src>
import jax
import jax.numpy as jnp
from jax.experimental import pallas as pl
from jax.experimental.pallas import tpu as pltpu


# ----------------------------------------------------------------- conv helper
def _conv_kxk(x_bf16, wmat, K, H, W):
    """KxK 'same' conv (cross-correlation) as ONE im2col bf16 MXU matmul.

    x_bf16: (Cin, H*W)            bf16 value, channel-major, flat spatial on lanes
    wmat:   (Cout_tot, K*K*Cin)   bf16 value, columns ordered (kh, kw, ci)
    returns (Cout_tot, H*W)       f32

    Vertical out-of-image taps read zeros from the value-concatenated side padding;
    horizontal row-wrap is masked once per column shift dw (shared by all K vertical
    taps), i.e. K-1 selects per conv instead of K*(K-1).
    """
    HW = H * W
    r = K // 2
    C = x_bf16.shape[0]
    side = r * (W + 1)                                   # covers shift r*W + r
    zpad = jnp.zeros((C, side), jnp.bfloat16)
    big = jnp.concatenate([zpad, x_bf16, zpad], axis=1)  # (C, HW + 2*side)
    wlen = HW + 2 * r * W
    phase = jax.lax.broadcasted_iota(jnp.int32, (1, wlen), 1) % W

    wins = []                                            # one masked window per dw
    for dw in range(-r, r + 1):
        win = big[:, r + dw: r + dw + wlen]              # (C, wlen)
        if dw != 0:
            valid = (phase >= -dw) & (phase < W - dw)    # row-wrap mask (per dw only)
            win = jnp.where(valid, win, jnp.zeros_like(win))
        wins.append(win)

    parts = []
    for kh in range(K):                                  # tap (kh, kw) = wins[kw][kh*W:]
        for kw in range(K):
            parts.append(wins[kw][:, kh * W: kh * W + HW])
    stack = jnp.concatenate(parts, axis=0)               # (K*K*C, HW) bf16
    return jnp.dot(wmat, stack, preferred_element_type=jnp.float32)


# ----------------------------------------------------------------- fused kernel
def _make_decoder_kernel(cfg):
    C0, Z, HW0 = cfg["C0"], cfg["zdim"], cfg["HW0"]

    def kernel(*refs):
        it = iter(refs)
        z_ref = next(it)
        sel_ref, wfc_ref, bfc_ref = next(it), next(it), next(it)
        st_refs = []
        for st in cfg["stages"]:
            st_refs.append([next(it) for _ in range(7 if st["upsample"] else 6)])
        wp_ref, bp_ref = next(it), next(it)
        out_ref = next(it)

        # ---- FC + ReLU.  Block-diagonalised z (via a precomputed 0/1 selector)
        # makes one plain MXU matmul emit the activation directly in the channel-
        # major (C0, H0*W0) layout -- no lane->sublane reshape/transpose needed.
        zrow = z_ref[0]                                          # (1, Z) f32
        zt = jnp.concatenate([zrow] * C0, axis=1)                # (1, C0*Z)
        zb = (zt * sel_ref[...]).astype(jnp.bfloat16)            # (C0, C0*Z)
        y = jnp.dot(zb, wfc_ref[...], preferred_element_type=jnp.float32)
        x = jnp.maximum(y + bfc_ref[...], 0.0)                   # (C0, HW0) f32

        # ---- residual blocks (+ fused x2 nearest upsample)
        for st, rf in zip(cfg["stages"], st_refs):
            H, W, cmid = st["H"], st["W"], st["cmid"]
            w1c, s1, b1, w2, s2, b2 = rf[:6]
            xb = x.astype(jnp.bfloat16)

            # conv1 (3x3) and the optional 1x1 expand conv share ONE matmul:
            # the expand rows only read the centre-tap columns of the im2col stack.
            res = _conv_kxk(xb, w1c[...], 3, H, W)               # (cmid[+cout], HW) f32
            h = res[:cmid] * s1[...] + b1[...]                   # folded BN1
            h = jnp.where(h >= 0.0, h, 0.2 * h)                  # LeakyReLU(0.2)
            ident = res[cmid:] if st["expand"] else x

            o = _conv_kxk(h.astype(jnp.bfloat16), w2[...], 3, H, W)
            o = o * s2[...] + b2[...] + ident                    # folded BN2 + residual
            o = jnp.where(o >= 0.0, o, 0.2 * o)

            if st["upsample"]:                                   # nearest x2 on lanes
                o = jnp.dot(o.astype(jnp.bfloat16), rf[6][...],
                            preferred_element_type=jnp.float32)  # (cout, 4*HW)
            x = o

        # ---- predict: 5x5 conv + bias + sigmoid, written lane-dense to HBM
        p = _conv_kxk(x.astype(jnp.bfloat16), wp_ref[...], 5, cfg["Hf"], cfg["Wf"])
        out_ref[0] = jax.nn.sigmoid(p + bp_ref[...])

    return kernel


# ----------------------------------------------------------------- weight prep
def _prep_conv_w(w_hwio):
    """(K,K,Cin,Cout) HWIO -> (Cout, K*K*Cin) bf16, columns ordered (kh, kw, ci)."""
    K, _, ci, co = w_hwio.shape
    return w_hwio.reshape(K * K * ci, co).T.astype(jnp.bfloat16)


def _upsample_matrix(H, W):
    """(H*W, 4*H*W) one-hot bf16 matrix: nearest x2 upsample on flat spatial."""
    HW = H * W
    m2 = jnp.arange(4 * HW)
    src = (m2 // (2 * W)) // 2 * W + (m2 % (2 * W)) // 2
    return (jnp.arange(HW)[:, None] == src[None, :]).astype(jnp.bfloat16)


def prepare_decoder(params, cdim, zdim, channels, conv_input_size):
    """One-time preparation: transposes / bf16 casts / expand-conv folding / aux
    matrices.  Returns (static cfg, flat tuple of arrays in kernel order)."""
    C0, H0, W0 = conv_input_size
    HW0 = H0 * W0
    weights = []

    # FC: selector for the block-diagonal z trick + rearranged weight/bias so the
    # matmul output lands directly in (C0, H0*W0) channel-major layout.
    sel = (jnp.arange(C0 * zdim)[None, :] // zdim ==
           jnp.arange(C0)[:, None]).astype(jnp.float32)            # (C0, C0*Z)
    wfc = params["fc_w"].reshape(zdim, C0, HW0).transpose(1, 0, 2) \
                        .reshape(C0 * zdim, HW0).astype(jnp.bfloat16)
    bfc = params["fc_b"].reshape(C0, HW0).astype(jnp.float32)
    weights += [sel, wfc, bfc]

    stages = []
    H, W = H0, W0
    blocks = list(params["blocks"]) + [params["final_block"]]
    ups = [True] * len(params["blocks"]) + [False]
    for blk, up in zip(blocks, ups):
        w1, w2 = blk["conv1_w"], blk["conv2_w"]
        cin, cmid, cout = w1.shape[2], w1.shape[3], w2.shape[3]
        expand = blk["conv_expand_w"] is not None

        w1c = _prep_conv_w(w1)                                     # (cmid, 9*cin)
        if expand:                                                 # fold 1x1 expand
            we = blk["conv_expand_w"][0, 0].T                      # (cout, cin)
            emb = jnp.zeros((cout, 9 * cin), jnp.float32)
            emb = emb.at[:, 4 * cin:5 * cin].set(we)               # centre tap block
            w1c = jnp.concatenate([w1c, emb.astype(jnp.bfloat16)], axis=0)

        weights += [w1c,
                    blk["bn1_scale"].reshape(cmid, 1).astype(jnp.float32),
                    blk["bn1_bias"].reshape(cmid, 1).astype(jnp.float32),
                    _prep_conv_w(w2),
                    blk["bn2_scale"].reshape(cout, 1).astype(jnp.float32),
                    blk["bn2_bias"].reshape(cout, 1).astype(jnp.float32)]
        if up:
            weights.append(_upsample_matrix(H, W))
        stages.append(dict(H=H, W=W, cin=cin, cmid=cmid, cout=cout,
                           expand=expand, upsample=up))
        if up:
            H, W = 2 * H, 2 * W

    weights += [_prep_conv_w(params["predict_w"]),
                params["predict_b"].reshape(cdim, 1).astype(jnp.float32)]

    cfg = dict(C0=C0, HW0=HW0, zdim=zdim, cdim=cdim, stages=stages, Hf=H, Wf=W)
    return cfg, tuple(weights)


# ----------------------------------------------------------------- forward
def make_decoder_forward(cfg):
    kernel = _make_decoder_kernel(cfg)
    cdim, Hf, Wf, Z = cfg["cdim"], cfg["Hf"], cfg["Wf"], cfg["zdim"]
    HWf = Hf * Wf

    def forward(z, weights):
        B = z.shape[0]
        z3 = z.reshape(B, 1, Z)
        in_specs = [pl.BlockSpec((1, 1, Z), lambda b: (b, 0, 0))]
        for w in weights:   # full-array blocks; constant index -> copied in once
            in_specs.append(pl.BlockSpec(w.shape, lambda b, _n=w.ndim: (0,) * _n))
        out = pl.pallas_call(
            kernel,
            grid=(B,),
            in_specs=in_specs,
            out_specs=pl.BlockSpec((1, cdim, HWf), lambda b: (b, 0, 0)),
            out_shape=jax.ShapeDtypeStruct((B, cdim, HWf), jnp.float32),
            compiler_params=pltpu.CompilerParams(
                dimension_semantics=("parallel",)),
        )(z3, *weights)
        return out.reshape(B, cdim, Hf, Wf)                       # NCHW, no transpose

    return forward


# ----------------------------------------------------------------- parameter init
def init_decoder_params(key, cdim, zdim, channels, conv_input_size):
    keys = iter(jax.random.split(key, 256))

    def nrm(shape, s=0.1):
        return s * jax.random.normal(next(keys), shape, jnp.float32)

    def bn_fold(c):
        # BatchNorm2d in inference mode, folded into per-channel scale/bias.
        gamma = 1.0 + 0.1 * jax.random.normal(next(keys), (c,), jnp.float32)
        beta = 0.1 * jax.random.normal(next(keys), (c,), jnp.float32)
        rmean = 0.05 * jax.random.normal(next(keys), (c,), jnp.float32)
        rvar = 1.0 + 0.1 * jax.random.uniform(next(keys), (c,), jnp.float32)
        scale = gamma / jnp.sqrt(rvar + 1e-5)
        bias = beta - rmean * scale
        return scale, bias

    def res_block(inc, outc):
        midc = outc  # scale = 1.0
        blk = {
            "conv_expand_w": nrm((1, 1, inc, outc)) if inc != outc else None,
            "conv1_w": nrm((3, 3, inc, midc)),
            "conv2_w": nrm((3, 3, midc, outc)),
        }
        blk["bn1_scale"], blk["bn1_bias"] = bn_fold(midc)
        blk["bn2_scale"], blk["bn2_bias"] = bn_fold(outc)
        return blk

    params = {}
    num_fc = conv_input_size[0] * conv_input_size[1] * conv_input_size[2]
    params["fc_w"] = nrm((zdim, num_fc))
    params["fc_b"] = nrm((num_fc,))

    cc = channels[-1]
    blocks = []
    for ch in channels[::-1]:
        blocks.append(res_block(cc, ch))
        cc = ch
    params["blocks"] = blocks
    params["final_block"] = res_block(cc, cc)
    params["predict_w"] = nrm((5, 5, cc, cdim))
    params["predict_b"] = nrm((cdim,))
    return params


if __name__ == "__main__":
    B = 2
    cdim = 3
    zdim = 32
    channels = (8, 16)            # two upsample stages: 4x4 -> 8x8 -> 16x16
    conv_input_size = (16, 4, 4)  # (C, H, W); C == channels[-1]

    key = jax.random.PRNGKey(0)
    k_param, k_z = jax.random.split(key)
    params = init_decoder_params(k_param, cdim, zdim, channels, conv_input_size)
    z = jax.random.normal(k_z, (B, zdim), jnp.float32)

    cfg, weights = prepare_decoder(params, cdim, zdim, channels, conv_input_size)
    fwd = jax.jit(make_decoder_forward(cfg))
    out = fwd(z, weights)
    jax.block_until_ready(out)
    assert out.shape == (B, cdim, 16, 16), out.shape
    assert bool(jnp.all(jnp.isfinite(out)))
    print("KERNEL_OK")
</pallas_src>

<mosaic_0001>
module attributes {stable_mosaic.version = 11 : i64} {
  func.func @kernel(%arg0: i32, %arg1: memref<1x1x32xf32, #tpu.memory_space<vmem>>, %arg2: memref<16x512xf32, #tpu.memory_space<vmem>>, %arg3: memref<512x16xbf16, #tpu.memory_space<vmem>>, %arg4: memref<16x16xf32, #tpu.memory_space<vmem>>, %arg5: memref<16x144xbf16, #tpu.memory_space<vmem>>, %arg6: memref<16x1xf32, #tpu.memory_space<vmem>>, %arg7: memref<16x1xf32, #tpu.memory_space<vmem>>, %arg8: memref<16x144xbf16, #tpu.memory_space<vmem>>, %arg9: memref<16x1xf32, #tpu.memory_space<vmem>>, %arg10: memref<16x1xf32, #tpu.memory_space<vmem>>, %arg11: memref<16x64xbf16, #tpu.memory_space<vmem>>, %arg12: memref<16x144xbf16, #tpu.memory_space<vmem>>, %arg13: memref<8x1xf32, #tpu.memory_space<vmem>>, %arg14: memref<8x1xf32, #tpu.memory_space<vmem>>, %arg15: memref<8x72xbf16, #tpu.memory_space<vmem>>, %arg16: memref<8x1xf32, #tpu.memory_space<vmem>>, %arg17: memref<8x1xf32, #tpu.memory_space<vmem>>, %arg18: memref<64x256xbf16, #tpu.memory_space<vmem>>, %arg19: memref<8x72xbf16, #tpu.memory_space<vmem>>, %arg20: memref<8x1xf32, #tpu.memory_space<vmem>>, %arg21: memref<8x1xf32, #tpu.memory_space<vmem>>, %arg22: memref<8x72xbf16, #tpu.memory_space<vmem>>, %arg23: memref<8x1xf32, #tpu.memory_space<vmem>>, %arg24: memref<8x1xf32, #tpu.memory_space<vmem>>, %arg25: memref<3x200xbf16, #tpu.memory_space<vmem>>, %arg26: memref<3x1xf32, #tpu.memory_space<vmem>>, %arg27: memref<1x3x256xf32, #tpu.memory_space<vmem>>) attributes {dimension_semantics = [#tpu.dimension_semantics<parallel>], iteration_bounds = array<i64: 2>, scalar_prefetch = 0 : i64, scratch_operands = 0 : i64, tpu.core_type = #tpu.core_type<tc>, window_params = [{transform_indices = @transform_0, window_bounds = array<i64: 1, 1, 32>}, {pipeline_mode = #tpu.pipeline_mode<synchronous>, transform_indices = @transform_1, window_bounds = array<i64: 16, 512>}, {pipeline_mode = #tpu.pipeline_mode<synchronous>, transform_indices = @transform_2, window_bounds = array<i64: 512, 16>}, {pipeline_mode = #tpu.pipeline_mode<synchronous>, transform_indices = @transform_3, window_bounds = array<i64: 16, 16>}, {pipeline_mode = #tpu.pipeline_mode<synchronous>, transform_indices = @transform_4, window_bounds = array<i64: 16, 144>}, {pipeline_mode = #tpu.pipeline_mode<synchronous>, transform_indices = @transform_5, window_bounds = array<i64: 16, 1>}, {pipeline_mode = #tpu.pipeline_mode<synchronous>, transform_indices = @transform_6, window_bounds = array<i64: 16, 1>}, {pipeline_mode = #tpu.pipeline_mode<synchronous>, transform_indices = @transform_7, window_bounds = array<i64: 16, 144>}, {pipeline_mode = #tpu.pipeline_mode<synchronous>, transform_indices = @transform_8, window_bounds = array<i64: 16, 1>}, {pipeline_mode = #tpu.pipeline_mode<synchronous>, transform_indices = @transform_9, window_bounds = array<i64: 16, 1>}, {pipeline_mode = #tpu.pipeline_mode<synchronous>, transform_indices = @transform_10, window_bounds = array<i64: 16, 64>}, {pipeline_mode = #tpu.pipeline_mode<synchronous>, transform_indices = @transform_11, window_bounds = array<i64: 16, 144>}, {pipeline_mode = #tpu.pipeline_mode<synchronous>, transform_indices = @transform_12, window_bounds = array<i64: 8, 1>}, {pipeline_mode = #tpu.pipeline_mode<synchronous>, transform_indices = @transform_13, window_bounds = array<i64: 8, 1>}, {pipeline_mode = #tpu.pipeline_mode<synchronous>, transform_indices = @transform_14, window_bounds = array<i64: 8, 72>}, {pipeline_mode = #tpu.pipeline_mode<synchronous>, transform_indices = @transform_15, window_bounds = array<i64: 8, 1>}, {pipeline_mode = #tpu.pipeline_mode<synchronous>, transform_indices = @transform_16, window_bounds = array<i64: 8, 1>}, {pipeline_mode = #tpu.pipeline_mode<synchronous>, transform_indices = @transform_17, window_bounds = array<i64: 64, 256>}, {pipeline_mode = #tpu.pipeline_mode<synchronous>, transform_indices = @transform_18, window_bounds = array<i64: 8, 72>}, {pipeline_mode = #tpu.pipeline_mode<synchronous>, transform_indices = @transform_19, window_bounds = array<i64: 8, 1>}, {pipeline_mode = #tpu.pipeline_mode<synchronous>, transform_indices = @transform_20, window_bounds = array<i64: 8, 1>}, {pipeline_mode = #tpu.pipeline_mode<synchronous>, transform_indices = @transform_21, window_bounds = array<i64: 8, 72>}, {pipeline_mode = #tpu.pipeline_mode<synchronous>, transform_indices = @transform_22, window_bounds = array<i64: 8, 1>}, {pipeline_mode = #tpu.pipeline_mode<synchronous>, transform_indices = @transform_23, window_bounds = array<i64: 8, 1>}, {pipeline_mode = #tpu.pipeline_mode<synchronous>, transform_indices = @transform_24, window_bounds = array<i64: 3, 200>}, {pipeline_mode = #tpu.pipeline_mode<synchronous>, transform_indices = @transform_25, window_bounds = array<i64: 3, 1>}, {transform_indices = @transform_26, window_bounds = array<i64: 1, 3, 256>}]} {
    %c0 = arith.constant 0 : index
    %c0_0 = arith.constant 0 : index
    %c0_1 = arith.constant 0 : index
    %0 = vector.load %arg1[%c0, %c0_0, %c0_1] : memref<1x1x32xf32, #tpu.memory_space<vmem>>, vector<1x1x32xf32>
    %1 = vector.shape_cast %0 : vector<1x1x32xf32> to vector<1x32xf32>
    %2 = tpu.concatenate %1, %1, %1, %1, %1, %1, %1, %1, %1, %1, %1, %1, %1, %1, %1, %1 in 1 : vector<1x32xf32>, vector<1x32xf32>, vector<1x32xf32>, vector<1x32xf32>, vector<1x32xf32>, vector<1x32xf32>, vector<1x32xf32>, vector<1x32xf32>, vector<1x32xf32>, vector<1x32xf32>, vector<1x32xf32>, vector<1x32xf32>, vector<1x32xf32>, vector<1x32xf32>, vector<1x32xf32>, vector<1x32xf32> -> vector<1x512xf32>
    %c0_2 = arith.constant 0 : index
    %c0_3 = arith.constant 0 : index
    %3 = vector.load %arg2[%c0_2, %c0_3] : memref<16x512xf32, #tpu.memory_space<vmem>>, vector<16x512xf32>
    %4 = vector.broadcast %2 : vector<1x512xf32> to vector<16x512xf32>
    %5 = arith.mulf %4, %3 : vector<16x512xf32>
    %6 = arith.truncf %5 : vector<16x512xf32> to vector<16x512xbf16>
    %c0_4 = arith.constant 0 : index
    %c0_5 = arith.constant 0 : index
    %7 = vector.load %arg3[%c0_4, %c0_5] : memref<512x16xbf16, #tpu.memory_space<vmem>>, vector<512x16xbf16>
    %cst = arith.constant dense<0.000000e+00> : vector<16x16xf32>
    %8 = tpu.matmul %6, %7, %cst {dimension_numbers = #tpu.dot_dimension_numbers<[1], [0], [0], [1], [0, 0, 1, 1], [], []>} : vector<16x512xbf16>, vector<512x16xbf16>, vector<16x16xf32> -> vector<16x16xf32>
    %c0_6 = arith.constant 0 : index
    %c0_7 = arith.constant 0 : index
    %9 = vector.load %arg4[%c0_6, %c0_7] : memref<16x16xf32, #tpu.memory_space<vmem>>, vector<16x16xf32>
    %10 = arith.addf %8, %9 : vector<16x16xf32>
    %cst_8 = arith.constant 0.000000e+00 : f32
    %11 = vector.broadcast %cst_8 : f32 to vector<16x16xf32>
    %12 = arith.maximumf %10, %11 : vector<16x16xf32>
    %13 = arith.truncf %12 : vector<16x16xf32> to vector<16x16xbf16>
    %c0_9 = arith.constant 0 : index
    %c0_10 = arith.constant 0 : index
    %14 = vector.load %arg5[%c0_9, %c0_10] : memref<16x144xbf16, #tpu.memory_space<vmem>>, vector<16x144xbf16>
    %cst_11 = arith.constant 0.000000e+00 : bf16
    %15 = vector.broadcast %cst_11 : bf16 to vector<16x5xbf16>
    %16 = tpu.concatenate %15, %13, %15 in 1 : vector<16x5xbf16>, vector<16x16xbf16>, vector<16x5xbf16> -> vector<16x26xbf16>
    %17 = tpu.iota {dimensions = array<i32: 1>} : vector<1x24xi32>
    %c4_i32 = arith.constant 4 : i32
    %c0_i32 = arith.constant 0 : i32
    %18 = arith.cmpi eq, %c4_i32, %c0_i32 : i32
    %c1_i32 = arith.constant 1 : i32
    %19 = arith.select %18, %c1_i32, %c4_i32 : i32
    %20 = vector.broadcast %19 : i32 to vector<1x24xi32>
    %21 = arith.remsi %17, %20 : vector<1x24xi32>
    %c0_i32_12 = arith.constant 0 : i32
    %22 = vector.broadcast %c0_i32_12 : i32 to vector<1x24xi32>
    %23 = arith.cmpi ne, %21, %22 : vector<1x24xi32>
    %c0_i32_13 = arith.constant 0 : i32
    %24 = vector.broadcast %c0_i32_13 : i32 to vector<1x24xi32>
    %25 = arith.cmpi slt, %21, %24 : vector<1x24xi32>
    %c0_i32_14 = arith.constant 0 : i32
    %26 = arith.cmpi slt, %19, %c0_i32_14 : i32
    %27 = vector.broadcast %26 : i1 to vector<1x24xi1>
    %28 = vector.broadcast %27 : vector<1x24xi1> to vector<1x24xi1>
    %29 = arith.xori %25, %28 : vector<1x24xi1>
    %30 = arith.andi %29, %23 : vector<1x24xi1>
    %31 = vector.broadcast %19 : i32 to vector<1x24xi32>
    %32 = arith.addi %21, %31 : vector<1x24xi32>
    %33 = arith.select %30, %32, %21 : vector<1x24xi1>, vector<1x24xi32>
    %34 = vector.extract_strided_slice %16 {offsets = [0, 0], sizes = [16, 24], strides = [1, 1]} : vector<16x26xbf16> to vector<16x24xbf16>
    %c1_i32_15 = arith.constant 1 : i32
    %35 = vector.broadcast %c1_i32_15 : i32 to vector<1x24xi32>
    %36 = arith.cmpi sge, %33, %35 : vector<1x24xi32>
    %c5_i32 = arith.constant 5 : i32
    %37 = vector.broadcast %c5_i32 : i32 to vector<1x24xi32>
    %38 = arith.cmpi slt, %33, %37 : vector<1x24xi32>
    %39 = arith.andi %36, %38 : vector<1x24xi1>
    %cst_16 = arith.constant 0.000000e+00 : bf16
    %40 = vector.broadcast %cst_16 : bf16 to vector<16x24xbf16>
    %41 = vector.shape_cast %39 : vector<1x24xi1> to vector<1x24xi1>
    %42 = vector.broadcast %41 : vector<1x24xi1> to vector<16x24xi1>
    %43 = arith.select %42, %34, %40 : vector<16x24xi1>, vector<16x24xbf16>
    %44 = vector.extract_strided_slice %16 {offsets = [0, 1], sizes = [16, 24], strides = [1, 1]} : vector<16x26xbf16> to vector<16x24xbf16>
    %45 = vector.extract_strided_slice %16 {offsets = [0, 2], sizes = [16, 24], strides = [1, 1]} : vector<16x26xbf16> to vector<16x24xbf16>
    %c-1_i32 = arith.constant -1 : i32
    %46 = vector.broadcast %c-1_i32 : i32 to vector<1x24xi32>
    %47 = arith.cmpi sge, %33, %46 : vector<1x24xi32>
    %c3_i32 = arith.constant 3 : i32
    %48 = vector.broadcast %c3_i32 : i32 to vector<1x24xi32>
    %49 = arith.cmpi slt, %33, %48 : vector<1x24xi32>
    %50 = arith.andi %47, %49 : vector<1x24xi1>
    %cst_17 = arith.constant 0.000000e+00 : bf16
    %51 = vector.broadcast %cst_17 : bf16 to vector<16x24xbf16>
    %52 = vector.shape_cast %50 : vector<1x24xi1> to vector<1x24xi1>
    %53 = vector.broadcast %52 : vector<1x24xi1> to vector<16x24xi1>
    %54 = arith.select %53, %45, %51 : vector<16x24xi1>, vector<16x24xbf16>
    %55 = vector.extract_strided_slice %43 {offsets = [0, 0], sizes = [16, 16], strides = [1, 1]} : vector<16x24xbf16> to vector<16x16xbf16>
    %56 = vector.extract_strided_slice %44 {offsets = [0, 0], sizes = [16, 16], strides = [1, 1]} : vector<16x24xbf16> to vector<16x16xbf16>
    %57 = vector.extract_strided_slice %54 {offsets = [0, 0], sizes = [16, 16], strides = [1, 1]} : vector<16x24xbf16> to vector<16x16xbf16>
    %58 = vector.extract_strided_slice %43 {offsets = [0, 4], sizes = [16, 16], strides = [1, 1]} : vector<16x24xbf16> to vector<16x16xbf16>
    %59 = vector.extract_strided_slice %44 {offsets = [0, 4], sizes = [16, 16], strides = [1, 1]} : vector<16x24xbf16> to vector<16x16xbf16>
    %60 = vector.extract_strided_slice %54 {offsets = [0, 4], sizes = [16, 16], strides = [1, 1]} : vector<16x24xbf16> to vector<16x16xbf16>
    %61 = vector.extract_strided_slice %43 {offsets = [0, 8], sizes = [16, 16], strides = [1, 1]} : vector<16x24xbf16> to vector<16x16xbf16>
    %62 = vector.extract_strided_slice %44 {offsets = [0, 8], sizes = [16, 16], strides = [1, 1]} : vector<16x24xbf16> to vector<16x16xbf16>
    %63 = vector.extract_strided_slice %54 {offsets = [0, 8], sizes = [16, 16], strides = [1, 1]} : vector<16x24xbf16> to vector<16x16xbf16>
    %64 = tpu.concatenate %55, %56, %57, %58, %59, %60, %61, %62, %63 in 0 : vector<16x16xbf16>, vector<16x16xbf16>, vector<16x16xbf16>, vector<16x16xbf16>, vector<16x16xbf16>, vector<16x16xbf16>, vector<16x16xbf16>, vector<16x16xbf16>, vector<16x16xbf16> -> vector<144x16xbf16>
    %cst_18 = arith.constant dense<0.000000e+00> : vector<16x16xf32>
    %65 = tpu.matmul %14, %64, %cst_18 {dimension_numbers = #tpu.dot_dimension_numbers<[1], [0], [0], [1], [0, 0, 1, 1], [], []>} : vector<16x144xbf16>, vector<144x16xbf16>, vector<16x16xf32> -> vector<16x16xf32>
    %c0_19 = arith.constant 0 : index
    %c0_20 = arith.constant 0 : index
    %66 = vector.load %arg6[%c0_19, %c0_20] : memref<16x1xf32, #tpu.memory_space<vmem>>, vector<16x1xf32>
    %67 = vector.broadcast %66 : vector<16x1xf32> to vector<16x16xf32>
    %68 = arith.mulf %65, %67 : vector<16x16xf32>
    %c0_21 = arith.constant 0 : index
    %c0_22 = arith.constant 0 : index
    %69 = vector.load %arg7[%c0_21, %c0_22] : memref<16x1xf32, #tpu.memory_space<vmem>>, vector<16x1xf32>
    %70 = vector.broadcast %69 : vector<16x1xf32> to vector<16x16xf32>
    %71 = arith.addf %68, %70 : vector<16x16xf32>
    %cst_23 = arith.constant 0.000000e+00 : f32
    %72 = vector.broadcast %cst_23 : f32 to vector<16x16xf32>
    %73 = arith.cmpf oge, %71, %72 : vector<16x16xf32>
    %cst_24 = arith.constant 2.000000e-01 : f32
    %74 = vector.broadcast %cst_24 : f32 to vector<16x16xf32>
    %75 = arith.mulf %74, %71 : vector<16x16xf32>
    %76 = arith.select %73, %71, %75 : vector<16x16xi1>, vector<16x16xf32>
    %77 = arith.truncf %76 : vector<16x16xf32> to vector<16x16xbf16>
    %c0_25 = arith.constant 0 : index
    %c0_26 = arith.constant 0 : index
    %78 = vector.load %arg8[%c0_25, %c0_26] : memref<16x144xbf16, #tpu.memory_space<vmem>>, vector<16x144xbf16>
    %cst_27 = arith.constant 0.000000e+00 : bf16
    %79 = vector.broadcast %cst_27 : bf16 to vector<16x5xbf16>
    %80 = tpu.concatenate %79, %77, %79 in 1 : vector<16x5xbf16>, vector<16x16xbf16>, vector<16x5xbf16> -> vector<16x26xbf16>
    %81 = tpu.iota {dimensions = array<i32: 1>} : vector<1x24xi32>
    %c4_i32_28 = arith.constant 4 : i32
    %c0_i32_29 = arith.constant 0 : i32
    %82 = arith.cmpi eq, %c4_i32_28, %c0_i32_29 : i32
    %c1_i32_30 = arith.constant 1 : i32
    %83 = arith.select %82, %c1_i32_30, %c4_i32_28 : i32
    %84 = vector.broadcast %83 : i32 to vector<1x24xi32>
    %85 = arith.remsi %81, %84 : vector<1x24xi32>
    %c0_i32_31 = arith.constant 0 : i32
    %86 = vector.broadcast %c0_i32_31 : i32 to vector<1x24xi32>
    %87 = arith.cmpi ne, %85, %86 : vector<1x24xi32>
    %c0_i32_32 = arith.constant 0 : i32
    %88 = vector.broadcast %c0_i32_32 : i32 to vector<1x24xi32>
    %89 = arith.cmpi slt, %85, %88 : vector<1x24xi32>
    %c0_i32_33 = arith.constant 0 : i32
    %90 = arith.cmpi slt, %83, %c0_i32_33 : i32
    %91 = vector.broadcast %90 : i1 to vector<1x24xi1>
    %92 = vector.broadcast %91 : vector<1x24xi1> to vector<1x24xi1>
    %93 = arith.xori %89, %92 : vector<1x24xi1>
    %94 = arith.andi %93, %87 : vector<1x24xi1>
    %95 = vector.broadcast %83 : i32 to vector<1x24xi32>
    %96 = arith.addi %85, %95 : vector<1x24xi32>
    %97 = arith.select %94, %96, %85 : vector<1x24xi1>, vector<1x24xi32>
    %98 = vector.extract_strided_slice %80 {offsets = [0, 0], sizes = [16, 24], strides = [1, 1]} : vector<16x26xbf16> to vector<16x24xbf16>
    %c1_i32_34 = arith.constant 1 : i32
    %99 = vector.broadcast %c1_i32_34 : i32 to vector<1x24xi32>
    %100 = arith.cmpi sge, %97, %99 : vector<1x24xi32>
    %c5_i32_35 = arith.constant 5 : i32
    %101 = vector.broadcast %c5_i32_35 : i32 to vector<1x24xi32>
    %102 = arith.cmpi slt, %97, %101 : vector<1x24xi32>
    %103 = arith.andi %100, %102 : vector<1x24xi1>
    %cst_36 = arith.constant 0.000000e+00 : bf16
    %104 = vector.broadcast %cst_36 : bf16 to vector<16x24xbf16>
    %105 = vector.shape_cast %103 : vector<1x24xi1> to vector<1x24xi1>
    %106 = vector.broadcast %105 : vector<1x24xi1> to vector<16x24xi1>
    %107 = arith.select %106, %98, %104 : vector<16x24xi1>, vector<16x24xbf16>
    %108 = vector.extract_strided_slice %80 {offsets = [0, 1], sizes = [16, 24], strides = [1, 1]} : vector<16x26xbf16> to vector<16x24xbf16>
    %109 = vector.extract_strided_slice %80 {offsets = [0, 2], sizes = [16, 24], strides = [1, 1]} : vector<16x26xbf16> to vector<16x24xbf16>
    %c-1_i32_37 = arith.constant -1 : i32
    %110 = vector.broadcast %c-1_i32_37 : i32 to vector<1x24xi32>
    %111 = arith.cmpi sge, %97, %110 : vector<1x24xi32>
    %c3_i32_38 = arith.constant 3 : i32
    %112 = vector.broadcast %c3_i32_38 : i32 to vector<1x24xi32>
    %113 = arith.cmpi slt, %97, %112 : vector<1x24xi32>
    %114 = arith.andi %111, %113 : vector<1x24xi1>
    %cst_39 = arith.constant 0.000000e+00 : bf16
    %115 = vector.broadcast %cst_39 : bf16 to vector<16x24xbf16>
    %116 = vector.shape_cast %114 : vector<1x24xi1> to vector<1x24xi1>
    %117 = vector.broadcast %116 : vector<1x24xi1> to vector<16x24xi1>
    %118 = arith.select %117, %109, %115 : vector<16x24xi1>, vector<16x24xbf16>
    %119 = vector.extract_strided_slice %107 {offsets = [0, 0], sizes = [16, 16], strides = [1, 1]} : vector<16x24xbf16> to vector<16x16xbf16>
    %120 = vector.extract_strided_slice %108 {offsets = [0, 0], sizes = [16, 16], strides = [1, 1]} : vector<16x24xbf16> to vector<16x16xbf16>
    %121 = vector.extract_strided_slice %118 {offsets = [0, 0], sizes = [16, 16], strides = [1, 1]} : vector<16x24xbf16> to vector<16x16xbf16>
    %122 = vector.extract_strided_slice %107 {offsets = [0, 4], sizes = [16, 16], strides = [1, 1]} : vector<16x24xbf16> to vector<16x16xbf16>
    %123 = vector.extract_strided_slice %108 {offsets = [0, 4], sizes = [16, 16], strides = [1, 1]} : vector<16x24xbf16> to vector<16x16xbf16>
    %124 = vector.extract_strided_slice %118 {offsets = [0, 4], sizes = [16, 16], strides = [1, 1]} : vector<16x24xbf16> to vector<16x16xbf16>
    %125 = vector.extract_strided_slice %107 {offsets = [0, 8], sizes = [16, 16], strides = [1, 1]} : vector<16x24xbf16> to vector<16x16xbf16>
    %126 = vector.extract_strided_slice %108 {offsets = [0, 8], sizes = [16, 16], strides = [1, 1]} : vector<16x24xbf16> to vector<16x16xbf16>
    %127 = vector.extract_strided_slice %118 {offsets = [0, 8], sizes = [16, 16], strides = [1, 1]} : vector<16x24xbf16> to vector<16x16xbf16>
    %128 = tpu.concatenate %119, %120, %121, %122, %123, %124, %125, %126, %127 in 0 : vector<16x16xbf16>, vector<16x16xbf16>, vector<16x16xbf16>, vector<16x16xbf16>, vector<16x16xbf16>, vector<16x16xbf16>, vector<16x16xbf16>, vector<16x16xbf16>, vector<16x16xbf16> -> vector<144x16xbf16>
    %cst_40 = arith.constant dense<0.000000e+00> : vector<16x16xf32>
    %129 = tpu.matmul %78, %128, %cst_40 {dimension_numbers = #tpu.dot_dimension_numbers<[1], [0], [0], [1], [0, 0, 1, 1], [], []>} : vector<16x144xbf16>, vector<144x16xbf16>, vector<16x16xf32> -> vector<16x16xf32>
    %c0_41 = arith.constant 0 : index
    %c0_42 = arith.constant 0 : index
    %130 = vector.load %arg9[%c0_41, %c0_42] : memref<16x1xf32, #tpu.memory_space<vmem>>, vector<16x1xf32>
    %131 = vector.broadcast %130 : vector<16x1xf32> to vector<16x16xf32>
    %132 = arith.mulf %129, %131 : vector<16x16xf32>
    %c0_43 = arith.constant 0 : index
    %c0_44 = arith.constant 0 : index
    %133 = vector.load %arg10[%c0_43, %c0_44] : memref<16x1xf32, #tpu.memory_space<vmem>>, vector<16x1xf32>
    %134 = vector.broadcast %133 : vector<16x1xf32> to vector<16x16xf32>
    %135 = arith.addf %132, %134 : vector<16x16xf32>
    %136 = arith.addf %135, %12 : vector<16x16xf32>
    %cst_45 = arith.constant 0.000000e+00 : f32
    %137 = vector.broadcast %cst_45 : f32 to vector<16x16xf32>
    %138 = arith.cmpf oge, %136, %137 : vector<16x16xf32>
    %cst_46 = arith.constant 2.000000e-01 : f32
    %139 = vector.broadcast %cst_46 : f32 to vector<16x16xf32>
    %140 = arith.mulf %139, %136 : vector<16x16xf32>
    %141 = arith.select %138, %136, %140 : vector<16x16xi1>, vector<16x16xf32>
    %142 = arith.truncf %141 : vector<16x16xf32> to vector<16x16xbf16>
    %c0_47 = arith.constant 0 : index
    %c0_48 = arith.constant 0 : index
    %143 = vector.load %arg11[%c0_47, %c0_48] : memref<16x64xbf16, #tpu.memory_space<vmem>>, vector<16x64xbf16>
    %cst_49 = arith.constant dense<0.000000e+00> : vector<16x64xf32>
    %144 = tpu.matmul %142, %143, %cst_49 {dimension_numbers = #tpu.dot_dimension_numbers<[1], [0], [0], [1], [0, 0, 1, 1], [], []>} : vector<16x16xbf16>, vector<16x64xbf16>, vector<16x64xf32> -> vector<16x64xf32>
    %145 = arith.truncf %144 : vector<16x64xf32> to vector<16x64xbf16>
    %c0_50 = arith.constant 0 : index
    %c0_51 = arith.constant 0 : index
    %146 = vector.load %arg12[%c0_50, %c0_51] : memref<16x144xbf16, #tpu.memory_space<vmem>>, vector<16x144xbf16>
    %cst_52 = arith.constant 0.000000e+00 : bf16
    %147 = vector.broadcast %cst_52 : bf16 to vector<16x9xbf16>
    %148 = tpu.concatenate %147, %145, %147 in 1 : vector<16x9xbf16>, vector<16x64xbf16>, vector<16x9xbf16> -> vector<16x82xbf16>
    %149 = tpu.iota {dimensions = array<i32: 1>} : vector<1x80xi32>
    %c8_i32 = arith.constant 8 : i32
    %c0_i32_53 = arith.constant 0 : i32
    %150 = arith.cmpi eq, %c8_i32, %c0_i32_53 : i32
    %c1_i32_54 = arith.constant 1 : i32
    %151 = arith.select %150, %c1_i32_54, %c8_i32 : i32
    %152 = vector.broadcast %151 : i32 to vector<1x80xi32>
    %153 = arith.remsi %149, %152 : vector<1x80xi32>
    %c0_i32_55 = arith.constant 0 : i32
    %154 = vector.broadcast %c0_i32_55 : i32 to vector<1x80xi32>
    %155 = arith.cmpi ne, %153, %154 : vector<1x80xi32>
    %c0_i32_56 = arith.constant 0 : i32
    %156 = vector.broadcast %c0_i32_56 : i32 to vector<1x80xi32>
    %157 = arith.cmpi slt, %153, %156 : vector<1x80xi32>
    %c0_i32_57 = arith.constant 0 : i32
    %158 = arith.cmpi slt, %151, %c0_i32_57 : i32
    %159 = vector.broadcast %158 : i1 to vector<1x80xi1>
    %160 = vector.broadcast %159 : vector<1x80xi1> to vector<1x80xi1>
    %161 = arith.xori %157, %160 : vector<1x80xi1>
    %162 = arith.andi %161, %155 : vector<1x80xi1>
    %163 = vector.broadcast %151 : i32 to vector<1x80xi32>
    %164 = arith.addi %153, %163 : vector<1x80xi32>
    %165 = arith.select %162, %164, %153 : vector<1x80xi1>, vector<1x80xi32>
    %166 = vector.extract_strided_slice %148 {offsets = [0, 0], sizes = [16, 80], strides = [1, 1]} : vector<16x82xbf16> to vector<16x80xbf16>
    %c1_i32_58 = arith.constant 1 : i32
    %167 = vector.broadcast %c1_i32_58 : i32 to vector<1x80xi32>
    %168 = arith.cmpi sge, %165, %167 : vector<1x80xi32>
    %c9_i32 = arith.constant 9 : i32
    %169 = vector.broadcast %c9_i32 : i32 to vector<1x80xi32>
    %170 = arith.cmpi slt, %165, %169 : vector<1x80xi32>
    %171 = arith.andi %168, %170 : vector<1x80xi1>
    %cst_59 = arith.constant 0.000000e+00 : bf16
    %172 = vector.broadcast %cst_59 : bf16 to vector<16x80xbf16>
    %173 = vector.shape_cast %171 : vector<1x80xi1> to vector<1x80xi1>
    %174 = vector.broadcast %173 : vector<1x80xi1> to vector<16x80xi1>
    %175 = arith.select %174, %166, %172 : vector<16x80xi1>, vector<16x80xbf16>
    %176 = vector.extract_strided_slice %148 {offsets = [0, 1], sizes = [16, 80], strides = [1, 1]} : vector<16x82xbf16> to vector<16x80xbf16>
    %177 = vector.extract_strided_slice %148 {offsets = [0, 2], sizes = [16, 80], strides = [1, 1]} : vector<16x82xbf16> to vector<16x80xbf16>
    %c-1_i32_60 = arith.constant -1 : i32
    %178 = vector.broadcast %c-1_i32_60 : i32 to vector<1x80xi32>
    %179 = arith.cmpi sge, %165, %178 : vector<1x80xi32>
    %c7_i32 = arith.constant 7 : i32
    %180 = vector.broadcast %c7_i32 : i32 to vector<1x80xi32>
    %181 = arith.cmpi slt, %165, %180 : vector<1x80xi32>
    %182 = arith.andi %179, %181 : vector<1x80xi1>
    %cst_61 = arith.constant 0.000000e+00 : bf16
    %183 = vector.broadcast %cst_61 : bf16 to vector<16x80xbf16>
    %184 = vector.shape_cast %182 : vector<1x80xi1> to vector<1x80xi1>
    %185 = vector.broadcast %184 : vector<1x80xi1> to vector<16x80xi1>
    %186 = arith.select %185, %177, %183 : vector<16x80xi1>, vector<16x80xbf16>
    %187 = vector.extract_strided_slice %175 {offsets = [0, 0], sizes = [16, 64], strides = [1, 1]} : vector<16x80xbf16> to vector<16x64xbf16>
    %188 = vector.extract_strided_slice %176 {offsets = [0, 0], sizes = [16, 64], strides = [1, 1]} : vector<16x80xbf16> to vector<16x64xbf16>
    %189 = vector.extract_strided_slice %186 {offsets = [0, 0], sizes = [16, 64], strides = [1, 1]} : vector<16x80xbf16> to vector<16x64xbf16>
    %190 = vector.extract_strided_slice %175 {offsets = [0, 8], sizes = [16, 64], strides = [1, 1]} : vector<16x80xbf16> to vector<16x64xbf16>
    %191 = vector.extract_strided_slice %176 {offsets = [0, 8], sizes = [16, 64], strides = [1, 1]} : vector<16x80xbf16> to vector<16x64xbf16>
    %192 = vector.extract_strided_slice %186 {offsets = [0, 8], sizes = [16, 64], strides = [1, 1]} : vector<16x80xbf16> to vector<16x64xbf16>
    %193 = vector.extract_strided_slice %175 {offsets = [0, 16], sizes = [16, 64], strides = [1, 1]} : vector<16x80xbf16> to vector<16x64xbf16>
    %194 = vector.extract_strided_slice %176 {offsets = [0, 16], sizes = [16, 64], strides = [1, 1]} : vector<16x80xbf16> to vector<16x64xbf16>
    %195 = vector.extract_strided_slice %186 {offsets = [0, 16], sizes = [16, 64], strides = [1, 1]} : vector<16x80xbf16> to vector<16x64xbf16>
    %196 = tpu.concatenate %187, %188, %189, %190, %191, %192, %193, %194, %195 in 0 : vector<16x64xbf16>, vector<16x64xbf16>, vector<16x64xbf16>, vector<16x64xbf16>, vector<16x64xbf16>, vector<16x64xbf16>, vector<16x64xbf16>, vector<16x64xbf16>, vector<16x64xbf16> -> vector<144x64xbf16>
    %cst_62 = arith.constant dense<0.000000e+00> : vector<16x64xf32>
    %197 = tpu.matmul %146, %196, %cst_62 {dimension_numbers = #tpu.dot_dimension_numbers<[1], [0], [0], [1], [0, 0, 1, 1], [], []>} : vector<16x144xbf16>, vector<144x64xbf16>, vector<16x64xf32> -> vector<16x64xf32>
    %198 = vector.extract_strided_slice %197 {offsets = [0, 0], sizes = [8, 64], strides = [1, 1]} : vector<16x64xf32> to vector<8x64xf32>
    %c0_63 = arith.constant 0 : index
    %c0_64 = arith.constant 0 : index
    %199 = vector.load %arg13[%c0_63, %c0_64] : memref<8x1xf32, #tpu.memory_space<vmem>>, vector<8x1xf32>
    %200 = vector.broadcast %199 : vector<8x1xf32> to vector<8x64xf32>
    %201 = arith.mulf %198, %200 : vector<8x64xf32>
    %c0_65 = arith.constant 0 : index
    %c0_66 = arith.constant 0 : index
    %202 = vector.load %arg14[%c0_65, %c0_66] : memref<8x1xf32, #tpu.memory_space<vmem>>, vector<8x1xf32>
    %203 = vector.broadcast %202 : vector<8x1xf32> to vector<8x64xf32>
    %204 = arith.addf %201, %203 : vector<8x64xf32>
    %cst_67 = arith.constant 0.000000e+00 : f32
    %205 = vector.broadcast %cst_67 : f32 to vector<8x64xf32>
    %206 = arith.cmpf oge, %204, %205 : vector<8x64xf32>
    %cst_68 = arith.constant 2.000000e-01 : f32
    %207 = vector.broadcast %cst_68 : f32 to vector<8x64xf32>
    %208 = arith.mulf %207, %204 : vector<8x64xf32>
    %209 = arith.select %206, %204, %208 : vector<8x64xi1>, vector<8x64xf32>
    %210 = vector.extract_strided_slice %197 {offsets = [8, 0], sizes = [8, 64], strides = [1, 1]} : vector<16x64xf32> to vector<8x64xf32>
    %211 = arith.truncf %209 : vector<8x64xf32> to vector<8x64xbf16>
    %c0_69 = arith.constant 0 : index
    %c0_70 = arith.constant 0 : index
    %212 = vector.load %arg15[%c0_69, %c0_70] : memref<8x72xbf16, #tpu.memory_space<vmem>>, vector<8x72xbf16>
    %cst_71 = arith.constant 0.000000e+00 : bf16
    %213 = vector.broadcast %cst_71 : bf16 to vector<8x9xbf16>
    %214 = tpu.concatenate %213, %211, %213 in 1 : vector<8x9xbf16>, vector<8x64xbf16>, vector<8x9xbf16> -> vector<8x82xbf16>
    %215 = tpu.iota {dimensions = array<i32: 1>} : vector<1x80xi32>
    %c8_i32_72 = arith.constant 8 : i32
    %c0_i32_73 = arith.constant 0 : i32
    %216 = arith.cmpi eq, %c8_i32_72, %c0_i32_73 : i32
    %c1_i32_74 = arith.constant 1 : i32
    %217 = arith.select %216, %c1_i32_74, %c8_i32_72 : i32
    %218 = vector.broadcast %217 : i32 to vector<1x80xi32>
    %219 = arith.remsi %215, %218 : vector<1x80xi32>
    %c0_i32_75 = arith.constant 0 : i32
    %220 = vector.broadcast %c0_i32_75 : i32 to vector<1x80xi32>
    %221 = arith.cmpi ne, %219, %220 : vector<1x80xi32>
    %c0_i32_76 = arith.constant 0 : i32
    %222 = vector.broadcast %c0_i32_76 : i32 to vector<1x80xi32>
    %223 = arith.cmpi slt, %219, %222 : vector<1x80xi32>
    %c0_i32_77 = arith.constant 0 : i32
    %224 = arith.cmpi slt, %217, %c0_i32_77 : i32
    %225 = vector.broadcast %224 : i1 to vector<1x80xi1>
    %226 = vector.broadcast %225 : vector<1x80xi1> to vector<1x80xi1>
    %227 = arith.xori %223, %226 : vector<1x80xi1>
    %228 = arith.andi %227, %221 : vector<1x80xi1>
    %229 = vector.broadcast %217 : i32 to vector<1x80xi32>
    %230 = arith.addi %219, %229 : vector<1x80xi32>
    %231 = arith.select %228, %230, %219 : vector<1x80xi1>, vector<1x80xi32>
    %232 = vector.extract_strided_slice %214 {offsets = [0, 0], sizes = [8, 80], strides = [1, 1]} : vector<8x82xbf16> to vector<8x80xbf16>
    %c1_i32_78 = arith.constant 1 : i32
    %233 = vector.broadcast %c1_i32_78 : i32 to vector<1x80xi32>
    %234 = arith.cmpi sge, %231, %233 : vector<1x80xi32>
    %c9_i32_79 = arith.constant 9 : i32
    %235 = vector.broadcast %c9_i32_79 : i32 to vector<1x80xi32>
    %236 = arith.cmpi slt, %231, %235 : vector<1x80xi32>
    %237 = arith.andi %234, %236 : vector<1x80xi1>
    %cst_80 = arith.constant 0.000000e+00 : bf16
    %238 = vector.broadcast %cst_80 : bf16 to vector<8x80xbf16>
    %239 = vector.shape_cast %237 : vector<1x80xi1> to vector<1x80xi1>
    %240 = vector.broadcast %239 : vector<1x80xi1> to vector<8x80xi1>
    %241 = arith.select %240, %232, %238 : vector<8x80xi1>, vector<8x80xbf16>
    %242 = vector.extract_strided_slice %214 {offsets = [0, 1], sizes = [8, 80], strides = [1, 1]} : vector<8x82xbf16> to vector<8x80xbf16>
    %243 = vector.extract_strided_slice %214 {offsets = [0, 2], sizes = [8, 80], strides = [1, 1]} : vector<8x82xbf16> to vector<8x80xbf16>
    %c-1_i32_81 = arith.constant -1 : i32
    %244 = vector.broadcast %c-1_i32_81 : i32 to vector<1x80xi32>
    %245 = arith.cmpi sge, %231, %244 : vector<1x80xi32>
    %c7_i32_82 = arith.constant 7 : i32
    %246 = vector.broadcast %c7_i32_82 : i32 to vector<1x80xi32>
    %247 = arith.cmpi slt, %231, %246 : vector<1x80xi32>
    %248 = arith.andi %245, %247 : vector<1x80xi1>
    %cst_83 = arith.constant 0.000000e+00 : bf16
    %249 = vector.broadcast %cst_83 : bf16 to vector<8x80xbf16>
    %250 = vector.shape_cast %248 : vector<1x80xi1> to vector<1x80xi1>
    %251 = vector.broadcast %250 : vector<1x80xi1> to vector<8x80xi1>
    %252 = arith.select %251, %243, %249 : vector<8x80xi1>, vector<8x80xbf16>
    %253 = vector.extract_strided_slice %241 {offsets = [0, 0], sizes = [8, 64], strides = [1, 1]} : vector<8x80xbf16> to vector<8x64xbf16>
    %254 = vector.extract_strided_slice %242 {offsets = [0, 0], sizes = [8, 64], strides = [1, 1]} : vector<8x80xbf16> to vector<8x64xbf16>
    %255 = vector.extract_strided_slice %252 {offsets = [0, 0], sizes = [8, 64], strides = [1, 1]} : vector<8x80xbf16> to vector<8x64xbf16>
    %256 = vector.extract_strided_slice %241 {offsets = [0, 8], sizes = [8, 64], strides = [1, 1]} : vector<8x80xbf16> to vector<8x64xbf16>
    %257 = vector.extract_strided_slice %242 {offsets = [0, 8], sizes = [8, 64], strides = [1, 1]} : vector<8x80xbf16> to vector<8x64xbf16>
    %258 = vector.extract_strided_slice %252 {offsets = [0, 8], sizes = [8, 64], strides = [1, 1]} : vector<8x80xbf16> to vector<8x64xbf16>
    %259 = vector.extract_strided_slice %241 {offsets = [0, 16], sizes = [8, 64], strides = [1, 1]} : vector<8x80xbf16> to vector<8x64xbf16>
    %260 = vector.extract_strided_slice %242 {offsets = [0, 16], sizes = [8, 64], strides = [1, 1]} : vector<8x80xbf16> to vector<8x64xbf16>
    %261 = vector.extract_strided_slice %252 {offsets = [0, 16], sizes = [8, 64], strides = [1, 1]} : vector<8x80xbf16> to vector<8x64xbf16>
    %262 = tpu.concatenate %253, %254, %255, %256, %257, %258, %259, %260, %261 in 0 : vector<8x64xbf16>, vector<8x64xbf16>, vector<8x64xbf16>, vector<8x64xbf16>, vector<8x64xbf16>, vector<8x64xbf16>, vector<8x64xbf16>, vector<8x64xbf16>, vector<8x64xbf16> -> vector<72x64xbf16>
    %cst_84 = arith.constant dense<0.000000e+00> : vector<8x64xf32>
    %263 = tpu.matmul %212, %262, %cst_84 {dimension_numbers = #tpu.dot_dimension_numbers<[1], [0], [0], [1], [0, 0, 1, 1], [], []>} : vector<8x72xbf16>, vector<72x64xbf16>, vector<8x64xf32> -> vector<8x64xf32>
    %c0_85 = arith.constant 0 : index
    %c0_86 = arith.constant 0 : index
    %264 = vector.load %arg16[%c0_85, %c0_86] : memref<8x1xf32, #tpu.memory_space<vmem>>, vector<8x1xf32>
    %265 = vector.broadcast %264 : vector<8x1xf32> to vector<8x64xf32>
    %266 = arith.mulf %263, %265 : vector<8x64xf32>
    %c0_87 = arith.constant 0 : index
    %c0_88 = arith.constant 0 : index
    %267 = vector.load %arg17[%c0_87, %c0_88] : memref<8x1xf32, #tpu.memory_space<vmem>>, vector<8x1xf32>
    %268 = vector.broadcast %267 : vector<8x1xf32> to vector<8x64xf32>
    %269 = arith.addf %266, %268 : vector<8x64xf32>
    %270 = arith.addf %269, %210 : vector<8x64xf32>
    %cst_89 = arith.constant 0.000000e+00 : f32
    %271 = vector.broadcast %cst_89 : f32 to vector<8x64xf32>
    %272 = arith.cmpf oge, %270, %271 : vector<8x64xf32>
    %cst_90 = arith.constant 2.000000e-01 : f32
    %273 = vector.broadcast %cst_90 : f32 to vector<8x64xf32>
    %274 = arith.mulf %273, %270 : vector<8x64xf32>
    %275 = arith.select %272, %270, %274 : vector<8x64xi1>, vector<8x64xf32>
    %276 = arith.truncf %275 : vector<8x64xf32> to vector<8x64xbf16>
    %c0_91 = arith.constant 0 : index
    %c0_92 = arith.constant 0 : index
    %277 = vector.load %arg18[%c0_91, %c0_92] : memref<64x256xbf16, #tpu.memory_space<vmem>>, vector<64x256xbf16>
    %cst_93 = arith.constant dense<0.000000e+00> : vector<8x256xf32>
    %278 = tpu.matmul %276, %277, %cst_93 {dimension_numbers = #tpu.dot_dimension_numbers<[1], [0], [0], [1], [0, 0, 1, 1], [], []>} : vector<8x64xbf16>, vector<64x256xbf16>, vector<8x256xf32> -> vector<8x256xf32>
    %279 = arith.truncf %278 : vector<8x256xf32> to vector<8x256xbf16>
    %c0_94 = arith.constant 0 : index
    %c0_95 = arith.constant 0 : index
    %280 = vector.load %arg19[%c0_94, %c0_95] : memref<8x72xbf16, #tpu.memory_space<vmem>>, vector<8x72xbf16>
    %cst_96 = arith.constant 0.000000e+00 : bf16
    %281 = vector.broadcast %cst_96 : bf16 to vector<8x17xbf16>
    %282 = tpu.concatenate %281, %279, %281 in 1 : vector<8x17xbf16>, vector<8x256xbf16>, vector<8x17xbf16> -> vector<8x290xbf16>
    %283 = tpu.iota {dimensions = array<i32: 1>} : vector<1x288xi32>
    %c16_i32 = arith.constant 16 : i32
    %c0_i32_97 = arith.constant 0 : i32
    %284 = arith.cmpi eq, %c16_i32, %c0_i32_97 : i32
    %c1_i32_98 = arith.constant 1 : i32
    %285 = arith.select %284, %c1_i32_98, %c16_i32 : i32
    %286 = vector.broadcast %285 : i32 to vector<1x288xi32>
    %287 = arith.remsi %283, %286 : vector<1x288xi32>
    %c0_i32_99 = arith.constant 0 : i32
    %288 = vector.broadcast %c0_i32_99 : i32 to vector<1x288xi32>
    %289 = arith.cmpi ne, %287, %288 : vector<1x288xi32>
    %c0_i32_100 = arith.constant 0 : i32
    %290 = vector.broadcast %c0_i32_100 : i32 to vector<1x288xi32>
    %291 = arith.cmpi slt, %287, %290 : vector<1x288xi32>
    %c0_i32_101 = arith.constant 0 : i32
    %292 = arith.cmpi slt, %285, %c0_i32_101 : i32
    %293 = vector.broadcast %292 : i1 to vector<1x288xi1>
    %294 = vector.broadcast %293 : vector<1x288xi1> to vector<1x288xi1>
    %295 = arith.xori %291, %294 : vector<1x288xi1>
    %296 = arith.andi %295, %289 : vector<1x288xi1>
    %297 = vector.broadcast %285 : i32 to vector<1x288xi32>
    %298 = arith.addi %287, %297 : vector<1x288xi32>
    %299 = arith.select %296, %298, %287 : vector<1x288xi1>, vector<1x288xi32>
    %300 = vector.extract_strided_slice %282 {offsets = [0, 0], sizes = [8, 288], strides = [1, 1]} : vector<8x290xbf16> to vector<8x288xbf16>
    %c1_i32_102 = arith.constant 1 : i32
    %301 = vector.broadcast %c1_i32_102 : i32 to vector<1x288xi32>
    %302 = arith.cmpi sge, %299, %301 : vector<1x288xi32>
    %c17_i32 = arith.constant 17 : i32
    %303 = vector.broadcast %c17_i32 : i32 to vector<1x288xi32>
    %304 = arith.cmpi slt, %299, %303 : vector<1x288xi32>
    %305 = arith.andi %302, %304 : vector<1x288xi1>
    %cst_103 = arith.constant 0.000000e+00 : bf16
    %306 = vector.broadcast %cst_103 : bf16 to vector<8x288xbf16>
    %307 = vector.shape_cast %305 : vector<1x288xi1> to vector<1x288xi1>
    %308 = vector.broadcast %307 : vector<1x288xi1> to vector<8x288xi1>
    %309 = arith.select %308, %300, %306 : vector<8x288xi1>, vector<8x288xbf16>
    %310 = vector.extract_strided_slice %282 {offsets = [0, 1], sizes = [8, 288], strides = [1, 1]} : vector<8x290xbf16> to vector<8x288xbf16>
    %311 = vector.extract_strided_slice %282 {offsets = [0, 2], sizes = [8, 288], strides = [1, 1]} : vector<8x290xbf16> to vector<8x288xbf16>
    %c-1_i32_104 = arith.constant -1 : i32
    %312 = vector.broadcast %c-1_i32_104 : i32 to vector<1x288xi32>
    %313 = arith.cmpi sge, %299, %312 : vector<1x288xi32>
    %c15_i32 = arith.constant 15 : i32
    %314 = vector.broadcast %c15_i32 : i32 to vector<1x288xi32>
    %315 = arith.cmpi slt, %299, %314 : vector<1x288xi32>
    %316 = arith.andi %313, %315 : vector<1x288xi1>
    %cst_105 = arith.constant 0.000000e+00 : bf16
    %317 = vector.broadcast %cst_105 : bf16 to vector<8x288xbf16>
    %318 = vector.shape_cast %316 : vector<1x288xi1> to vector<1x288xi1>
    %319 = vector.broadcast %318 : vector<1x288xi1> to vector<8x288xi1>
    %320 = arith.select %319, %311, %317 : vector<8x288xi1>, vector<8x288xbf16>
    %321 = vector.extract_strided_slice %309 {offsets = [0, 0], sizes = [8, 256], strides = [1, 1]} : vector<8x288xbf16> to vector<8x256xbf16>
    %322 = vector.extract_strided_slice %310 {offsets = [0, 0], sizes = [8, 256], strides = [1, 1]} : vector<8x288xbf16> to vector<8x256xbf16>
    %323 = vector.extract_strided_slice %320 {offsets = [0, 0], sizes = [8, 256], strides = [1, 1]} : vector<8x288xbf16> to vector<8x256xbf16>
    %324 = vector.extract_strided_slice %309 {offsets = [0, 16], sizes = [8, 256], strides = [1, 1]} : vector<8x288xbf16> to vector<8x256xbf16>
    %325 = vector.extract_strided_slice %310 {offsets = [0, 16], sizes = [8, 256], strides = [1, 1]} : vector<8x288xbf16> to vector<8x256xbf16>
    %326 = vector.extract_strided_slice %320 {offsets = [0, 16], sizes = [8, 256], strides = [1, 1]} : vector<8x288xbf16> to vector<8x256xbf16>
    %327 = vector.extract_strided_slice %309 {offsets = [0, 32], sizes = [8, 256], strides = [1, 1]} : vector<8x288xbf16> to vector<8x256xbf16>
    %328 = vector.extract_strided_slice %310 {offsets = [0, 32], sizes = [8, 256], strides = [1, 1]} : vector<8x288xbf16> to vector<8x256xbf16>
    %329 = vector.extract_strided_slice %320 {offsets = [0, 32], sizes = [8, 256], strides = [1, 1]} : vector<8x288xbf16> to vector<8x256xbf16>
    %330 = tpu.concatenate %321, %322, %323, %324, %325, %326, %327, %328, %329 in 0 : vector<8x256xbf16>, vector<8x256xbf16>, vector<8x256xbf16>, vector<8x256xbf16>, vector<8x256xbf16>, vector<8x256xbf16>, vector<8x256xbf16>, vector<8x256xbf16>, vector<8x256xbf16> -> vector<72x256xbf16>
    %cst_106 = arith.constant dense<0.000000e+00> : vector<8x256xf32>
    %331 = tpu.matmul %280, %330, %cst_106 {dimension_numbers = #tpu.dot_dimension_numbers<[1], [0], [0], [1], [0, 0, 1, 1], [], []>} : vector<8x72xbf16>, vector<72x256xbf16>, vector<8x256xf32> -> vector<8x256xf32>
    %c0_107 = arith.constant 0 : index
    %c0_108 = arith.constant 0 : index
    %332 = vector.load %arg20[%c0_107, %c0_108] : memref<8x1xf32, #tpu.memory_space<vmem>>, vector<8x1xf32>
    %333 = vector.broadcast %332 : vector<8x1xf32> to vector<8x256xf32>
    %334 = arith.mulf %331, %333 : vector<8x256xf32>
    %c0_109 = arith.constant 0 : index
    %c0_110 = arith.constant 0 : index
    %335 = vector.load %arg21[%c0_109, %c0_110] : memref<8x1xf32, #tpu.memory_space<vmem>>, vector<8x1xf32>
    %336 = vector.broadcast %335 : vector<8x1xf32> to vector<8x256xf32>
    %337 = arith.addf %334, %336 : vector<8x256xf32>
    %cst_111 = arith.constant 0.000000e+00 : f32
    %338 = vector.broadcast %cst_111 : f32 to vector<8x256xf32>
    %339 = arith.cmpf oge, %337, %338 : vector<8x256xf32>
    %cst_112 = arith.constant 2.000000e-01 : f32
    %340 = vector.broadcast %cst_112 : f32 to vector<8x256xf32>
    %341 = arith.mulf %340, %337 : vector<8x256xf32>
    %342 = arith.select %339, %337, %341 : vector<8x256xi1>, vector<8x256xf32>
    %343 = arith.truncf %342 : vector<8x256xf32> to vector<8x256xbf16>
    %c0_113 = arith.constant 0 : index
    %c0_114 = arith.constant 0 : index
    %344 = vector.load %arg22[%c0_113, %c0_114] : memref<8x72xbf16, #tpu.memory_space<vmem>>, vector<8x72xbf16>
    %cst_115 = arith.constant 0.000000e+00 : bf16
    %345 = vector.broadcast %cst_115 : bf16 to vector<8x17xbf16>
    %346 = tpu.concatenate %345, %343, %345 in 1 : vector<8x17xbf16>, vector<8x256xbf16>, vector<8x17xbf16> -> vector<8x290xbf16>
    %347 = tpu.iota {dimensions = array<i32: 1>} : vector<1x288xi32>
    %c16_i32_116 = arith.constant 16 : i32
    %c0_i32_117 = arith.constant 0 : i32
    %348 = arith.cmpi eq, %c16_i32_116, %c0_i32_117 : i32
    %c1_i32_118 = arith.constant 1 : i32
    %349 = arith.select %348, %c1_i32_118, %c16_i32_116 : i32
    %350 = vector.broadcast %349 : i32 to vector<1x288xi32>
    %351 = arith.remsi %347, %350 : vector<1x288xi32>
    %c0_i32_119 = arith.constant 0 : i32
    %352 = vector.broadcast %c0_i32_119 : i32 to vector<1x288xi32>
    %353 = arith.cmpi ne, %351, %352 : vector<1x288xi32>
    %c0_i32_120 = arith.constant 0 : i32
    %354 = vector.broadcast %c0_i32_120 : i32 to vector<1x288xi32>
    %355 = arith.cmpi slt, %351, %354 : vector<1x288xi32>
    %c0_i32_121 = arith.constant 0 : i32
    %356 = arith.cmpi slt, %349, %c0_i32_121 : i32
    %357 = vector.broadcast %356 : i1 to vector<1x288xi1>
    %358 = vector.broadcast %357 : vector<1x288xi1> to vector<1x288xi1>
    %359 = arith.xori %355, %358 : vector<1x288xi1>
    %360 = arith.andi %359, %353 : vector<1x288xi1>
    %361 = vector.broadcast %349 : i32 to vector<1x288xi32>
    %362 = arith.addi %351, %361 : vector<1x288xi32>
    %363 = arith.select %360, %362, %351 : vector<1x288xi1>, vector<1x288xi32>
    %364 = vector.extract_strided_slice %346 {offsets = [0, 0], sizes = [8, 288], strides = [1, 1]} : vector<8x290xbf16> to vector<8x288xbf16>
    %c1_i32_122 = arith.constant 1 : i32
    %365 = vector.broadcast %c1_i32_122 : i32 to vector<1x288xi32>
    %366 = arith.cmpi sge, %363, %365 : vector<1x288xi32>
    %c17_i32_123 = arith.constant 17 : i32
    %367 = vector.broadcast %c17_i32_123 : i32 to vector<1x288xi32>
    %368 = arith.cmpi slt, %363, %367 : vector<1x288xi32>
    %369 = arith.andi %366, %368 : vector<1x288xi1>
    %cst_124 = arith.constant 0.000000e+00 : bf16
    %370 = vector.broadcast %cst_124 : bf16 to vector<8x288xbf16>
    %371 = vector.shape_cast %369 : vector<1x288xi1> to vector<1x288xi1>
    %372 = vector.broadcast %371 : vector<1x288xi1> to vector<8x288xi1>
    %373 = arith.select %372, %364, %370 : vector<8x288xi1>, vector<8x288xbf16>
    %374 = vector.extract_strided_slice %346 {offsets = [0, 1], sizes = [8, 288], strides = [1, 1]} : vector<8x290xbf16> to vector<8x288xbf16>
    %375 = vector.extract_strided_slice %346 {offsets = [0, 2], sizes = [8, 288], strides = [1, 1]} : vector<8x290xbf16> to vector<8x288xbf16>
    %c-1_i32_125 = arith.constant -1 : i32
    %376 = vector.broadcast %c-1_i32_125 : i32 to vector<1x288xi32>
    %377 = arith.cmpi sge, %363, %376 : vector<1x288xi32>
    %c15_i32_126 = arith.constant 15 : i32
    %378 = vector.broadcast %c15_i32_126 : i32 to vector<1x288xi32>
    %379 = arith.cmpi slt, %363, %378 : vector<1x288xi32>
    %380 = arith.andi %377, %379 : vector<1x288xi1>
    %cst_127 = arith.constant 0.000000e+00 : bf16
    %381 = vector.broadcast %cst_127 : bf16 to vector<8x288xbf16>
    %382 = vector.shape_cast %380 : vector<1x288xi1> to vector<1x288xi1>
    %383 = vector.broadcast %382 : vector<1x288xi1> to vector<8x288xi1>
    %384 = arith.select %383, %375, %381 : vector<8x288xi1>, vector<8x288xbf16>
    %385 = vector.extract_strided_slice %373 {offsets = [0, 0], sizes = [8, 256], strides = [1, 1]} : vector<8x288xbf16> to vector<8x256xbf16>
    %386 = vector.extract_strided_slice %374 {offsets = [0, 0], sizes = [8, 256], strides = [1, 1]} : vector<8x288xbf16> to vector<8x256xbf16>
    %387 = vector.extract_strided_slice %384 {offsets = [0, 0], sizes = [8, 256], strides = [1, 1]} : vector<8x288xbf16> to vector<8x256xbf16>
    %388 = vector.extract_strided_slice %373 {offsets = [0, 16], sizes = [8, 256], strides = [1, 1]} : vector<8x288xbf16> to vector<8x256xbf16>
    %389 = vector.extract_strided_slice %374 {offsets = [0, 16], sizes = [8, 256], strides = [1, 1]} : vector<8x288xbf16> to vector<8x256xbf16>
    %390 = vector.extract_strided_slice %384 {offsets = [0, 16], sizes = [8, 256], strides = [1, 1]} : vector<8x288xbf16> to vector<8x256xbf16>
    %391 = vector.extract_strided_slice %373 {offsets = [0, 32], sizes = [8, 256], strides = [1, 1]} : vector<8x288xbf16> to vector<8x256xbf16>
    %392 = vector.extract_strided_slice %374 {offsets = [0, 32], sizes = [8, 256], strides = [1, 1]} : vector<8x288xbf16> to vector<8x256xbf16>
    %393 = vector.extract_strided_slice %384 {offsets = [0, 32], sizes = [8, 256], strides = [1, 1]} : vector<8x288xbf16> to vector<8x256xbf16>
    %394 = tpu.concatenate %385, %386, %387, %388, %389, %390, %391, %392, %393 in 0 : vector<8x256xbf16>, vector<8x256xbf16>, vector<8x256xbf16>, vector<8x256xbf16>, vector<8x256xbf16>, vector<8x256xbf16>, vector<8x256xbf16>, vector<8x256xbf16>, vector<8x256xbf16> -> vector<72x256xbf16>
    %cst_128 = arith.constant dense<0.000000e+00> : vector<8x256xf32>
    %395 = tpu.matmul %344, %394, %cst_128 {dimension_numbers = #tpu.dot_dimension_numbers<[1], [0], [0], [1], [0, 0, 1, 1], [], []>} : vector<8x72xbf16>, vector<72x256xbf16>, vector<8x256xf32> -> vector<8x256xf32>
    %c0_129 = arith.constant 0 : index
    %c0_130 = arith.constant 0 : index
    %396 = vector.load %arg23[%c0_129, %c0_130] : memref<8x1xf32, #tpu.memory_space<vmem>>, vector<8x1xf32>
    %397 = vector.broadcast %396 : vector<8x1xf32> to vector<8x256xf32>
    %398 = arith.mulf %395, %397 : vector<8x256xf32>
    %c0_131 = arith.constant 0 : index
    %c0_132 = arith.constant 0 : index
    %399 = vector.load %arg24[%c0_131, %c0_132] : memref<8x1xf32, #tpu.memory_space<vmem>>, vector<8x1xf32>
    %400 = vector.broadcast %399 : vector<8x1xf32> to vector<8x256xf32>
    %401 = arith.addf %398, %400 : vector<8x256xf32>
    %402 = arith.addf %401, %278 : vector<8x256xf32>
    %cst_133 = arith.constant 0.000000e+00 : f32
    %403 = vector.broadcast %cst_133 : f32 to vector<8x256xf32>
    %404 = arith.cmpf oge, %402, %403 : vector<8x256xf32>
    %cst_134 = arith.constant 2.000000e-01 : f32
    %405 = vector.broadcast %cst_134 : f32 to vector<8x256xf32>
    %406 = arith.mulf %405, %402 : vector<8x256xf32>
    %407 = arith.select %404, %402, %406 : vector<8x256xi1>, vector<8x256xf32>
    %408 = arith.truncf %407 : vector<8x256xf32> to vector<8x256xbf16>
    %c0_135 = arith.constant 0 : index
    %c0_136 = arith.constant 0 : index
    %409 = vector.load %arg25[%c0_135, %c0_136] : memref<3x200xbf16, #tpu.memory_space<vmem>>, vector<3x200xbf16>
    %cst_137 = arith.constant 0.000000e+00 : bf16
    %410 = vector.broadcast %cst_137 : bf16 to vector<8x34xbf16>
    %411 = tpu.concatenate %410, %408, %410 in 1 : vector<8x34xbf16>, vector<8x256xbf16>, vector<8x34xbf16> -> vector<8x324xbf16>
    %412 = tpu.iota {dimensions = array<i32: 1>} : vector<1x320xi32>
    %c16_i32_138 = arith.constant 16 : i32
    %c0_i32_139 = arith.constant 0 : i32
    %413 = arith.cmpi eq, %c16_i32_138, %c0_i32_139 : i32
    %c1_i32_140 = arith.constant 1 : i32
    %414 = arith.select %413, %c1_i32_140, %c16_i32_138 : i32
    %415 = vector.broadcast %414 : i32 to vector<1x320xi32>
    %416 = arith.remsi %412, %415 : vector<1x320xi32>
    %c0_i32_141 = arith.constant 0 : i32
    %417 = vector.broadcast %c0_i32_141 : i32 to vector<1x320xi32>
    %418 = arith.cmpi ne, %416, %417 : vector<1x320xi32>
    %c0_i32_142 = arith.constant 0 : i32
    %419 = vector.broadcast %c0_i32_142 : i32 to vector<1x320xi32>
    %420 = arith.cmpi slt, %416, %419 : vector<1x320xi32>
    %c0_i32_143 = arith.constant 0 : i32
    %421 = arith.cmpi slt, %414, %c0_i32_143 : i32
    %422 = vector.broadcast %421 : i1 to vector<1x320xi1>
    %423 = vector.broadcast %422 : vector<1x320xi1> to vector<1x320xi1>
    %424 = arith.xori %420, %423 : vector<1x320xi1>
    %425 = arith.andi %424, %418 : vector<1x320xi1>
    %426 = vector.broadcast %414 : i32 to vector<1x320xi32>
    %427 = arith.addi %416, %426 : vector<1x320xi32>
    %428 = arith.select %425, %427, %416 : vector<1x320xi1>, vector<1x320xi32>
    %429 = vector.extract_strided_slice %411 {offsets = [0, 0], sizes = [8, 320], strides = [1, 1]} : vector<8x324xbf16> to vector<8x320xbf16>
    %c2_i32 = arith.constant 2 : i32
    %430 = vector.broadcast %c2_i32 : i32 to vector<1x320xi32>
    %431 = arith.cmpi sge, %428, %430 : vector<1x320xi32>
    %c18_i32 = arith.constant 18 : i32
    %432 = vector.broadcast %c18_i32 : i32 to vector<1x320xi32>
    %433 = arith.cmpi slt, %428, %432 : vector<1x320xi32>
    %434 = arith.andi %431, %433 : vector<1x320xi1>
    %cst_144 = arith.constant 0.000000e+00 : bf16
    %435 = vector.broadcast %cst_144 : bf16 to vector<8x320xbf16>
    %436 = vector.shape_cast %434 : vector<1x320xi1> to vector<1x320xi1>
    %437 = vector.broadcast %436 : vector<1x320xi1> to vector<8x320xi1>
    %438 = arith.select %437, %429, %435 : vector<8x320xi1>, vector<8x320xbf16>
    %439 = vector.extract_strided_slice %411 {offsets = [0, 1], sizes = [8, 320], strides = [1, 1]} : vector<8x324xbf16> to vector<8x320xbf16>
    %c1_i32_145 = arith.constant 1 : i32
    %440 = vector.broadcast %c1_i32_145 : i32 to vector<1x320xi32>
    %441 = arith.cmpi sge, %428, %440 : vector<1x320xi32>
    %c17_i32_146 = arith.constant 17 : i32
    %442 = vector.broadcast %c17_i32_146 : i32 to vector<1x320xi32>
    %443 = arith.cmpi slt, %428, %442 : vector<1x320xi32>
    %444 = arith.andi %441, %443 : vector<1x320xi1>
    %cst_147 = arith.constant 0.000000e+00 : bf16
    %445 = vector.broadcast %cst_147 : bf16 to vector<8x320xbf16>
    %446 = vector.shape_cast %444 : vector<1x320xi1> to vector<1x320xi1>
    %447 = vector.broadcast %446 : vector<1x320xi1> to vector<8x320xi1>
    %448 = arith.select %447, %439, %445 : vector<8x320xi1>, vector<8x320xbf16>
    %449 = vector.extract_strided_slice %411 {offsets = [0, 2], sizes = [8, 320], strides = [1, 1]} : vector<8x324xbf16> to vector<8x320xbf16>
    %450 = vector.extract_strided_slice %411 {offsets = [0, 3], sizes = [8, 320], strides = [1, 1]} : vector<8x324xbf16> to vector<8x320xbf16>
    %c-1_i32_148 = arith.constant -1 : i32
    %451 = vector.broadcast %c-1_i32_148 : i32 to vector<1x320xi32>
    %452 = arith.cmpi sge, %428, %451 : vector<1x320xi32>
    %c15_i32_149 = arith.constant 15 : i32
    %453 = vector.broadcast %c15_i32_149 : i32 to vector<1x320xi32>
    %454 = arith.cmpi slt, %428, %453 : vector<1x320xi32>
    %455 = arith.andi %452, %454 : vector<1x320xi1>
    %cst_150 = arith.constant 0.000000e+00 : bf16
    %456 = vector.broadcast %cst_150 : bf16 to vector<8x320xbf16>
    %457 = vector.shape_cast %455 : vector<1x320xi1> to vector<1x320xi1>
    %458 = vector.broadcast %457 : vector<1x320xi1> to vector<8x320xi1>
    %459 = arith.select %458, %450, %456 : vector<8x320xi1>, vector<8x320xbf16>
    %460 = vector.extract_strided_slice %411 {offsets = [0, 4], sizes = [8, 320], strides = [1, 1]} : vector<8x324xbf16> to vector<8x320xbf16>
    %c-2_i32 = arith.constant -2 : i32
    %461 = vector.broadcast %c-2_i32 : i32 to vector<1x320xi32>
    %462 = arith.cmpi sge, %428, %461 : vector<1x320xi32>
    %c14_i32 = arith.constant 14 : i32
    %463 = vector.broadcast %c14_i32 : i32 to vector<1x320xi32>
    %464 = arith.cmpi slt, %428, %463 : vector<1x320xi32>
    %465 = arith.andi %462, %464 : vector<1x320xi1>
    %cst_151 = arith.constant 0.000000e+00 : bf16
    %466 = vector.broadcast %cst_151 : bf16 to vector<8x320xbf16>
    %467 = vector.shape_cast %465 : vector<1x320xi1> to vector<1x320xi1>
    %468 = vector.broadcast %467 : vector<1x320xi1> to vector<8x320xi1>
    %469 = arith.select %468, %460, %466 : vector<8x320xi1>, vector<8x320xbf16>
    %470 = vector.extract_strided_slice %438 {offsets = [0, 0], sizes = [8, 256], strides = [1, 1]} : vector<8x320xbf16> to vector<8x256xbf16>
    %471 = vector.extract_strided_slice %448 {offsets = [0, 0], sizes = [8, 256], strides = [1, 1]} : vector<8x320xbf16> to vector<8x256xbf16>
    %472 = vector.extract_strided_slice %449 {offsets = [0, 0], sizes = [8, 256], strides = [1, 1]} : vector<8x320xbf16> to vector<8x256xbf16>
    %473 = vector.extract_strided_slice %459 {offsets = [0, 0], sizes = [8, 256], strides = [1, 1]} : vector<8x320xbf16> to vector<8x256xbf16>
    %474 = vector.extract_strided_slice %469 {offsets = [0, 0], sizes = [8, 256], strides = [1, 1]} : vector<8x320xbf16> to vector<8x256xbf16>
    %475 = vector.extract_strided_slice %438 {offsets = [0, 16], sizes = [8, 256], strides = [1, 1]} : vector<8x320xbf16> to vector<8x256xbf16>
    %476 = vector.extract_strided_slice %448 {offsets = [0, 16], sizes = [8, 256], strides = [1, 1]} : vector<8x320xbf16> to vector<8x256xbf16>
    %477 = vector.extract_strided_slice %449 {offsets = [0, 16], sizes = [8, 256], strides = [1, 1]} : vector<8x320xbf16> to vector<8x256xbf16>
    %478 = vector.extract_strided_slice %459 {offsets = [0, 16], sizes = [8, 256], strides = [1, 1]} : vector<8x320xbf16> to vector<8x256xbf16>
    %479 = vector.extract_strided_slice %469 {offsets = [0, 16], sizes = [8, 256], strides = [1, 1]} : vector<8x320xbf16> to vector<8x256xbf16>
    %480 = vector.extract_strided_slice %438 {offsets = [0, 32], sizes = [8, 256], strides = [1, 1]} : vector<8x320xbf16> to vector<8x256xbf16>
    %481 = vector.extract_strided_slice %448 {offsets = [0, 32], sizes = [8, 256], strides = [1, 1]} : vector<8x320xbf16> to vector<8x256xbf16>
    %482 = vector.extract_strided_slice %449 {offsets = [0, 32], sizes = [8, 256], strides = [1, 1]} : vector<8x320xbf16> to vector<8x256xbf16>
    %483 = vector.extract_strided_slice %459 {offsets = [0, 32], sizes = [8, 256], strides = [1, 1]} : vector<8x320xbf16> to vector<8x256xbf16>
    %484 = vector.extract_strided_slice %469 {offsets = [0, 32], sizes = [8, 256], strides = [1, 1]} : vector<8x320xbf16> to vector<8x256xbf16>
    %485 = vector.extract_strided_slice %438 {offsets = [0, 48], sizes = [8, 256], strides = [1, 1]} : vector<8x320xbf16> to vector<8x256xbf16>
    %486 = vector.extract_strided_slice %448 {offsets = [0, 48], sizes = [8, 256], strides = [1, 1]} : vector<8x320xbf16> to vector<8x256xbf16>
    %487 = vector.extract_strided_slice %449 {offsets = [0, 48], sizes = [8, 256], strides = [1, 1]} : vector<8x320xbf16> to vector<8x256xbf16>
    %488 = vector.extract_strided_slice %459 {offsets = [0, 48], sizes = [8, 256], strides = [1, 1]} : vector<8x320xbf16> to vector<8x256xbf16>
    %489 = vector.extract_strided_slice %469 {offsets = [0, 48], sizes = [8, 256], strides = [1, 1]} : vector<8x320xbf16> to vector<8x256xbf16>
    %490 = vector.extract_strided_slice %438 {offsets = [0, 64], sizes = [8, 256], strides = [1, 1]} : vector<8x320xbf16> to vector<8x256xbf16>
    %491 = vector.extract_strided_slice %448 {offsets = [0, 64], sizes = [8, 256], strides = [1, 1]} : vector<8x320xbf16> to vector<8x256xbf16>
    %492 = vector.extract_strided_slice %449 {offsets = [0, 64], sizes = [8, 256], strides = [1, 1]} : vector<8x320xbf16> to vector<8x256xbf16>
    %493 = vector.extract_strided_slice %459 {offsets = [0, 64], sizes = [8, 256], strides = [1, 1]} : vector<8x320xbf16> to vector<8x256xbf16>
    %494 = vector.extract_strided_slice %469 {offsets = [0, 64], sizes = [8, 256], strides = [1, 1]} : vector<8x320xbf16> to vector<8x256xbf16>
    %495 = tpu.concatenate %470, %471, %472, %473, %474, %475, %476, %477, %478, %479, %480, %481, %482, %483, %484, %485 in 0 : vector<8x256xbf16>, vector<8x256xbf16>, vector<8x256xbf16>, vector<8x256xbf16>, vector<8x256xbf16>, vector<8x256xbf16>, vector<8x256xbf16>, vector<8x256xbf16>, vector<8x256xbf16>, vector<8x256xbf16>, vector<8x256xbf16>, vector<8x256xbf16>, vector<8x256xbf16>, vector<8x256xbf16>, vector<8x256xbf16>, vector<8x256xbf16> -> vector<128x256xbf16>
    %496 = tpu.concatenate %486, %487, %488, %489, %490, %491, %492, %493, %494 in 0 : vector<8x256xbf16>, vector<8x256xbf16>, vector<8x256xbf16>, vector<8x256xbf16>, vector<8x256xbf16>, vector<8x256xbf16>, vector<8x256xbf16>, vector<8x256xbf16>, vector<8x256xbf16> -> vector<72x256xbf16>
    %497 = tpu.concatenate %495, %496 in 0 : vector<128x256xbf16>, vector<72x256xbf16> -> vector<200x256xbf16>
    %cst_152 = arith.constant dense<0.000000e+00> : vector<3x256xf32>
    %498 = tpu.matmul %409, %497, %cst_152 {dimension_numbers = #tpu.dot_dimension_numbers<[1], [0], [0], [1], [0, 0, 1, 1], [], []>} : vector<3x200xbf16>, vector<200x256xbf16>, vector<3x256xf32> -> vector<3x256xf32>
    %c0_153 = arith.constant 0 : index
    %c0_154 = arith.constant 0 : index
    %499 = vector.load %arg26[%c0_153, %c0_154] : memref<3x1xf32, #tpu.memory_space<vmem>>, vector<3x1xf32>
    %500 = vector.broadcast %499 : vector<3x1xf32> to vector<3x256xf32>
    %501 = arith.addf %498, %500 : vector<3x256xf32>
    %502 = arith.negf %501 : vector<3x256xf32>
    %503 = math.exp %502 : vector<3x256xf32>
    %cst_155 = arith.constant 1.000000e+00 : f32
    %504 = vector.broadcast %cst_155 : f32 to vector<3x256xf32>
    %505 = arith.addf %504, %503 : vector<3x256xf32>
    %506 = arith.divf %504, %505 : vector<3x256xf32>
    %c0_156 = arith.constant 0 : index
    %c0_157 = arith.constant 0 : index
    %c0_158 = arith.constant 0 : index
    %507 = vector.load %arg27[%c0_156, %c0_157, %c0_158] : memref<1x3x256xf32, #tpu.memory_space<vmem>>, vector<1x3x256xf32>
    %508 = vector.shape_cast %507 : vector<1x3x256xf32> to vector<3x256xf32>
    %509 = vector.shape_cast %506 : vector<3x256xf32> to vector<1x3x256xf32>
    tpu.vector_store %arg27[%c0_156, %c0_157, %c0_158], %509 {strides = array<i32>} : memref<1x3x256xf32, #tpu.memory_space<vmem>>, vector<1x3x256xf32>,
    return
  }
  func.func @transform_0(%arg0: i32) -> (i32, i32, i32) {
    %c0_i32 = arith.constant 0 : i32
    %c0_i32_0 = arith.constant 0 : i32
    %c0_i32_1 = arith.constant 0 : i32
    return %arg0, %c0_i32, %c0_i32_0 : i32, i32, i32
  }
  func.func @transform_1(%arg0: i32) -> (i32, i32) {
    %c0_i32 = arith.constant 0 : i32
    %c0_i32_0 = arith.constant 0 : i32
    %c0_i32_1 = arith.constant 0 : i32
    return %c0_i32, %c0_i32_0 : i32, i32
  }
  func.func @transform_2(%arg0: i32) -> (i32, i32) {
    %c0_i32 = arith.constant 0 : i32
    %c0_i32_0 = arith.constant 0 : i32
    %c0_i32_1 = arith.constant 0 : i32
    return %c0_i32, %c0_i32_0 : i32, i32
  }
  func.func @transform_3(%arg0: i32) -> (i32, i32) {
    %c0_i32 = arith.constant 0 : i32
    %c0_i32_0 = arith.constant 0 : i32
    %c0_i32_1 = arith.constant 0 : i32
    return %c0_i32, %c0_i32_0 : i32, i32
  }
  func.func @transform_4(%arg0: i32) -> (i32, i32) {
    %c0_i32 = arith.constant 0 : i32
    %c0_i32_0 = arith.constant 0 : i32
    %c0_i32_1 = arith.constant 0 : i32
    return %c0_i32, %c0_i32_0 : i32, i32
  }
  func.func @transform_5(%arg0: i32) -> (i32, i32) {
    %c0_i32 = arith.constant 0 : i32
    %c0_i32_0 = arith.constant 0 : i32
    %c0_i32_1 = arith.constant 0 : i32
    return %c0_i32, %c0_i32_0 : i32, i32
  }
  func.func @transform_6(%arg0: i32) -> (i32, i32) {
    %c0_i32 = arith.constant 0 : i32
    %c0_i32_0 = arith.constant 0 : i32
    %c0_i32_1 = arith.constant 0 : i32
    return %c0_i32, %c0_i32_0 : i32, i32
  }
  func.func @transform_7(%arg0: i32) -> (i32, i32) {
    %c0_i32 = arith.constant 0 : i32
    %c0_i32_0 = arith.constant 0 : i32
    %c0_i32_1 = arith.constant 0 : i32
    return %c0_i32, %c0_i32_0 : i32, i32
  }
  func.func @transform_8(%arg0: i32) -> (i32, i32) {
    %c0_i32 = arith.constant 0 : i32
    %c0_i32_0 = arith.constant 0 : i32
    %c0_i32_1 = arith.constant 0 : i32
    return %c0_i32, %c0_i32_0 : i32, i32
  }
  func.func @transform_9(%arg0: i32) -> (i32, i32) {
    %c0_i32 = arith.constant 0 : i32
    %c0_i32_0 = arith.constant 0 : i32
    %c0_i32_1 = arith.constant 0 : i32
    return %c0_i32, %c0_i32_0 : i32, i32
  }
  func.func @transform_10(%arg0: i32) -> (i32, i32) {
    %c0_i32 = arith.constant 0 : i32
    %c0_i32_0 = arith.constant 0 : i32
    %c0_i32_1 = arith.constant 0 : i32
    return %c0_i32, %c0_i32_0 : i32, i32
  }
  func.func @transform_11(%arg0: i32) -> (i32, i32) {
    %c0_i32 = arith.constant 0 : i32
    %c0_i32_0 = arith.constant 0 : i32
    %c0_i32_1 = arith.constant 0 : i32
    return %c0_i32, %c0_i32_0 : i32, i32
  }
  func.func @transform_12(%arg0: i32) -> (i32, i32) {
    %c0_i32 = arith.constant 0 : i32
    %c0_i32_0 = arith.constant 0 : i32
    %c0_i32_1 = arith.constant 0 : i32
    return %c0_i32, %c0_i32_0 : i32, i32
  }
  func.func @transform_13(%arg0: i32) -> (i32, i32) {
    %c0_i32 = arith.constant 0 : i32
    %c0_i32_0 = arith.constant 0 : i32
    %c0_i32_1 = arith.constant 0 : i32
    return %c0_i32, %c0_i32_0 : i32, i32
  }
  func.func @transform_14(%arg0: i32) -> (i32, i32) {
    %c0_i32 = arith.constant 0 : i32
    %c0_i32_0 = arith.constant 0 : i32
    %c0_i32_1 = arith.constant 0 : i32
    return %c0_i32, %c0_i32_0 : i32, i32
  }
  func.func @transform_15(%arg0: i32) -> (i32, i32) {
    %c0_i32 = arith.constant 0 : i32
    %c0_i32_0 = arith.constant 0 : i32
    %c0_i32_1 = arith.constant 0 : i32
    return %c0_i32, %c0_i32_0 : i32, i32
  }
  func.func @transform_16(%arg0: i32) -> (i32, i32) {
    %c0_i32 = arith.constant 0 : i32
    %c0_i32_0 = arith.constant 0 : i32
    %c0_i32_1 = arith.constant 0 : i32
    return %c0_i32, %c0_i32_0 : i32, i32
  }
  func.func @transform_17(%arg0: i32) -> (i32, i32) {
    %c0_i32 = arith.constant 0 : i32
    %c0_i32_0 = arith.constant 0 : i32
    %c0_i32_1 = arith.constant 0 : i32
    return %c0_i32, %c0_i32_0 : i32, i32
  }
  func.func @transform_18(%arg0: i32) -> (i32, i32) {
    %c0_i32 = arith.constant 0 : i32
    %c0_i32_0 = arith.constant 0 : i32
    %c0_i32_1 = arith.constant 0 : i32
    return %c0_i32, %c0_i32_0 : i32, i32
  }
  func.func @transform_19(%arg0: i32) -> (i32, i32) {
    %c0_i32 = arith.constant 0 : i32
    %c0_i32_0 = arith.constant 0 : i32
    %c0_i32_1 = arith.constant 0 : i32
    return %c0_i32, %c0_i32_0 : i32, i32
  }
  func.func @transform_20(%arg0: i32) -> (i32, i32) {
    %c0_i32 = arith.constant 0 : i32
    %c0_i32_0 = arith.constant 0 : i32
    %c0_i32_1 = arith.constant 0 : i32
    return %c0_i32, %c0_i32_0 : i32, i32
  }
  func.func @transform_21(%arg0: i32) -> (i32, i32) {
    %c0_i32 = arith.constant 0 : i32
    %c0_i32_0 = arith.constant 0 : i32
    %c0_i32_1 = arith.constant 0 : i32
    return %c0_i32, %c0_i32_0 : i32, i32
  }
  func.func @transform_22(%arg0: i32) -> (i32, i32) {
    %c0_i32 = arith.constant 0 : i32
    %c0_i32_0 = arith.constant 0 : i32
    %c0_i32_1 = arith.constant 0 : i32
    return %c0_i32, %c0_i32_0 : i32, i32
  }
  func.func @transform_23(%arg0: i32) -> (i32, i32) {
    %c0_i32 = arith.constant 0 : i32
    %c0_i32_0 = arith.constant 0 : i32
    %c0_i32_1 = arith.constant 0 : i32
    return %c0_i32, %c0_i32_0 : i32, i32
  }
  func.func @transform_24(%arg0: i32) -> (i32, i32) {
    %c0_i32 = arith.constant 0 : i32
    %c0_i32_0 = arith.constant 0 : i32
    %c0_i32_1 = arith.constant 0 : i32
    return %c0_i32, %c0_i32_0 : i32, i32
  }
  func.func @transform_25(%arg0: i32) -> (i32, i32) {
    %c0_i32 = arith.constant 0 : i32
    %c0_i32_0 = arith.constant 0 : i32
    %c0_i32_1 = arith.constant 0 : i32
    return %c0_i32, %c0_i32_0 : i32, i32
  }
  func.func @transform_26(%arg0: i32) -> (i32, i32, i32) {
    %c0_i32 = arith.constant 0 : i32
    %c0_i32_0 = arith.constant 0 : i32
    %c0_i32_1 = arith.constant 0 : i32
    return %arg0, %c0_i32, %c0_i32_0 : i32, i32, i32
  }
}

</mosaic_0001>

<bundles_post_ra>
// kernel: forward.1
= control target key start
LH: loop header
LB: loop body
LE: loop exit
PB: predicated region body
PF: predicated region fallthrough
CT: control target
= control target key end

     0   :  { %s3534_s27 = smov 0   ;;  %s4804_s0 = inlined_call_operand.vmem [shape: f32[2,1,32], index: 0, kind: input, shape index: {}]   ;;  %s4805_s1 = inlined_call_operand.vmem [shape: f32[16,512], index: 1, kind: input, shape index: {}]   ;;  %s4806_s2 = inlined_call_operand.vmem [shape: bf16[512,16], index: 2, kind: input, shape index: {}]   ;;  %s4807_s3 = inlined_call_operand.vmem [shape: f32[16,16], index: 3, kind: input, shape index: {}]   ;;  %s4808_s4 = inlined_call_operand.vmem [shape: bf16[16,144], index: 4, kind: input, shape index: {}]   ;;  %s4809_s5 = inlined_call_operand.vmem [shape: f32[16,1], index: 5, kind: input, shape index: {}]   ;;  %s4810_s6 = inlined_call_operand.vmem [shape: f32[16,1], index: 6, kind: input, shape index: {}]   ;;  %s4811_s7 = inlined_call_operand.vmem [shape: bf16[16,144], index: 7, kind: input, shape index: {}]   ;;  %s4812_s8 = inlined_call_operand.vmem [shape: f32[16,1], index: 8, kind: input, shape index: {}]   ;;  %s4813_s9 = inlined_call_operand.vmem [shape: f32[16,1], index: 9, kind: input, shape index: {}]   ;;  %s4814_s10 = inlined_call_operand.vmem [shape: bf16[16,64], index: 10, kind: input, shape index: {}]   ;;  %s4815_s11 = inlined_call_operand.vmem [shape: bf16[16,144], index: 11, kind: input, shape index: {}]   ;;  %s4816_s12 = inlined_call_operand.vmem [shape: f32[8,1], index: 12, kind: input, shape index: {}]   ;;  %s4817_s13 = inlined_call_operand.vmem [shape: f32[8,1], index: 13, kind: input, shape index: {}]   ;;  %s4818_s14 = inlined_call_operand.vmem [shape: bf16[8,72], index: 14, kind: input, shape index: {}]   ;;  %s4819_s15 = inlined_call_operand.vmem [shape: f32[8,1], index: 15, kind: input, shape index: {}]   ;;  %s4820_s16 = inlined_call_operand.vmem [shape: f32[8,1], index: 16, kind: input, shape index: {}]   ;;  %s4821_s17 = inlined_call_operand.vmem [shape: bf16[64,256], index: 17, kind: input, shape index: {}]   ;;  %s4822_s18 = inlined_call_operand.vmem [shape: bf16[8,72], index: 18, kind: input, shape index: {}]   ;;  %s4823_s19 = inlined_call_operand.vmem [shape: f32[8,1], index: 19, kind: input, shape index: {}]   ;;  %s4824_s20 = inlined_call_operand.vmem [shape: f32[8,1], index: 20, kind: input, shape index: {}]   ;;  %s4825_s21 = inlined_call_operand.vmem [shape: bf16[8,72], index: 21, kind: input, shape index: {}]   ;;  %s4826_s22 = inlined_call_operand.vmem [shape: f32[8,1], index: 22, kind: input, shape index: {}]   ;;  %s4827_s23 = inlined_call_operand.vmem [shape: f32[8,1], index: 23, kind: input, shape index: {}]   ;;  %s4828_s24 = inlined_call_operand.vmem [shape: bf16[3,200], index: 24, kind: input, shape index: {}]   ;;  %s4829_s25 = inlined_call_operand.vmem [shape: f32[3,1], index: 25, kind: input, shape index: {}]   ;;  %s4830_s26 = inlined_call_operand.vmem [shape: f32[2,3,256], index: 26, kind: output, shape index: {}]  }
   0x1   :  { %4891 = sst [smem:[#allocation4_spill]] %s4804_s0 }
   0x2   :  { %4892 = sst [smem:[#allocation5_spill]] %s4805_s1 }
   0x3   :  { %4893 = sst [smem:[#allocation6_spill]] %s4806_s2 }
   0x4   :  { %4894 = sst [smem:[#allocation7_spill]] %s4807_s3 }
   0x5   :  { %4895 = sst [smem:[#allocation8_spill]] %s4808_s4 }
   0x6   :  { %4896 = sst [smem:[#allocation9_spill]] %s4809_s5 }
   0x7   :  { %4897 = sst [smem:[#allocation10_spill]] %s4810_s6 }
   0x8   :  { %4898 = sst [smem:[#allocation11_spill]] %s4811_s7 }
   0x9   :  { %4899 = sst [smem:[#allocation12_spill]] %s4812_s8 }
   0xa   :  { %4900 = sst [smem:[#allocation13_spill]] %s4813_s9 }
   0xb   :  { %4901 = sst [smem:[#allocation14_spill]] %s4814_s10 }
   0xc   :  { %4902 = sst [smem:[#allocation15_spill]] %s4828_s24 }
   0xd   :  { %4903 = sst [smem:[#allocation16_spill]] %s4829_s25 }
   0xe   :  { %4904 = sst [smem:[#allocation17_spill]] %s4830_s26 }
   0xf LB: > { %4905 = sst [smem:[#allocation2_spill]] %s3364_s27  ;;  %s3045_s3 = sadd.s32 4294967295, %s3364_s27   ;;  %s3364_s27 = sphi %s3534_s27, %s36_s27  }
  0x10   : > { %p3049_p0 = scmp.ge.s32.totalorder %s3364_s27, 1  ;;  %p710_p1 = scmp.lt.s32.totalorder %s3364_s27, 3 }
  0x12   : > { %p711_p2 = pnand %p3049_p0, %p710_p1 }
  0x14   : > { %714 = sbr.rel (%p711_p2) target bundleno = 3724 (0xe8c), region = 124 }
  0x19   : > { %p778_p3 = scmp.lt.s32.totalorder %s3045_s3, 1  ;;  %s4906_s8 = sld [smem:[#allocation6_spill]]  ;;  %vm801_vm0 = vcmask 261120   ;;  %vm803_vm1 = vcmask 523264   ;;  %vm4879_vm2 = vcmask 785408   ;;  %v1162_v61 = vlaneseq }
  0x1a   : > { %s4908_s4 = sld [smem:[#allocation4_spill]]  ;;  %s3366_s7 = smov 32   ;;  %v3369_v62 = vmov 0   ;;  %vm1155_vm11 = vcmask 39936   ;;  %vm1159_vm12 = vcmask 171008   ;;  %vm1246_vm15 = vcmask 130048  }
  0x1b   : > { %s5029_s3 = smov (!%p778_p3, %s3045_s3), 1  ;;  %s4840_s28 = smov 96   ;;  %3346 = vset.pattern.permute.xlu1 %v3369_v62  ;;  %3348 = vset.pattern.permute.xlu0 %v3369_v62  ;;  %v3677_v63 = vand.u32 127, %v1162_v61 }
  0x1c   : > { %4907 = sst [smem:[#allocation3_spill]] %s5029_s3  ;;  %s3368_s9 = smov 64   ;;  %3347 = vset.pattern.permute.xlu2 %v3369_v62 }
  0x1d   : > { %s4909_s6 = sld [smem:[#allocation5_spill]]  ;;  %s4842_s2 = smov 2  }
  0x1e   : > { %s4910_s0 = sld [smem:[#allocation7_spill]]  ;;  %s4850_s5 = smov 5  }
  0x1f   : > { %v3265_v0 = vld [vmem:[%s4906_s8 + $0x38] sm:$0xff]  ;;  %v3264_v4 = vld [vmem:[%s4906_s8 + $0x30] sm:$0xff]  ;;  %v3263_v9 = vld [vmem:[%s4906_s8 + $0x28] sm:$0xff]  ;;  %s4847_s10 = smov 119   ;;  %s4844_s1 = smov 122  }
  0x20   : > { %v3273_v1 = vld [vmem:[%s4906_s8 + $0x78] sm:$0xff]  ;;  %1086 = vmatpush.bf16.msra.mxu0 %v3265_v0  ;;  %v3272_v5 = vld [vmem:[%s4906_s8 + $0x70] sm:$0xff]  ;;  %s3566_s29 = scalar_lea.vmem %s4908_s4, %s5029_s3  ;;  %v3271_v10 = vld [vmem:[%s4906_s8 + $0x68] sm:$0xff]  ;;  %s4849_s4 = smov 123  }
  0x21   : > { %v3281_v2 = vld [vmem:[%s4906_s8 + $0xb8] sm:$0xff]  ;;  %1100 = vmatpush.bf16.msra.mxu1 %v3273_v1  ;;  %v3280_v6 = vld [vmem:[%s4906_s8 + $0xb0] sm:$0xff]  ;;  %v3349_v8 = vld [vmem:[%s3566_s29] ss:$0 sm:$0xff]  ;;  %s4855_s30 = smov 118   ;;  %s4931_s25 = sld [smem:[#allocation11_spill]] }
  0x22   : > { %v3289_v3 = vld [vmem:[%s4906_s8 + $0xf8] sm:$0xff]  ;;  %1114 = vmatpush.bf16.msra.mxu2 %v3281_v2  ;;  %v3288_v7 = vld [vmem:[%s4906_s8 + $0xf0] sm:$0xff]  ;;  %792 = vrot.lane.b32.xlu0 %v3349_v8, %s3366_s7  ;;  %v3279_v11 = vld [vmem:[%s4906_s8 + $0xa8] sm:$0xff]  ;;  %v1168_v2 = vand.u32 3, %v3677_v63  ;;  %s4845_s7 = smov 120   ;;  %s4867_s26 = smov 111  }
  0x23   : > { %1128 = vmatpush.bf16.msra.mxu3 %v3289_v3  ;;  %798 = vrot.lane.b32.xlu1 %v3349_v8, %s4840_s28  ;;  %v3287_v12 = vld [vmem:[%s4906_s8 + $0xe8] sm:$0xff]  ;;  %v3262_v13 = vld [vmem:[%s4906_s8 + $0x20] sm:$0xff]  ;;  %v3261_v17 = vld [vmem:[%s4906_s8 + $0x18] sm:$0xff]  ;;  %s4851_s28 = smov 126   ;;  %s4869_s24 = smov 112  }
  0x24   : > { %1087 = vmatpush.bf16.msra.mxu0 %v3264_v4  ;;  %v3270_v14 = vld [vmem:[%s4906_s8 + $0x60] sm:$0xff]  ;;  %v3269_v18 = vld [vmem:[%s4906_s8 + $0x58] sm:$0xff]  ;;  %v3260_v21 = vld [vmem:[%s4906_s8 + $0x10] sm:$0xff]  ;;  %vm1193_vm3 = vcmp.lt.s32.totalorder %v1168_v2, 3  ;;  %vm1176_vm5 = vcmp.ge.s32.totalorder %v1168_v2, 1  ;;  %s4966_s27 = smov 96  }
  0x25   : > { %1101 = vmatpush.bf16.msra.mxu1 %v3272_v5  ;;  %v3278_v15 = vld [vmem:[%s4906_s8 + $0xa0] sm:$0xff]  ;;  %v3277_v19 = vld [vmem:[%s4906_s8 + $0x98] sm:$0xff]  ;;  %v3268_v22 = vld [vmem:[%s4906_s8 + $0x50] sm:$0xff]  ;;  %s3391_s3 = smov 109  }
  0x26   : > { %1115 = vmatpush.bf16.msra.mxu2 %v3280_v6  ;;  %v3286_v16 = vld [vmem:[%s4906_s8 + $0xe0] sm:$0xff]  ;;  %v3285_v20 = vld [vmem:[%s4906_s8 + $0xd8] sm:$0xff]  ;;  %v3276_v23 = vld [vmem:[%s4906_s8 + $0x90] sm:$0xff] }
  0x27   : > { %1129 = vmatpush.bf16.msra.mxu3 %v3288_v7  ;;  %v3284_v24 = vld [vmem:[%s4906_s8 + $0xd0] sm:$0xff]  ;;  %v3259_v25 = vld [vmem:[%s4906_s8 + $0x8] sm:$0xff]  ;;  %v3258_v29 = vld [vmem:[%s4906_s8] sm:$0xff] }
  0x28   : > { %1088 = vmatpush.bf16.msra.mxu0 %v3263_v9  ;;  %v3267_v26 = vld [vmem:[%s4906_s8 + $0x48] sm:$0xff]  ;;  %v3266_v30 = vld [vmem:[%s4906_s8 + $0x40] sm:$0xff]  ;;  %v809_v44 = vld [vmem:[%s4909_s6 + $0x10] sm:$0xff] }
  0x29   : > { %1102 = vmatpush.bf16.msra.mxu1 %v3271_v10  ;;  %v3275_v27 = vld [vmem:[%s4906_s8 + $0x88] sm:$0xff]  ;;  %v3274_v31 = vld [vmem:[%s4906_s8 + $0x80] sm:$0xff]  ;;  %v813_v46 = vld [vmem:[%s4909_s6 + $0x30] sm:$0xff] }
  0x2a   : > { %1116 = vmatpush.bf16.msra.mxu2 %v3279_v11  ;;  %795 = vrot.lane.b32.xlu0 %v3349_v8, %s3368_s9  ;;  %v3283_v28 = vld [vmem:[%s4906_s8 + $0xc8] sm:$0xff]  ;;  %v3282_v32 = vld [vmem:[%s4906_s8 + $0xc0] sm:$0xff]  ;;  %v810_v47 = vld [vmem:[%s4909_s6 + $0x18] sm:$0xff]  ;;  %s4857_s9 = smov 127   ;;  %s3380_s8 = smov 9  }
  0x2b   : > { %1130 = vmatpush.bf16.msra.mxu3 %v3287_v12  ;;  %v789_v34 = vld [vmem:[%s3566_s29] sm:$0x1]  ;;  %v808_v42 = vld [vmem:[%s4909_s6 + $0x8] sm:$0xff]  ;;  %v814_v48 = vld [vmem:[%s4909_s6 + $0x38] sm:$0xff]  ;;  %s4853_s29 = smov 124  }
  0x2c   : > { %1089 = vmatpush.bf16.msra.mxu0 %v3262_v13  ;;  %v807_v39 = vld [vmem:[%s4909_s6] sm:$0xff]  ;;  %v812_v43 = vld [vmem:[%s4909_s6 + $0x28] sm:$0xff]  ;;  %vm1197_vm4 = vmpackc.low %vm1193_vm3, %vm1193_vm3 }
  0x2d   : > { %1103 = vmatpush.bf16.msra.mxu1 %v3270_v14  ;;  %v811_v40 = vld [vmem:[%s4909_s6 + $0x20] sm:$0xff]  ;;  %v1198_v5 = vsel %vm1197_vm4, 65537, %v3369_v62  ;;  %v893_v10 = vld [vmem:[%s4910_s0 + $0x8] sm:$0xff]  ;;  %vm1181_vm6 = vmpackc.low %vm1176_vm5, %vm1176_vm5  ;;  %s4929_s6 = smov 118  }
  0x2e   : > { %1117 = vmatpush.bf16.msra.mxu2 %v3278_v15  ;;  %v892_v0 = vld [vmem:[%s4910_s0] sm:$0xff]  ;;  %v1199_v6 = vperm.slane %v1198_v5, 0  ;;  %s4932_s0 = sld [smem:[#allocation14_spill]] }
  0x2f   : > { %1131 = vmatpush.bf16.msra.mxu3 %v3286_v16 }
  0x30   : > { %1090 = vmatpush.bf16.msra.mxu0 %v3261_v17  ;;  %1200 = vrot.lane.b32.xlu2 %v1199_v6, %s4842_s2  ;;  %s4926_s2 = smov 124  }
  0x31   : > { %1104 = vmatpush.bf16.msra.mxu1 %v3269_v18 }
  0x32   : > { %1118 = vmatpush.bf16.msra.mxu2 %v3277_v19 }
  0x33   : > { %1132 = vmatpush.bf16.msra.mxu3 %v3285_v20 }
  0x34   : > { %1091 = vmatpush.bf16.msra.mxu0 %v3260_v21 }
  0x35   : > { %1105 = vmatpush.bf16.msra.mxu1 %v3268_v22 }
  0x36   : > { %1119 = vmatpush.bf16.msra.mxu2 %v3276_v23 }
  0x37   : > { %1133 = vmatpush.bf16.msra.mxu3 %v3284_v24 }
  0x38   : > { %1092 = vmatpush.bf16.msra.mxu0 %v3259_v25 }
  0x39   : > { %1106 = vmatpush.bf16.msra.mxu1 %v3267_v26 }
  0x3a   : > { %1120 = vmatpush.bf16.msra.mxu2 %v3275_v27 }
  0x3b   : > { %1134 = vmatpush.bf16.msra.mxu3 %v3283_v28  ;;  %v1182_v28 = vsel %vm1181_vm6, 65537, %v3369_v62 }
  0x3c   : > { %1093 = vmatpush.bf16.msra.mxu0 %v3258_v29 }
  0x3d   : > { %1107 = vmatpush.bf16.msra.mxu1 %v3266_v30  ;;  %v1183_v30 = vperm.slane %v1182_v28, 0 }
  0x3e   : > { %1121 = vmatpush.bf16.msra.mxu2 %v3274_v31  ;;  %v3700_v31 = vunpack.c.l.b16 %v3369_v62 }
  0x3f   : > { %1135 = vmatpush.bf16.msra.mxu3 %v3282_v32  ;;  %v3703_v32 = vunpack.c.h.b16 %v3369_v62 }
  0x8a   : > { %v1201_v29 = vpop.permute.xlu2 %1200 }
  0x94   : > { %v793_v33 = vpop.permute.xlu0 %792 }
  0x95   : > { %v799_v35 = vpop.permute.xlu1 %798  ;;  %v802_v36 = vsel %vm801_vm0, %v789_v34, %v793_v33  ;;  %v1202_v33 = vunpack.c.l.b16 %v1201_v29  ;;  %v1203_v34 = vunpack.c.h.b16 %v1201_v29 }
  0x97   : > { %vm3706_vm7 = vcmp.ne.s32.totalorder %v1202_v33, %v3700_v31  ;;  %vm3711_vm8 = vcmp.ne.s32.totalorder %v1203_v34, %v3703_v32 }
  0x98   : > { %vm1208_vm13 = vmpackc.low %vm3711_vm8, %vm3706_vm7 }
  0x9c   : > { %v796_v37 = vpop.permute.xlu0 %795 }
  0x9d   : > { %v804_v38 = vsel %vm803_vm1, %v802_v36, %v796_v37  ;;  %v1185_v36 = vunpack.c.h.b16 %v1183_v30 }
  0x9e   : > { %v806_v41 = vsel %vm4879_vm2, %v804_v38, %v799_v35  ;;  %v1184_v35 = vunpack.c.l.b16 %v1183_v30 }
  0x9f   : > { %v815_v45 = vperm.slane %v806_v41, 0  ;;  %vm1189_vm10 = vcmp.ne.s32.totalorder %v1185_v36, %v3703_v32 }
  0xa0   : > { %vm1188_vm9 = vcmp.ne.s32.totalorder %v1184_v35, %v3700_v31 }
  0xa1   : > { %v816_v49 = vmul.f32 %v815_v45, %v807_v39  ;;  %v820_v50 = vmul.f32 %v815_v45, %v811_v40  ;;  %v817_v51 = vmul.f32 %v815_v45, %v808_v42  ;;  %v821_v52 = vmul.f32 %v815_v45, %v812_v43  ;;  %vm3721_vm14 = vmpackc.low %vm1189_vm10, %vm1188_vm9  ;;  %v3193_v40 = vld [vmem:[%s4931_s25 + $0x8] sm:$0xf0] }
  0xa2   : > { %v818_v53 = vmul.f32 %v815_v45, %v809_v44  ;;  %v822_v54 = vmul.f32 %v815_v45, %v813_v46  ;;  %v819_v55 = vmul.f32 %v815_v45, %v810_v47  ;;  %v823_v56 = vmul.f32 %v815_v45, %v814_v48 }
  0xa3   : > { %v824_v57 = vpack.c.bf16 %v820_v50, %v816_v49  ;;  %v825_v58 = vpack.c.bf16 %v821_v52, %v817_v51 }
  0xa4   : > { %v826_v59 = vpack.c.bf16 %v822_v54, %v818_v53  ;;  %v827_v60 = vpack.c.bf16 %v823_v56, %v819_v55 }
  0xa5   : > { %1094 = vmatmul.bf16.vlgmr.msra.gmra.mxu0 %v824_v57  ;;  %1108 = vmatmul.bf16.vlgmr.msra.gmra.mxu1 %v825_v58 }
  0xa6   : > { %1122 = vmatmul.bf16.vlgmr.msra.gmra.mxu2 %v826_v59  ;;  %1136 = vmatmul.bf16.vlgmr.msra.gmra.mxu3 %v827_v60 }
 0x122   : > { %v1095_v1 = vpop.f32.mrf.mxu0  ;;  %v1109_v4 = vpop.f32.mrf.mxu1 }
 0x123   : > { %v1096_v3 = vadd.f32 %v1095_v1, %v892_v0 }
 0x125   : > { %v1110_v7 = vadd.f32 %v1109_v4, %v1096_v3 }
 0x129   : > { %v1123_v8 = vpop.f32.mrf.mxu2  ;;  %v1137_v9 = vpop.f32.mrf.mxu3 }
 0x12a   : > { %v1124_v11 = vadd.f32 %v1123_v8, %v1110_v7  ;;  %v1097_v12 = vpop.f32.mrf.mxu0  ;;  %v1111_v15 = vpop.f32.mrf.mxu1 }
 0x12b   : > { %v1098_v13 = vadd.f32 %v1097_v12, %v893_v10 }
 0x12c   : > { %v1138_v14 = vadd.f32 %v1137_v9, %v1124_v11 }
 0x12d   : > { %v1112_v16 = vadd.f32 %v1111_v15, %v1098_v13 }
 0x12e   : > { %v3689_v18 = vmax.f32 %v1138_v14, 0.0 }
 0x130   : > { %v1144_v22 = vpack.c.bf16 %v3689_v18, %v3689_v18 }
 0x131   : > { %v1125_v17 = vpop.f32.mrf.mxu2  ;;  %v1139_v20 = vpop.f32.mrf.mxu3 }
 0x132   : > { %v1126_v19 = vadd.f32 %v1125_v17, %v1112_v16  ;;  %v1150_v25 = vunpack.c.l.b16 %v1144_v22 }
 0x134   : > { %v1140_v21 = vadd.f32 %v1139_v20, %v1126_v19 }
 0x136   : > { %v3693_v23 = vmax.f32 %v1140_v21, 0.0 }
 0x138   : > { %v1145_v24 = vpack.c.bf16 %v3693_v23, %v3693_v23 }
 0x13a   : > { %v1151_v26 = vunpack.c.l.b16 %v1145_v24 }
 0x13c   : > { %v1152_v27 = vpack.c.b16 %v1151_v26, %v1150_v25 }
 0x13e   : > { %1153 = vrot.lane.b32.xlu1 %v1152_v27, %s4850_s5  ;;  %s4918_s5 = sld [smem:[#allocation10_spill]] }
 0x144   : > { %v1292_v47 = vld [vmem:[%s4918_s5] sm:$0xff]  ;;  %v1293_v50 = vld [vmem:[%s4918_s5 + $0x8] sm:$0xff]  ;;  %s4928_s5 = smov 127  }
 0x1b0   : > { %v1154_v39 = vpop.permute.xlu1 %1153 }
 0x1b1   : > { %v1158_v41 = vsel %vm1155_vm11, 0, %v1154_v39  ;;  %v3292_v39 = vld [vmem:[%s4931_s25 + $0x4] sm:$0xf] }
 0x1b2   : > { %v1160_v42 = vsel %vm1159_vm12, %v1158_v41, 0 }
 0x1b3   : > { %1231 = vrot.lane.b32.xlu2 %v1160_v42, %s4847_s10  ;;  %v1209_v43 = vsel %vm1208_vm13, %v1160_v42, 0  ;;  %v1191_v44 = vsel %vm3721_vm14, %v1160_v42, 0  ;;  %s4920_s10 = smov 5  }
 0x1b4   : > { %1225 = vrot.lane.b32.xlu1 %v1209_v43, %s4844_s1  ;;  %1228 = vrot.lane.b32.xlu0 %v1191_v44, %s4845_s7  ;;  %s4917_s7 = sld [smem:[#allocation9_spill]] }
 0x1b5   : > { %s4919_s1 = sld [smem:[#allocation8_spill]] }
 0x1ba   : > { %v1278_v46 = vld [vmem:[%s4917_s7] sm:$0xff]  ;;  %v1279_v48 = vld [vmem:[%s4917_s7 + $0x8] sm:$0xff]  ;;  %s4871_s7 = smov 110  }
 0x1bb   : > { %1222 = vrot.lane.b32.xlu2 %v1160_v42, %s4849_s4  ;;  %v3290_v54 = vld [vmem:[%s4919_s1 + $0x4] sm:$0xf]  ;;  %v3184_v55 = vld [vmem:[%s4919_s1 + $0x8] sm:$0xf0]  ;;  %v3182_v60 = vld [vmem:[%s4919_s1] sm:$0xf] }
 0x1bc   : > { %1215 = vrot.lane.b32.xlu1 %v1209_v43, %s4851_s28  ;;  %1219 = vrot.lane.b32.xlu0 %v1191_v44, %s4853_s29  ;;  %v3187_v58 = vor.u32 %v3290_v54, %v3184_v55  ;;  %v3291_v61 = vld [vmem:[%s4919_s1 + $0x4] sm:$0xf0]  ;;  %s4921_s4 = smov 119   ;;  %s4922_s28 = smov 122  }
 0x1bd   : > { %v3183_v0 = vor.u32 %v3291_v61, %v3182_v60  ;;  %s4923_s29 = smov 120   ;;  %s4927_s1 = sld [smem:[#allocation12_spill]] }
 0x1c3   : > { %1211 = vrot.lane.b32.xlu2 %v1160_v42, %s4857_s9  ;;  %s4924_s9 = smov 123   ;;  %v1396_v33 = vld [vmem:[%s4927_s1] sm:$0xff]  ;;  %v1397_v34 = vld [vmem:[%s4927_s1 + $0x8] sm:$0xff]  ;;  %v3196_v42 = vor.u32 %v3292_v39, %v3193_v40  ;;  %s3386_s1 = smov 95  }
 0x1c4   : > { %1234 = vrot.lane.b32.xlu0 %v1209_v43, %s4855_s30  ;;  %1282 = vperm.xlu1 %3346, %v1278_v46   ;;  %s4925_s30 = smov 126   ;;  %v1595_v39 = vld [vmem:[%s4817_s13] sm:$0xff] }
 0x1cb   : > { %1287 = vperm.xlu2 %3347, %v1279_v48   ;;  %v3191_v48 = vld [vmem:[%s4931_s25] sm:$0xf] }
 0x1cc   : > { %1296 = vperm.xlu0 %3348, %v1292_v47   ;;  %1301 = vperm.xlu1 %3346, %v1293_v50  }
 0x20d   : > { %v1232_v45 = vpop.permute.xlu2 %1231 }
 0x20e   : > { %1250 = vmatpush.bf16.msrb.mxu0 %v1232_v45 }
 0x215   : > { %v1223_v52 = vpop.permute.xlu2 %1222 }
 0x21d   : > { %v1212_v59 = vpop.permute.xlu2 %1211 }
 0x225   : > { %v1288_v8 = vpop.permute.xlu2 %1287 }
 0x226   : > { %v1229_v49 = vpop.permute.xlu0 %1228  ;;  %v1226_v51 = vpop.permute.xlu1 %1225 }
 0x227   : > { %1251 = vmatpush.bf16.msrb.mxu0 %v1229_v49  ;;  %v3293_v49 = vld [vmem:[%s4931_s25 + $0x4] sm:$0xf0] }
 0x228   : > { %v3192_v50 = vor.u32 %v3293_v49, %v3191_v48 }
 0x22b   : > { %1252 = vmatpush.bf16.msrb.mxu0 %v1226_v51  ;;  %v3294_v51 = vld [vmem:[%s4932_s0] sm:$0xff]  ;;  %s3384_s0 = smov 17  }
 0x22e   : > { %v1220_v53 = vpop.permute.xlu0 %1219  ;;  %v1216_v56 = vpop.permute.xlu1 %1215 }
 0x22f   : > { %1253 = vmatpush.bf16.msrb.mxu0 %v1223_v52 }
 0x233   : > { %1254 = vmatpush.bf16.msrb.mxu0 %v1220_v53 }
 0x236   : > { %v1235_v57 = vpop.permute.xlu0 %1234  ;;  %v1283_v4 = vpop.permute.xlu1 %1282 }
 0x237   : > { %1255 = vmatpush.bf16.msrb.mxu0 %v1216_v56  ;;  %1271 = vmatpush.bf16.msrb.mxu1 %v1235_v57 }
 0x23a   : > { %3188 = vmatmul.msk.bf16.vlgmr.msrb.gmra.mxu1 %vm1246_vm15, %v3187_v58 }
 0x23b   : > { %1256 = vmatpush.bf16.msrb.mxu0 %v1212_v59  ;;  %1451 = vmatpush.bf16.msra.mxu1 %v3294_v51  ;;  %v3205_v51 = vld [vmem:[%s4815_s11] sm:$0xf] }
 0x23e   : > { %v1297_v5 = vpop.permute.xlu0 %1296  ;;  %v1302_v14 = vpop.permute.xlu1 %1301 }
 0x23f   : > { %1257 = vmatpush.bf16.msrb.mxu0 %v1191_v44 }
 0x242   : > { %1258 = vmatmul.bf16.vlgmr.msrb.gmra.mxu0 %v3183_v0 }
 0x2b7   : > { %v1273_v1 = vpop.f32.mrf.mxu1 }
 0x2bf   : > { %v1259_v2 = vpop.f32.mrf.mxu0  ;;  %v1275_v9 = vpop.f32.mrf.mxu1 }
 0x2c0   : > { %v1274_v3 = vadd.f32 %v1273_v1, %v1259_v2 }
 0x2c2   : > { %v1290_v6 = vmul.f32 %v1283_v4, %v1274_v3 }
 0x2c4   : > { %v1304_v7 = vadd.f32 %v1297_v5, %v1290_v6 }
 0x2c6   : > { %v1308_v11 = vmul.f32 0.2, %v1304_v7  ;;  %vm1306_vm0 = vcmp.ge.f32.partialorder %v1304_v7, 0.0 }
 0x2c7   : > { %v1261_v10 = vpop.f32.mrf.mxu0 }
 0x2c8   : > { %v1276_v12 = vadd.f32 %v1275_v9, %v1261_v10  ;;  %v1310_v15 = vsel %vm1306_vm0, %v1304_v7, %v1308_v11  ;;  %v1479_v11 = vand.u32 7, %v3677_v63  ;;  %vm1472_vm0 = vcmask 596992  }
 0x2c9   : > { %v1312_v19 = vpack.c.bf16 %v1310_v15, %v1310_v15 }
 0x2ca   : > { %v1291_v13 = vmul.f32 %v1288_v8, %v1276_v12  ;;  %vm1504_vm6 = vcmp.lt.s32.totalorder %v1479_v11, 7  ;;  %vm3820_vm8 = vcmp.ge.s32.totalorder %v1479_v11, 1 }
 0x2cb   : > { %v1318_v22 = vunpack.c.l.b16 %v1312_v19  ;;  %vm1508_vm7 = vmpackc.low %vm1504_vm6, %vm1504_vm6  ;;  %vm4878_vm6 = vcmask 588800  }
 0x2cc   : > { %v1305_v16 = vadd.f32 %v1302_v14, %v1291_v13  ;;  %vm1492_vm9 = vmpackc.low %vm3820_vm8, %vm3820_vm8 }
 0x2ce   : > { %vm1307_vm3 = vcmp.ge.f32.partialorder %v1305_v16, 0.0  ;;  %v1309_v17 = vmul.f32 0.2, %v1305_v16 }
 0x2d0   : > { %v1311_v20 = vsel %vm1307_vm3, %v1305_v16, %v1309_v17 }
 0x2d1   : > { %v1313_v21 = vpack.c.bf16 %v1311_v20, %v1311_v20 }
 0x2d3   : > { %v1319_v24 = vunpack.c.l.b16 %v1313_v21  ;;  %v1493_v21 = vsel %vm1492_vm9, 65537, %v3369_v62 }
 0x2d5   : > { %v1320_v25 = vpack.c.b16 %v1319_v24, %v1318_v22  ;;  %v1494_v22 = vperm.slane %v1493_v21, 0 }
 0x2d7   : > { %1321 = vrot.lane.b32.xlu2 %v1320_v25, %s4920_s10  ;;  %s4933_s10 = smov 2   ;;  %v1495_v25 = vunpack.c.l.b16 %v1494_v22 }
 0x2d9   : > { %vm1499_vm10 = vcmp.ne.s32.totalorder %v1495_v25, %v3700_v31 }
 0x331   : > { %v1322_v26 = vpop.permute.xlu2 %1321 }
 0x332   : > { %v1324_v27 = vsel %vm1155_vm11, 0, %v1322_v26  ;;  %v1496_v26 = vunpack.c.h.b16 %v1494_v22 }
 0x333   : > { %v1325_v28 = vsel %vm1159_vm12, %v1324_v27, 0 }
 0x334   : > { %1350 = vrot.lane.b32.xlu1 %v1325_v28, %s4921_s4  ;;  %v1328_v29 = vsel %vm1208_vm13, %v1325_v28, 0  ;;  %v1327_v30 = vsel %vm3721_vm14, %v1325_v28, 0  ;;  %vm1500_vm11 = vcmp.ne.s32.totalorder %v1496_v26, %v3703_v32  ;;  %vm1469_vm14 = vcmask 72704  }
 0x335   : > { %1344 = vrot.lane.b32.xlu0 %v1328_v29, %s4922_s28  ;;  %1347 = vrot.lane.b32.xlu2 %v1327_v30, %s4923_s29  ;;  %vm1501_vm3 = vmpackc.low %vm1500_vm11, %vm1499_vm10  ;;  %s3389_s28 = smov 1  }
 0x33c   : > { %1341 = vrot.lane.b32.xlu1 %v1325_v28, %s4924_s9  ;;  %s4930_s9 = sld [smem:[#allocation13_spill]] }
 0x33d   : > { %1334 = vrot.lane.b32.xlu0 %v1328_v29, %s4925_s30  ;;  %1338 = vrot.lane.b32.xlu2 %v1327_v30, %s4926_s2 }
 0x342   : > { %v1411_v35 = vld [vmem:[%s4930_s9 + $0x8] sm:$0xff]  ;;  %v1410_v36 = vld [vmem:[%s4930_s9] sm:$0xff] }
 0x344   : > { %1330 = vrot.lane.b32.xlu1 %v1325_v28, %s4928_s5 }
 0x345   : > { %1400 = vperm.xlu0 %3348, %v1396_v33   ;;  %1353 = vrot.lane.b32.xlu2 %v1328_v29, %s4929_s6 }
 0x34c   : > { %1405 = vperm.xlu1 %3346, %v1397_v34  }
 0x34d   : > { %1419 = vperm.xlu0 %3348, %v1411_v35   ;;  %1414 = vperm.xlu2 %3347, %v1410_v36  }
 0x38f   : > { %v1348_v37 = vpop.permute.xlu2 %1347 }
 0x397   : > { %v1339_v38 = vpop.permute.xlu2 %1338 }
 0x39f   : > { %v1354_v41 = vpop.permute.xlu2 %1353 }
 0x3a0   : > { %1389 = vmatpush.bf16.msrb.mxu3 %v1354_v41 }
 0x3a3   : > { %3197 = vmatmul.msk.bf16.vlgmr.msrb.gmra.mxu3 %vm1246_vm15, %v3196_v42 }
 0x3a6   : > { %v1351_v43 = vpop.permute.xlu1 %1350 }
 0x3a7   : > { %1368 = vmatpush.bf16.msrb.mxu2 %v1351_v43  ;;  %v1345_v44 = vpop.permute.xlu0 %1344  ;;  %v1415_v57 = vpop.permute.xlu2 %1414 }
 0x3ab   : > { %1369 = vmatpush.bf16.msrb.mxu2 %v1348_v37 }
 0x3ae   : > { %v1342_v45 = vpop.permute.xlu1 %1341 }
 0x3af   : > { %1370 = vmatpush.bf16.msrb.mxu2 %v1345_v44  ;;  %v1335_v46 = vpop.permute.xlu0 %1334 }
 0x3b3   : > { %1371 = vmatpush.bf16.msrb.mxu2 %v1342_v45  ;;  %v3295_v45 = vld [vmem:[%s4815_s11 + $0x4] sm:$0xf] }
 0x3b6   : > { %v1331_v47 = vpop.permute.xlu1 %1330 }
 0x3b7   : > { %1372 = vmatpush.bf16.msrb.mxu2 %v1339_v38  ;;  %v1401_v55 = vpop.permute.xlu0 %1400  ;;  %v1588_v38 = vld [vmem:[%s4816_s12] sm:$0xff] }
 0x3bb   : > { %1373 = vmatpush.bf16.msrb.mxu2 %v1335_v46  ;;  %v3207_v46 = vld [vmem:[%s4815_s11 + $0x8] sm:$0xf0] }
 0x3bc   : > { %v3210_v48 = vor.u32 %v3295_v45, %v3207_v46  ;;  %v3225_v46 = vld [vmem:[%s4821_s17 + $0x18] sm:$0xf0] }
 0x3be   : > { %v1406_v0 = vpop.permute.xlu1 %1405 }
 0x3bf   : > { %1374 = vmatpush.bf16.msrb.mxu2 %v1331_v47  ;;  %v1420_v3 = vpop.permute.xlu0 %1419 }
 0x3c3   : > { %1375 = vmatpush.bf16.msrb.mxu2 %v1327_v30 }
 0x3c6   : > { %1376 = vmatmul.bf16.vlgmr.msrb.gmra.mxu2 %v3192_v50 }
 0x426   : > { %v1391_v52 = vpop.f32.mrf.mxu3 }
 0x42e   : > { %v1393_v59 = vpop.f32.mrf.mxu3 }
 0x449   : > { %v1377_v53 = vpop.f32.mrf.mxu2 }
 0x44a   : > { %v1392_v54 = vadd.f32 %v1391_v52, %v1377_v53  ;;  %v3296_v52 = vld [vmem:[%s4815_s11 + $0x4] sm:$0xf0] }
 0x44b   : > { %v3206_v53 = vor.u32 %v3296_v52, %v3205_v51  ;;  %v3217_v52 = vld [vmem:[%s4821_s17 + $0x8] sm:$0xf0] }
 0x44c   : > { %v1408_v56 = vmul.f32 %v1401_v55, %v1392_v54 }
 0x44e   : > { %v1422_v58 = vadd.f32 %v1415_v57, %v1408_v56 }
 0x450   : > { %v1424_v1 = vadd.f32 %v1422_v58, %v3689_v18  ;;  %v1509_v18 = vsel %vm1508_vm7, 65537, %v3369_v62 }
 0x451   : > { %v1379_v60 = vpop.f32.mrf.mxu2  ;;  %v1510_v12 = vperm.slane %v1509_v18, 0  ;;  %v1677_v18 = vld [vmem:[%s4819_s15] sm:$0xff] }
 0x452   : > { %v1394_v61 = vadd.f32 %v1393_v59, %v1379_v60  ;;  %v1428_v5 = vmul.f32 0.2, %v1424_v1  ;;  %vm1426_vm4 = vcmp.ge.f32.partialorder %v1424_v1, 0.0 }
 0x453   : > { %1511 = vrot.lane.b32.xlu2 %v1510_v12, %s4933_s10  ;;  %v1684_v12 = vld [vmem:[%s4820_s16] sm:$0xff] }
 0x454   : > { %v1409_v2 = vmul.f32 %v1406_v0, %v1394_v61  ;;  %v1430_v8 = vsel %vm1426_vm4, %v1424_v1, %v1428_v5 }
 0x456   : > { %v1423_v4 = vadd.f32 %v1420_v3, %v1409_v2 }
 0x458   : > { %v1425_v6 = vadd.f32 %v1423_v4, %v3693_v23 }
 0x45a   : > { %vm1427_vm5 = vcmp.ge.f32.partialorder %v1425_v6, 0.0  ;;  %v1429_v7 = vmul.f32 0.2, %v1425_v6 }
 0x45c   : > { %v1431_v9 = vsel %vm1427_vm5, %v1425_v6, %v1429_v7  ;;  %vm1640_vm5 = vcmask 1043456  }
 0x45d   : > { %v1432_v10 = vpack.c.bf16 %v1431_v9, %v1430_v8 }
 0x45f   : > { %3202 = vmatmul.msk.bf16.vlgmr.msra.gmra.mxu1 %vm1246_vm15, %v1432_v10 }
 0x4ad   : > { %v1512_v24 = vpop.permute.xlu2 %1511 }
 0x4ae   : > { %v1513_v27 = vunpack.c.l.b16 %v1512_v24  ;;  %v1514_v28 = vunpack.c.h.b16 %v1512_v24 }
 0x4b0   : > { %vm3836_vm12 = vcmp.ne.s32.totalorder %v1513_v27, %v3700_v31  ;;  %vm3841_vm13 = vcmp.ne.s32.totalorder %v1514_v28, %v3703_v32 }
 0x4b1   : > { %vm1519_vm4 = vmpackc.low %vm3841_vm13, %vm3836_vm12 }
 0x4dc   : > { %v1453_v13 = vpop.f32.mrf.mxu1 }
 0x4dd   : > { %v1458_v14 = vpack.c.bf16 %v1453_v13, %v1453_v13 }
 0x4df   : > { %v1464_v16 = vunpack.c.l.b16 %v1458_v14 }
 0x4e4   : > { %v1455_v23 = vpop.f32.mrf.mxu1 }
 0x4e5   : > { %v1459_v15 = vpack.c.bf16 %v1455_v23, %v1455_v23  ;;  %v3239_v23 = vld [vmem:[%s4821_s17 + $0x30] sm:$0xf] }
 0x4e7   : > { %v1465_v17 = vunpack.c.l.b16 %v1459_v15  ;;  %v3304_v15 = vld [vmem:[%s4821_s17 + $0x34] sm:$0xf0] }
 0x4e9   : > { %v1466_v19 = vpack.c.b16 %v1465_v17, %v1464_v16  ;;  %v3303_v16 = vld [vmem:[%s4821_s17 + $0x34] sm:$0xf]  ;;  %v3240_v17 = vor.u32 %v3304_v15, %v3239_v23 }
 0x4eb   : > { %1467 = vrot.lane.b32.xlu1 %v1466_v19, %s3380_s8  ;;  %v3241_v19 = vld [vmem:[%s4821_s17 + $0x38] sm:$0xf0]  ;;  %1751 = vmatpush.bf16.msra.mxu2 %v3240_v17 }
 0x4ec   : > { %v3244_v20 = vor.u32 %v3303_v16, %v3241_v19 }
 0x55d   : > { %v1468_v33 = vpop.permute.xlu1 %1467 }
 0x55e   : > { %v1471_v34 = vsel %vm1469_vm14, 0, %v1468_v33 }
 0x55f   : > { %v1473_v35 = vsel %vm1472_vm0, %v1471_v34, 0 }
 0x560   : > { %1542 = vrot.lane.b32.xlu0 %v1473_v35, %s4867_s26  ;;  %v1502_v36 = vsel %vm1501_vm3, %v1473_v35, 0  ;;  %v1520_v37 = vsel %vm1519_vm4, %v1473_v35, 0  ;;  %s4941_s26 = smov 111  }
 0x561   : > { %1539 = vrot.lane.b32.xlu1 %v1502_v36, %s4869_s24  ;;  %1536 = vrot.lane.b32.xlu2 %v1520_v37, %s4929_s6  ;;  %s3387_s24 = smov 4  }
 0x568   : > { %1533 = vrot.lane.b32.xlu0 %v1473_v35, %s4921_s4 }
 0x569   : > { %1530 = vrot.lane.b32.xlu1 %v1502_v36, %s4923_s29  ;;  %1526 = vrot.lane.b32.xlu2 %v1520_v37, %s4925_s30 }
 0x570   : > { %1522 = vrot.lane.b32.xlu0 %v1473_v35, %s4928_s5  ;;  %v1606_v35 = vld [vmem:[%s4818_s14] sm:$0xf] }
 0x571   : > { %1545 = vrot.lane.b32.xlu1 %v1520_v37, %s4871_s7  ;;  %1591 = vperm.xlu2 %3347, %v1588_v38   ;;  %v3302_v37 = vld [vmem:[%s4821_s17 + $0x24] sm:$0xf0]  ;;  %v3301_v38 = vld [vmem:[%s4821_s17 + $0x24] sm:$0xf] }
 0x578   : > { %1598 = vperm.xlu0 %3348, %v1595_v39  }
 0x5bb   : > { %v1537_v42 = vpop.permute.xlu2 %1536 }
 0x5c3   : > { %v1527_v49 = vpop.permute.xlu2 %1526 }
 0x5cb   : > { %v1592_v57 = vpop.permute.xlu2 %1591 }
 0x5d2   : > { %v1543_v40 = vpop.permute.xlu0 %1542 }
 0x5d3   : > { %1560 = vmatpush.bf16.msra.mxu3 %v1543_v40  ;;  %v1540_v41 = vpop.permute.xlu1 %1539  ;;  %v3233_v40 = vld [vmem:[%s4821_s17 + $0x28] sm:$0xf0] }
 0x5d7   : > { %1561 = vmatpush.bf16.msra.mxu3 %v1540_v41  ;;  %v3236_v41 = vor.u32 %v3301_v38, %v3233_v40 }
 0x5da   : > { %v1534_v44 = vpop.permute.xlu0 %1533 }
 0x5db   : > { %v1531_v43 = vpop.permute.xlu1 %1530  ;;  %1562 = vmatpush.bf16.msra.mxu3 %v1537_v42  ;;  %v3223_v42 = vld [vmem:[%s4821_s17 + $0x10] sm:$0xf] }
 0x5df   : > { %1563 = vmatpush.bf16.msra.mxu3 %v1534_v44  ;;  %v3299_v44 = vld [vmem:[%s4821_s17 + $0x14] sm:$0xf] }
 0x5e2   : > { %v1523_v50 = vpop.permute.xlu0 %1522 }
 0x5e3   : > { %v1546_v47 = vpop.permute.xlu1 %1545  ;;  %1564 = vmatpush.bf16.msra.mxu3 %v1531_v43  ;;  %v3300_v43 = vld [vmem:[%s4821_s17 + $0x14] sm:$0xf0] }
 0x5e4   : > { %1581 = vmatpush.bf16.msra.mxu0 %v1546_v47  ;;  %v3224_v45 = vor.u32 %v3300_v43, %v3223_v42  ;;  %v3228_v47 = vor.u32 %v3299_v44, %v3225_v46 }
 0x5e7   : > { %1565 = vmatpush.bf16.msra.mxu3 %v1527_v49  ;;  %3211 = vmatmul.msk.bf16.vlgmr.msra.gmra.mxu0 %vm1246_vm15, %v3210_v48  ;;  %v3215_v48 = vld [vmem:[%s4821_s17] sm:$0xf]  ;;  %v3298_v49 = vld [vmem:[%s4821_s17 + $0x4] sm:$0xf0] }
 0x5e8   : > { %1764 = vmatpush.bf16.msrb.mxu0 %v3244_v20  ;;  %v3216_v51 = vor.u32 %v3298_v49, %v3215_v48 }
 0x5ea   : > { %v1599_v59 = vpop.permute.xlu0 %1598 }
 0x5eb   : > { %1566 = vmatpush.bf16.msra.mxu3 %v1523_v50  ;;  %v3297_v50 = vld [vmem:[%s4821_s17 + $0x4] sm:$0xf] }
 0x5ec   : > { %1765 = vmatpush.bf16.msrb.mxu0 %v3236_v41 }
 0x5ef   : > { %1567 = vmatpush.bf16.msra.mxu3 %v1502_v36  ;;  %v3231_v36 = vld [vmem:[%s4821_s17 + $0x20] sm:$0xf] }
 0x5f0   : > { %v3232_v39 = vor.u32 %v3302_v37, %v3231_v36  ;;  %1766 = vmatpush.bf16.msrb.mxu0 %v3228_v47 }
 0x5f2   : > { %1568 = vmatmul.bf16.vlgmr.msra.gmra.mxu3 %v3206_v53  ;;  %1752 = vmatpush.bf16.msra.mxu2 %v3232_v39  ;;  %v3220_v53 = vor.u32 %v3297_v50, %v3217_v52 }
 0x5f4   : > { %1767 = vmatpush.bf16.msrb.mxu0 %v3220_v53 }
 0x5f6   : > { %1753 = vmatpush.bf16.msra.mxu2 %v3224_v45 }
 0x5fa   : > { %1754 = vmatpush.bf16.msra.mxu2 %v3216_v51 }
 0x664   : > { %v1583_v54 = vpop.f32.mrf.mxu0 }
 0x675   : > { %v1569_v55 = vpop.f32.mrf.mxu3 }
 0x676   : > { %v1584_v56 = vadd.f32 %v1583_v54, %v1569_v55 }
 0x678   : > { %v1594_v58 = vmul.f32 %v1592_v57, %v1584_v56 }
 0x67a   : > { %v1601_v60 = vadd.f32 %v1599_v59, %v1594_v58  ;;  %v1585_v58 = vpop.f32.mrf.mxu0 }
 0x67c   : > { %v1603_v61 = vmul.f32 0.2, %v1601_v60  ;;  %vm1602_vm15 = vcmp.ge.f32.partialorder %v1601_v60, 0.0 }
 0x67d   : > { %v1571_v54 = vpop.f32.mrf.mxu3 }
 0x67e   : > { %v1604_v0 = vsel %vm1602_vm15, %v1601_v60, %v1603_v61  ;;  %v1586_v60 = vadd.f32 %v1585_v58, %v1571_v54  ;;  %vm4877_vm15 = vcmask 138240  }
 0x67f   : > { %v1605_v1 = vpack.c.bf16 %v1604_v0, %v1604_v0 }
 0x681   : > { %v1608_v2 = vunpack.c.l.b16 %v1605_v1 }
 0x683   : > { %v1609_v3 = vpack.c.b16 %v1608_v2, %v1608_v2 }
 0x685   : > { %1610 = vrot.lane.b32.xlu1 %v1609_v3, %s3380_s8  ;;  %s4940_s8 = smov 112  }
 0x6f7   : > { %v1611_v4 = vpop.permute.xlu1 %1610 }
 0x6f8   : > { %v1613_v5 = vsel %vm1469_vm14, 0, %v1611_v4  ;;  %vm1906_vm14 = vcmask 15360  }
 0x6f9   : > { %v1614_v6 = vsel %vm1472_vm0, %v1613_v5, 0  ;;  %v1794_v5 = vadd.s32 128, %v3677_v63 }
 0x6fa   : > { %v1617_v7 = vsel %vm1519_vm4, %v1614_v6, 0  ;;  %v1616_v8 = vsel %vm1492_vm9, %v1614_v6, 0  ;;  %v1619_v9 = vrot.slane %v1614_v6, 4 }
 0x6fb   : > { %1638 = vrot.lane.b32.xlu2 %v1617_v7, %s4871_s7  ;;  %1634 = vrot.lane.b32.xlu0 %v1616_v8, %s4940_s8  ;;  %v1631_v10 = vrot.slane %v1617_v7, 4  ;;  %v1626_v11 = vrot.slane %v1616_v8, 4  ;;  %s4967_s7 = smov 110  }
 0x6fc   : > { %1636 = vrot.lane.b32.xlu1 %v1619_v9, %s4941_s26 }
 0x703   : > { %1629 = vrot.lane.b32.xlu2 %v1614_v6, %s4921_s4  ;;  %1632 = vrot.lane.b32.xlu0 %v1631_v10, %s4929_s6  ;;  %v3971_v6 = vand.u32 15, %v3677_v63  ;;  %s3390_s4 = smov 34   ;;  %s5018_s6 = sld [smem:[#allocation16_spill]] }
 0x704   : > { %1623 = vrot.lane.b32.xlu1 %v1617_v7, %s4925_s30  ;;  %v3973_v7 = vand.u32 15, %v1794_v5 }
 0x705   : > { %vm1881_vm8 = vcmp.lt.s32.totalorder %v3971_v6, 15  ;;  %vm1832_vm12 = vcmp.ge.s32.totalorder %v3971_v6, 1 }
 0x706   : > { %vm1882_vm9 = vcmp.lt.s32.totalorder %v3973_v7, 15  ;;  %vm1833_vm13 = vcmp.ge.s32.totalorder %v3973_v7, 1 }
 0x707   : > { %vm1893_vm10 = vmpackc.low %vm1882_vm9, %vm1881_vm8 }
 0x708   : > { %vm1847_vm3 = vmpackc.low %vm1833_vm13, %vm1832_vm12 }
 0x70b   : > { %1620 = vrot.lane.b32.xlu0 %v1619_v9, %s4928_s5  ;;  %1627 = vrot.lane.b32.xlu2 %v1626_v11, %s4923_s29  ;;  %v1795_v11 = vadd.s32 256, %v3677_v63  ;;  %s3388_s29 = smov 3  }
 0x70c   : > { %1680 = vperm.xlu1 %3346, %v1677_v18  }
 0x70d   : > { %v3989_v18 = vand.u32 15, %v1795_v11 }
 0x70f   : > { %vm1834_vm0 = vcmp.ge.s32.totalorder %v3989_v18, 1 }
 0x710   : > { %vm1848_vm4 = vmpackc.low %vm1834_vm0, %vm1834_vm0 }
 0x711   : > { %v1850_v36 = vsel %vm1848_vm4, 65537, %v3369_v62 }
 0x712   : > { %v4029_v44 = vperm.slane %v1850_v36, 0 }
 0x713   : > { %1687 = vperm.xlu2 %3347, %v1684_v12  }
 0x714   : > { %v1868_v54 = vunpack.c.l.b16 %v4029_v44 }
 0x716   : > { %vm4113_vm4 = vcmp.ne.s32.totalorder %v1868_v54, %v3700_v31 }
 0x755   : > { %v1639_v13 = vpop.permute.xlu2 %1638 }
 0x756   : > { %v1662_v14 = vsel %vm1640_vm5, %v1639_v13, 0 }
 0x757   : > { %1667 = vmatpush.bf16.msrb.mxu1 %v1662_v14 }
 0x75d   : > { %v1630_v24 = vpop.permute.xlu2 %1629 }
 0x765   : > { %v1628_v29 = vpop.permute.xlu2 %1627 }
 0x76d   : > { %v1635_v21 = vpop.permute.xlu0 %1634  ;;  %v1688_v59 = vpop.permute.xlu2 %1687 }
 0x76e   : > { %v1637_v22 = vpop.permute.xlu1 %1636 }
 0x76f   : > { %v1655_v25 = vsel %vm1640_vm5, %v1635_v21, %v1637_v22 }
 0x770   : > { %1668 = vmatpush.bf16.msrb.mxu1 %v1655_v25 }
 0x775   : > { %v1633_v26 = vpop.permute.xlu0 %1632 }
 0x776   : > { %v1651_v27 = vsel %vm1640_vm5, %v1630_v24, %v1633_v26  ;;  %v1624_v28 = vpop.permute.xlu1 %1623 }
 0x777   : > { %1669 = vmatpush.bf16.msrb.mxu1 %v1651_v27  ;;  %v1647_v30 = vsel %vm1640_vm5, %v1624_v28, %v1628_v29  ;;  %v1849_v28 = vsel %vm1847_vm3, 65537, %v3369_v62 }
 0x778   : > { %v4025_v43 = vperm.slane %v1849_v28, 0  ;;  %v4041_v47 = vperm.slane %v1849_v28, 4 }
 0x77a   : > { %v1854_v52 = vunpack.c.l.b16 %v4025_v43  ;;  %v1855_v53 = vunpack.c.h.b16 %v4025_v43 }
 0x77b   : > { %1670 = vmatpush.bf16.msrb.mxu1 %v1647_v30 }
 0x77c   : > { %vm4102_vm0 = vcmp.ne.s32.totalorder %v1854_v52, %v3700_v31  ;;  %vm4107_vm3 = vcmp.ne.s32.totalorder %v1855_v53, %v3703_v32 }
 0x77d   : > { %v1621_v33 = vpop.permute.xlu0 %1620 }
 0x77e   : > { %v1643_v34 = vsel %vm1640_vm5, %v1616_v8, %v1621_v33  ;;  %v1681_v55 = vpop.permute.xlu1 %1680  ;;  %v3978_v8 = vsel %vm1893_vm10, 65537, %v3369_v62 }
 0x77f   : > { %1671 = vmatpush.bf16.msrb.mxu1 %v1643_v34  ;;  %v1898_v9 = vperm.slane %v3978_v8, 4  ;;  %v1897_v10 = vperm.slane %v3978_v8, 0 }
 0x781   : > { %1902 = vrot.lane.b32.xlu1 %v1898_v9, %s4933_s10  ;;  %1900 = vrot.lane.b32.xlu0 %v1897_v10, %s4933_s10 }
 0x782   : > { %3212 = vmatmul.msk.bf16.vlgmr.msrb.gmra.mxu1 %vm4878_vm6, %v1606_v35 }
 0x7f3   : > { %v1903_v22 = vpop.permute.xlu1 %1902  ;;  %v1901_v24 = vpop.permute.xlu0 %1900 }
 0x7f4   : > { %v1907_v27 = vsel %vm1906_vm14, %v1901_v24, %v1903_v22  ;;  %v1909_v34 = vunpack.c.l.b16 %v1901_v24  ;;  %v1910_v35 = vunpack.c.h.b16 %v1901_v24 }
 0x7f5   : > { %v1916_v41 = vunpack.c.l.b16 %v1907_v27  ;;  %v1917_v42 = vunpack.c.h.b16 %v1907_v27  ;;  %v2097_v27 = vld [vmem:[%s4824_s20] sm:$0xff] }
 0x7f6   : > { %vm4037_vm8 = vcmp.ne.s32.totalorder %v1910_v35, %v3703_v32 }
 0x7ff   : > { %v1673_v56 = vpop.f32.mrf.mxu1 }
 0x800   : > { %v1683_v57 = vmul.f32 %v1681_v55, %v1673_v56  ;;  %v1869_v55 = vunpack.c.h.b16 %v4029_v44  ;;  %v1861_v56 = vunpack.c.l.b16 %v4041_v47 }
 0x802   : > { %v1690_v61 = vadd.f32 %v1688_v59, %v1683_v57  ;;  %v1862_v57 = vunpack.c.h.b16 %v4041_v47 }
 0x804   : > { %v1691_v0 = vadd.f32 %v1690_v61, %v1586_v60 }
 0x806   : > { %vm1692_vm7 = vcmp.ge.f32.partialorder %v1691_v0, 0.0  ;;  %v1693_v1 = vmul.f32 0.2, %v1691_v0 }
 0x807   : > { %v1675_v2 = vpop.f32.mrf.mxu1 }
 0x808   : > { %v1694_v3 = vsel %vm1692_vm7, %v1691_v0, %v1693_v1  ;;  %vm4032_vm7 = vcmp.ne.s32.totalorder %v1909_v34, %v3700_v31 }
 0x809   : > { %v1695_v4 = vpack.c.bf16 %v1694_v3, %v1694_v3  ;;  %vm4875_vm12 = vmpackc.low %vm4037_vm8, %vm4032_vm7  ;;  %v4962_v3 = vmov 0 }
 0x80b   : > { %3245 = vmatmul.msk.bf16.vlgmr.msra.gmra.mxu2 %vm803_vm1, %v1695_v4  ;;  %3246 = vmatmul.msk.bf16.vlgmr.msrb.gmra.mxu0 %vm803_vm1, %v1695_v4  ;;  %vm1883_vm1 = vcmp.lt.s32.totalorder %v3989_v18, 15  ;;  %v4964_v4 = vmov 0 }
 0x80c   : > { %vm1894_vm11 = vmpackc.low %vm1883_vm1, %vm1883_vm1  ;;  %vm4054_vm1 = vcmp.ne.s32.totalorder %v1916_v41, %v3700_v31 }
 0x80d   : > { %v3993_v12 = vsel %vm1894_vm11, 65537, %v3369_v62  ;;  %vm4059_vm11 = vcmp.ne.s32.totalorder %v1917_v42, %v3703_v32 }
 0x80e   : > { %v1899_v13 = vperm.slane %v3993_v12, 0 }
 0x810   : > { %1904 = vrot.lane.b32.xlu2 %v1899_v13, %s4933_s10  ;;  %s3385_s10 = smov 94  }
 0x86a   : > { %v1905_v25 = vpop.permute.xlu2 %1904 }
 0x86b   : > { %v1908_v26 = vsel %vm1906_vm14, %v1903_v22, %v1905_v25  ;;  %vm4874_vm14 = vmpackc.low %vm4059_vm11, %vm4054_vm1 }
 0x86c   : > { %v1923_v29 = vunpack.c.l.b16 %v1908_v26  ;;  %v1924_v37 = vunpack.c.h.b16 %v1908_v26  ;;  %v2089_v26 = vld [vmem:[%s4823_s19] sm:$0xff] }
 0x86e   : > { %vm4044_vm9 = vcmp.ne.s32.totalorder %v1923_v29, %v3700_v31  ;;  %vm4049_vm10 = vcmp.ne.s32.totalorder %v1924_v37, %v3703_v32 }
 0x86f   : > { %vm4876_vm13 = vmpackc.low %vm4049_vm10, %vm4044_vm9 }
 0x888   : > { %v3999_v14 = vpop.f32.mrf.mxu0 }
 0x88e   : > { %v4001_v23 = vpop.f32.mrf.mxu2 }
 0x88f   : > { %v1773_v63 = vpack.c.bf16 %v3999_v14, %v4001_v23 }
 0x890   : > { %v1771_v15 = vpop.f32.mrf.mxu0 }
 0x891   : > { %v1776_v16 = vunpack.c.l.b16 %v1773_v63  ;;  %v1777_v17 = vunpack.c.h.b16 %v1773_v63 }
 0x893   : > { %v1779_v19 = vpack.c.b16 %v1777_v17, %v1777_v17  ;;  %v1778_v20 = vpack.c.b16 %v1776_v16, %v1776_v16 }
 0x895   : > { %1782 = vrot.lane.b32.xlu1 %v1779_v19, %s3384_s0  ;;  %1780 = vrot.lane.b32.xlu0 %v1778_v20, %s3384_s0 }
 0x896   : > { %v1758_v21 = vpop.f32.mrf.mxu2 }
 0x907   : > { %v1783_v30 = vpop.permute.xlu1 %1782  ;;  %v1781_v33 = vpop.permute.xlu0 %1780 }
 0x908   : > { %v4013_v38 = vsel %vm4877_vm15, %v1783_v30, 0  ;;  %v4016_v39 = vsel %vm4877_vm15, 0, %v1781_v33  ;;  %v4019_v40 = vsel %vm4877_vm15, %v1781_v33, %v1783_v30  ;;  %vm4881_vm15 = vmpackc.low %vm4107_vm3, %vm4102_vm0 }
 0x909   : > { %1978 = vrot.lane.b32.xlu1 %v4013_v38, %s4941_s26  ;;  %1974 = vrot.lane.b32.xlu2 %v4016_v39, %s4941_s26  ;;  %v1930_v58 = vsel %vm4875_vm12, %v4016_v39, 0  ;;  %v1932_v59 = vsel %vm4876_vm13, %v4013_v38, 0  ;;  %v1931_v60 = vsel %vm4874_vm14, %v4019_v40, 0  ;;  %vm4118_vm14 = vcmp.ne.s32.totalorder %v1869_v55, %v3703_v32 }
 0x90a   : > { %1976 = vrot.lane.b32.xlu0 %v4019_v40, %s4941_s26  ;;  %vm4123_vm12 = vcmp.ne.s32.totalorder %v1861_v56, %v3700_v31  ;;  %vm4128_vm13 = vcmp.ne.s32.totalorder %v1862_v57, %v3703_v32  ;;  %vm4882_vm6 = vmpackc.low %vm4118_vm14, %vm4113_vm4  ;;  %v4150_v5 = vsel %vm4881_vm15, %v4016_v39, 0  ;;  %v1935_v15 = vrot.slane %v4016_v39, 4 }
 0x90b   : > { %v4963_v3 = vsel %vm4123_vm12, 4294967295, %v4962_v3  ;;  %v4965_v4 = vsel %vm4128_vm13, 4294967295, %v4964_v4  ;;  %vm4880_vm2 = vmpackc.low %vm4128_vm13, %vm4123_vm12  ;;  %v1877_v11 = vsel %vm4882_vm6, %v4013_v38, 0  ;;  %v1937_v16 = vrot.slane %v4013_v38, 4 }
 0x90c   : > { %v4166_v63 = vsel %vm4880_vm2, %v4019_v40, 0  ;;  %v1936_v17 = vrot.slane %v4019_v40, 4  ;;  %v1983_v19 = vrot.slane %v1930_v58, 4  ;;  %v1985_v20 = vrot.slane %v1932_v59, 4 }
 0x90d   : > { %v1984_v21 = vrot.slane %v1931_v60, 4  ;;  %v1964_v22 = vrot.slane %v1877_v11, 4  ;;  %v1962_v24 = vrot.slane %v4150_v5, 4  ;;  %v1963_v25 = vrot.slane %v4166_v63, 4 }
 0x90e   : > { %vm4884_vm2 = vcmask 769024   ;;  %vm2010_vm15 = vcmask 777216   ;;  %vm4968_vm6 = vcmask 785408   ;;  %vm4886_vm13 = vcmask 900096  }
 0x90f   : > { %vm4969_vm12 = vmmov %vm4968_vm6 }
 0x911   : > { %2013 = vrot.lane.b32.xlu2 %v1930_v58, %s3385_s10  ;;  %2017 = vrot.lane.b32.xlu1 %v1932_v59, %s3385_s10 }
 0x912   : > { %2015 = vrot.lane.b32.xlu0 %v1931_v60, %s3385_s10 }
 0x919   : > { %1995 = vrot.lane.b32.xlu2 %v4150_v5, %s4966_s27  ;;  %1999 = vrot.lane.b32.xlu1 %v1877_v11, %s4966_s27 }
 0x91a   : > { %1997 = vrot.lane.b32.xlu0 %v4166_v63, %s4966_s27 }
 0x921   : > { %1950 = vrot.lane.b32.xlu2 %v1930_v58, %s4925_s30  ;;  %1954 = vrot.lane.b32.xlu1 %v1932_v59, %s4925_s30 }
 0x922   : > { %1952 = vrot.lane.b32.xlu0 %v1931_v60, %s4925_s30 }
 0x929   : > { %2004 = vrot.lane.b32.xlu2 %v1935_v15, %s3386_s1  ;;  %2008 = vrot.lane.b32.xlu1 %v1937_v16, %s3386_s1 }
 0x92a   : > { %2006 = vrot.lane.b32.xlu0 %v1936_v17, %s3386_s1 }
 0x931   : > { %1986 = vrot.lane.b32.xlu2 %v1983_v19, %s4967_s7  ;;  %1990 = vrot.lane.b32.xlu1 %v1985_v20, %s4967_s7 }
 0x932   : > { %1988 = vrot.lane.b32.xlu0 %v1984_v21, %s4967_s7 }
 0x939   : > { %1965 = vrot.lane.b32.xlu2 %v1962_v24, %s4940_s8  ;;  %1969 = vrot.lane.b32.xlu1 %v1964_v22, %s4940_s8 }
 0x93a   : > { %1967 = vrot.lane.b32.xlu0 %v1963_v25, %s4940_s8 }
 0x941   : > { %1938 = vrot.lane.b32.xlu2 %v1935_v15, %s4928_s5  ;;  %1942 = vrot.lane.b32.xlu1 %v1937_v16, %s4928_s5 }
 0x942   : > { %1940 = vrot.lane.b32.xlu0 %v1936_v17, %s4928_s5 }
 0x949   : > { %2092 = vperm.xlu2 %3347, %v2089_v26  }
 0x94a   : > { %2100 = vperm.xlu0 %3348, %v2097_v27  }
 0x963   : > { %v1975_v28 = vpop.permute.xlu2 %1974 }
 0x96b   : > { %v2014_v29 = vpop.permute.xlu2 %2013 }
 0x973   : > { %v1996_v34 = vpop.permute.xlu2 %1995 }
 0x97b   : > { %v1979_v30 = vpop.permute.xlu1 %1978  ;;  %v1951_v42 = vpop.permute.xlu2 %1950 }
 0x97c   : > { %v1977_v33 = vpop.permute.xlu0 %1976 }
 0x983   : > { %v2018_v35 = vpop.permute.xlu1 %2017  ;;  %v2005_v55 = vpop.permute.xlu2 %2004 }
 0x984   : > { %v2016_v36 = vpop.permute.xlu0 %2015 }
 0x985   : > { %v2020_v37 = vsel %vm4884_vm2, %v2014_v29, %v2016_v36  ;;  %v2021_v38 = vsel %vm4884_vm2, %v2016_v36, %v2018_v35  ;;  %vm4890_vm2 = vcmask 908288  }
 0x986   : > { %v2058_v39 = vsel %vm1640_vm5, %v2020_v37, 0  ;;  %v2061_v40 = vsel %vm1640_vm5, %v2021_v38, 0  ;;  %v1981_v21 = vsel %vm4890_vm2, %v1975_v28, %v1977_v33  ;;  %v1982_v22 = vsel %vm4890_vm2, %v1977_v33, %v1979_v30 }
 0x987   : > { %2066 = vmatpush.bf16.msrb.mxu2 %v2058_v39  ;;  %2079 = vmatpush.bf16.msrb.mxu3 %v2061_v40 }
 0x98b   : > { %v2000_v41 = vpop.permute.xlu1 %1999  ;;  %v1987_v17 = vpop.permute.xlu2 %1986 }
 0x98c   : > { %v1998_v52 = vpop.permute.xlu0 %1997 }
 0x98d   : > { %v2002_v58 = vsel %vm4968_vm6, %v1996_v34, %v1998_v52  ;;  %v2003_v59 = vsel %vm4969_vm12, %v1998_v52, %v2000_v41  ;;  %vm4888_vm6 = vcmask 1031168   ;;  %vm4887_vm12 = vcmask 916480  }
 0x993   : > { %v1955_v53 = vpop.permute.xlu1 %1954  ;;  %v1966_v29 = vpop.permute.xlu2 %1965 }
 0x994   : > { %v1953_v54 = vpop.permute.xlu0 %1952 }
 0x995   : > { %v1957_v36 = vsel %vm4888_vm6, %v1951_v42, %v1953_v54  ;;  %v1958_v28 = vsel %vm4888_vm6, %v1953_v54, %v1955_v53 }
 0x99b   : > { %v2009_v56 = vpop.permute.xlu1 %2008  ;;  %v1939_v40 = vpop.permute.xlu2 %1938 }
 0x99c   : > { %v2007_v57 = vpop.permute.xlu0 %2006 }
 0x99d   : > { %v2011_v60 = vsel %vm2010_vm15, %v2005_v55, %v2007_v57  ;;  %v2012_v11 = vsel %vm2010_vm15, %v2007_v57, %v2009_v56  ;;  %v1774_v55 = vld [vmem:[%s4822_s18] sm:$0xf] }
 0x99e   : > { %v2048_v15 = vsel %vm1640_vm5, %v2002_v58, %v2011_v60  ;;  %v2052_v16 = vsel %vm1640_vm5, %v2003_v59, %v2012_v11 }
 0x99f   : > { %2067 = vmatpush.bf16.msrb.mxu2 %v2048_v15  ;;  %2080 = vmatpush.bf16.msrb.mxu3 %v2052_v16 }
 0x9a3   : > { %v1991_v19 = vpop.permute.xlu1 %1990  ;;  %v2093_v56 = vpop.permute.xlu2 %2092 }
 0x9a4   : > { %v1989_v20 = vpop.permute.xlu0 %1988 }
 0x9a5   : > { %v1993_v24 = vsel %vm4886_vm13, %v1987_v17, %v1989_v20  ;;  %v1994_v25 = vsel %vm4886_vm13, %v1989_v20, %v1991_v19  ;;  %vm4889_vm13 = vcmask 1039360  }
 0x9a6   : > { %v2040_v26 = vsel %vm1640_vm5, %v1981_v21, %v1993_v24  ;;  %v2044_v27 = vsel %vm1640_vm5, %v1982_v22, %v1994_v25 }
 0x9a7   : > { %2068 = vmatpush.bf16.msrb.mxu2 %v2040_v26  ;;  %2081 = vmatpush.bf16.msrb.mxu3 %v2044_v27 }
 0x9ab   : > { %v1970_v34 = vpop.permute.xlu1 %1969 }
 0x9ac   : > { %v1968_v35 = vpop.permute.xlu0 %1967 }
 0x9ad   : > { %v1972_v30 = vsel %vm4887_vm12, %v1966_v29, %v1968_v35  ;;  %v1973_v33 = vsel %vm4887_vm12, %v1968_v35, %v1970_v34  ;;  %vm4970_vm12 = vcmask 588800  }
 0x9ae   : > { %v2032_v37 = vsel %vm1640_vm5, %v1957_v36, %v1972_v30  ;;  %v2036_v38 = vsel %vm1640_vm5, %v1958_v28, %v1973_v33  ;;  %vm4971_vm6 = vmmov %vm4970_vm12 }
 0x9af   : > { %2069 = vmatpush.bf16.msrb.mxu2 %v2032_v37  ;;  %2082 = vmatpush.bf16.msrb.mxu3 %v2036_v38  ;;  %v2284_v38 = vld [vmem:[%s4826_s22] sm:$0xff] }
 0x9b3   : > { %v1943_v39 = vpop.permute.xlu1 %1942 }
 0x9b4   : > { %v1941_v41 = vpop.permute.xlu0 %1940 }
 0x9b5   : > { %v1945_v52 = vsel %vm4889_vm13, %v1939_v40, %v1941_v41  ;;  %v1946_v42 = vsel %vm4889_vm13, %v1941_v41, %v1943_v39  ;;  %v2292_v39 = vld [vmem:[%s4827_s23] sm:$0xff] }
 0x9b6   : > { %v2024_v53 = vsel %vm1640_vm5, %v4150_v5, %v1945_v52  ;;  %v2028_v54 = vsel %vm1640_vm5, %v4166_v63, %v1946_v42 }
 0x9b7   : > { %2070 = vmatpush.bf16.msrb.mxu2 %v2024_v53  ;;  %2083 = vmatpush.bf16.msrb.mxu3 %v2028_v54 }
 0x9ba   : > { %3247 = vmatmul.msk.bf16.vlgmr.msrb.gmra.mxu2 %vm4970_vm12, %v1774_v55  ;;  %3248 = vmatmul.msk.bf16.vlgmr.msrb.gmra.mxu3 %vm4971_vm6, %v1774_v55  ;;  %vm4972_vm6 = vcmask 138240  }
 0x9bb   : > { %vm4975_vm12 = vmmov %vm4972_vm6 }
 0x9bc   : > { %v2101_v11 = vpop.permute.xlu0 %2100 }
 0xa3d   : > { %v2072_v57 = vpop.f32.mrf.mxu2  ;;  %v2085_v58 = vpop.f32.mrf.mxu3 }
 0xa3e   : > { %v2095_v59 = vmul.f32 %v2093_v56, %v2072_v57  ;;  %v2096_v60 = vmul.f32 %v2093_v56, %v2085_v58 }
 0xa40   : > { %v2103_v5 = vadd.f32 %v2101_v11, %v2095_v59  ;;  %v2104_v15 = vadd.f32 %v2101_v11, %v2096_v60 }
 0xa42   : > { %vm2105_vm13 = vcmp.ge.f32.partialorder %v2103_v5, 0.0  ;;  %v2107_v63 = vmul.f32 0.2, %v2103_v5  ;;  %vm2106_vm2 = vcmp.ge.f32.partialorder %v2104_v15, 0.0  ;;  %v2108_v16 = vmul.f32 0.2, %v2104_v15 }
 0xa44   : > { %v2109_v17 = vsel %vm2105_vm13, %v2103_v5, %v2107_v63  ;;  %v2110_v19 = vsel %vm2106_vm2, %v2104_v15, %v2108_v16  ;;  %vm4973_vm2 = vmpackc.low %vm4049_vm10, %vm4044_vm9 }
 0xa45   : > { %v2074_v20 = vpop.f32.mrf.mxu2  ;;  %v2087_v21 = vpop.f32.mrf.mxu3  ;;  %v2111_v22 = vpack.c.bf16 %v2110_v19, %v2109_v17  ;;  %vm4974_vm13 = vmpackc.low %vm4118_vm14, %vm4113_vm4  ;;  %vm2444_vm4 = vcmp.lt.s32.totalorder %v3971_v6, 14 }
 0xa46   : > { %vm4976_vm9 = vmpackc.low %vm4037_vm8, %vm4032_vm7  ;;  %vm4979_vm7 = vnez %v4965_v4  ;;  %vm4980_vm8 = vnez %v4963_v3 }
 0xa47   : > { %v2115_v24 = vunpack.c.h.b16 %v2111_v22  ;;  %v2114_v25 = vunpack.c.l.b16 %v2111_v22  ;;  %vm4977_vm10 = vmpackc.low %vm4059_vm11, %vm4054_vm1  ;;  %vm4982_vm11 = vcmask 769024  }
 0xa48   : > { %vm4978_vm14 = vmpackc.low %vm4107_vm3, %vm4102_vm0  ;;  %vm2446_vm3 = vcmp.lt.s32.totalorder %v3989_v18, 14 }
 0xa49   : > { %v2117_v26 = vpack.c.b16 %v2115_v24, %v2115_v24  ;;  %v2116_v27 = vpack.c.b16 %v2114_v25, %v2114_v25  ;;  %vm4981_vm1 = vmpackc.low %vm4979_vm7, %vm4980_vm8  ;;  %vm4988_vm7 = vcmask 900096  }
 0xa4a   : > { %vm4983_vm0 = vmmov %vm4982_vm11 }
 0xa4b   : > { %2120 = vrot.lane.b32.xlu2 %v2117_v26, %s3384_s0  ;;  %2118 = vrot.lane.b32.xlu1 %v2116_v27, %s3384_s0  ;;  %vm4989_vm8 = vmmov %vm4988_vm7 }
 0xaa5   : > { %v2121_v29 = vpop.permute.xlu2 %2120 }
 0xaa6   : > { %v2128_v34 = vsel %vm4972_vm6, %v2121_v29, 0 }
 0xaa7   : > { %2178 = vrot.lane.b32.xlu2 %v2128_v34, %s4941_s26  ;;  %v2135_v35 = vsel %vm4973_vm2, %v2128_v34, 0  ;;  %v2132_v36 = vsel %vm4974_vm13, %v2128_v34, 0  ;;  %v2140_v48 = vrot.slane %v2128_v34, 4  ;;  %vm2445_vm2 = vcmp.lt.s32.totalorder %v3973_v7, 14 }
 0xaa8   : > { %v2184_v2 = vrot.slane %v2135_v35, 4  ;;  %v2165_v50 = vrot.slane %v2132_v36, 4  ;;  %vm4984_vm13 = vcmask 785408  }
 0xaaf   : > { %2213 = vrot.lane.b32.xlu2 %v2135_v35, %s3385_s10 }
 0xab7   : > { %2197 = vrot.lane.b32.xlu2 %v2132_v36, %s4966_s27 }
 0xabd   : > { %v2119_v28 = vpop.permute.xlu1 %2118 }
 0xabe   : > { %v2122_v30 = vsel %vm4975_vm12, %v2119_v28, %v2121_v29  ;;  %v2125_v33 = vsel %vm4972_vm6, 0, %v2119_v28  ;;  %vm4985_vm12 = vmmov %vm4984_vm13 }
 0xabf   : > { %2156 = vrot.lane.b32.xlu2 %v2135_v35, %s4925_s30  ;;  %2174 = vrot.lane.b32.xlu0 %v2125_v33, %s4941_s26  ;;  %v2133_v49 = vsel %vm4976_vm9, %v2125_v33, 0  ;;  %v2134_v1 = vsel %vm4977_vm10, %v2122_v30, 0  ;;  %v4269_v45 = vsel %vm4978_vm14, %v2125_v33, 0  ;;  %v4279_v46 = vsel %vm4981_vm1, %v2122_v30, 0  ;;  %vm2457_vm6 = vmpackc.low %vm2446_vm3, %vm2446_vm3 }
 0xac0   : > { %2176 = vrot.lane.b32.xlu1 %v2122_v30, %s4941_s26  ;;  %v2138_v51 = vrot.slane %v2125_v33, 4  ;;  %v2139_v61 = vrot.slane %v2122_v30, 4  ;;  %v2182_v0 = vrot.slane %v2133_v49, 4  ;;  %v2183_v3 = vrot.slane %v2134_v1, 4  ;;  %vm2456_vm9 = vmpackc.low %vm2445_vm2, %vm2444_vm4 }
 0xac1   : > { %v2163_v4 = vrot.slane %v4269_v45, 4  ;;  %v2164_v37 = vrot.slane %v4279_v46, 4  ;;  %v2459_v27 = vsel %vm2457_vm6, 65537, %v3369_v62  ;;  %v2458_v34 = vsel %vm2456_vm9, 65537, %v3369_v62 }
 0xac2   : > { %v2462_v29 = vperm.slane %v2459_v27, 0  ;;  %v2460_v36 = vperm.slane %v2458_v34, 0  ;;  %v2461_v28 = vperm.slane %v2458_v34, 4  ;;  %vm4986_vm10 = vcmask 908288  }
 0xac3   : > { %vm4987_vm14 = vmmov %vm4986_vm10  ;;  %vm4990_vm1 = vcmask 1031168   ;;  %vm4994_vm4 = vcmask 1039360  }
 0xac4   : > { %vm4995_vm2 = vmmov %vm4994_vm4 }
 0xac7   : > { %2205 = vrot.lane.b32.xlu2 %v2140_v48, %s3386_s1  ;;  %2209 = vrot.lane.b32.xlu0 %v2133_v49, %s3385_s10 }
 0xac8   : > { %2211 = vrot.lane.b32.xlu1 %v2134_v1, %s3385_s10 }
 0xacf   : > { %2189 = vrot.lane.b32.xlu2 %v2184_v2, %s4967_s7  ;;  %2193 = vrot.lane.b32.xlu0 %v4269_v45, %s4966_s27 }
 0xad0   : > { %2195 = vrot.lane.b32.xlu1 %v4279_v46, %s4966_s27 }
 0xad7   : > { %2170 = vrot.lane.b32.xlu2 %v2165_v50, %s4940_s8  ;;  %2152 = vrot.lane.b32.xlu0 %v2133_v49, %s4925_s30 }
 0xad8   : > { %2154 = vrot.lane.b32.xlu1 %v2134_v1, %s4925_s30 }
 0xadf   : > { %2145 = vrot.lane.b32.xlu2 %v2140_v48, %s4928_s5  ;;  %2201 = vrot.lane.b32.xlu0 %v2138_v51, %s3386_s1 }
 0xae0   : > { %2203 = vrot.lane.b32.xlu1 %v2139_v61, %s3386_s1 }
 0xae7   : > { %2185 = vrot.lane.b32.xlu0 %v2182_v0, %s4967_s7  ;;  %2463 = vrot.lane.b32.xlu2 %v2460_v36, %s3387_s24 }
 0xae8   : > { %2187 = vrot.lane.b32.xlu1 %v2183_v3, %s4967_s7 }
 0xaef   : > { %2166 = vrot.lane.b32.xlu0 %v2163_v4, %s4940_s8  ;;  %2408 = vrot.lane.b32.xlu2 %v1897_v10, %s3388_s29 }
 0xaf0   : > { %2168 = vrot.lane.b32.xlu1 %v2164_v37, %s4940_s8 }
 0xaf7   : > { %2141 = vrot.lane.b32.xlu0 %v2138_v51, %s4928_s5  ;;  %2377 = vrot.lane.b32.xlu2 %v4041_v47, %s3389_s28 }
 0xaf8   : > { %2143 = vrot.lane.b32.xlu1 %v2139_v61, %s4928_s5 }
 0xaff   : > { %2287 = vperm.xlu0 %3348, %v2284_v38  }
 0xb00   : > { %2295 = vperm.xlu1 %3346, %v2292_v39  }
 0xb01   : > { %v2179_v40 = vpop.permute.xlu2 %2178 }
 0xb07   : > { %2465 = vrot.lane.b32.xlu0 %v2461_v28, %s3387_s24 }
 0xb08   : > { %2467 = vrot.lane.b32.xlu1 %v2462_v29, %s3387_s24  ;;  %s3392_s24 = smov 113  }
 0xb09   : > { %v2214_v41 = vpop.permute.xlu2 %2213 }
 0xb0f   : > { %2410 = vrot.lane.b32.xlu0 %v1898_v9, %s3388_s29 }
 0xb10   : > { %2412 = vrot.lane.b32.xlu1 %v1899_v13, %s3388_s29  ;;  %s3393_s29 = smov 92  }
 0xb11   : > { %v2198_v53 = vpop.permute.xlu2 %2197 }
 0xb17   : > { %2379 = vrot.lane.b32.xlu0 %v4029_v44, %s3389_s28 }
 0xb18   : > { %2375 = vrot.lane.b32.xlu1 %v4025_v43, %s3389_s28  ;;  %v2112_v43 = vld [vmem:[%s4825_s21] sm:$0xf]  ;;  %s3396_s28 = smov 93  }
 0xb19   : > { %v2157_v11 = vpop.permute.xlu2 %2156 }
 0xb21   : > { %v2206_v16 = vpop.permute.xlu2 %2205 }
 0xb29   : > { %v2190_v35 = vpop.permute.xlu2 %2189 }
 0xb31   : > { %v2175_v52 = vpop.permute.xlu0 %2174  ;;  %v2171_v61 = vpop.permute.xlu2 %2170 }
 0xb32   : > { %v2177_v42 = vpop.permute.xlu1 %2176 }
 0xb33   : > { %v2180_v48 = vsel %vm4986_vm10, %v2175_v52, %v2177_v42  ;;  %v2181_v49 = vsel %vm4987_vm14, %v2177_v42, %v2179_v40  ;;  %vm2319_vm10 = vcmask 277504   ;;  %vm2329_vm14 = vcmp.ge.s32.totalorder %v3971_v6, 2 }
 0xb39   : > { %v2210_v54 = vpop.permute.xlu0 %2209  ;;  %v2146_v9 = vpop.permute.xlu2 %2145 }
 0xb3a   : > { %v2212_v55 = vpop.permute.xlu1 %2211 }
 0xb3b   : > { %v2215_v56 = vsel %vm4982_vm11, %v2210_v54, %v2212_v55  ;;  %v2216_v57 = vsel %vm4983_vm0, %v2212_v55, %v2214_v41  ;;  %vm4991_vm11 = vmmov %vm4990_vm1  ;;  %vm4992_vm0 = vcmask 916480  }
 0xb3c   : > { %v2253_v58 = vsel %vm1640_vm5, %v2215_v56, 0  ;;  %v2256_v59 = vsel %vm1640_vm5, %v2216_v57, 0  ;;  %vm4993_vm3 = vmmov %vm4992_vm0 }
 0xb3d   : > { %2261 = vmatpush.bf16.msra.mxu1 %v2253_v58  ;;  %2274 = vmatpush.bf16.msra.mxu0 %v2256_v59 }
 0xb41   : > { %v2194_v60 = vpop.permute.xlu0 %2193 }
 0xb42   : > { %v2196_v5 = vpop.permute.xlu1 %2195 }
 0xb43   : > { %v2199_v20 = vsel %vm4984_vm13, %v2194_v60, %v2196_v5  ;;  %v2200_v21 = vsel %vm4985_vm12, %v2196_v5, %v2198_v53  ;;  %vm4996_vm13 = vcmask 588800  }
 0xb44   : > { %vm4997_vm12 = vmmov %vm4996_vm13 }
 0xb49   : > { %v2153_v15 = vpop.permute.xlu0 %2152 }
 0xb4a   : > { %v2155_v63 = vpop.permute.xlu1 %2154 }
 0xb4b   : > { %v2158_v4 = vsel %vm4990_vm1, %v2153_v15, %v2155_v63  ;;  %v2159_v37 = vsel %vm4991_vm11, %v2155_v63, %v2157_v11 }
 0xb51   : > { %v2202_v17 = vpop.permute.xlu0 %2201 }
 0xb52   : > { %v2204_v19 = vpop.permute.xlu1 %2203 }
 0xb53   : > { %v2207_v22 = vsel %vm2010_vm15, %v2202_v17, %v2204_v19  ;;  %v2208_v24 = vsel %vm2010_vm15, %v2204_v19, %v2206_v16 }
 0xb54   : > { %v2243_v25 = vsel %vm1640_vm5, %v2199_v20, %v2207_v22  ;;  %v2247_v26 = vsel %vm1640_vm5, %v2200_v21, %v2208_v24  ;;  %v2464_v22 = vpop.permute.xlu2 %2463 }
 0xb55   : > { %2262 = vmatpush.bf16.msra.mxu1 %v2243_v25  ;;  %2275 = vmatpush.bf16.msra.mxu0 %v2247_v26  ;;  %v2472_v29 = vunpack.c.l.b16 %v2464_v22  ;;  %v2473_v34 = vunpack.c.h.b16 %v2464_v22 }
 0xb57   : > { %vm2476_vm1 = vcmp.ne.s32.totalorder %v2472_v29, %v3700_v31  ;;  %vm2477_vm11 = vcmp.ne.s32.totalorder %v2473_v34, %v3703_v32 }
 0xb59   : > { %v2186_v30 = vpop.permute.xlu0 %2185 }
 0xb5a   : > { %v2188_v33 = vpop.permute.xlu1 %2187 }
 0xb5b   : > { %v2191_v1 = vsel %vm4988_vm7, %v2186_v30, %v2188_v33  ;;  %v2192_v2 = vsel %vm4989_vm8, %v2188_v33, %v2190_v35  ;;  %vm2330_vm7 = vcmp.ge.s32.totalorder %v3973_v7, 2 }
 0xb5c   : > { %v2235_v50 = vsel %vm1640_vm5, %v2180_v48, %v2191_v1  ;;  %v2239_v51 = vsel %vm1640_vm5, %v2181_v49, %v2192_v2  ;;  %vm2344_vm8 = vmpackc.low %vm2330_vm7, %vm2329_vm14 }
 0xb5d   : > { %2263 = vmatpush.bf16.msra.mxu1 %v2235_v50  ;;  %2276 = vmatpush.bf16.msra.mxu0 %v2239_v51  ;;  %v4368_v35 = vsel %vm2344_vm8, 65537, %v3369_v62  ;;  %vm2469_vm8 = vcmask 31744  }
 0xb5e   : > { %v2348_v36 = vperm.slane %v4368_v35, 0 }
 0xb60   : > { %v2351_v7 = vunpack.c.l.b16 %v2348_v36  ;;  %v2352_v28 = vunpack.c.h.b16 %v2348_v36 }
 0xb61   : > { %v2167_v0 = vpop.permute.xlu0 %2166 }
 0xb62   : > { %v2169_v3 = vpop.permute.xlu1 %2168 }
 0xb63   : > { %v2172_v38 = vsel %vm4992_vm0, %v2167_v0, %v2169_v3  ;;  %v2173_v39 = vsel %vm4993_vm3, %v2169_v3, %v2171_v61  ;;  %vm2381_vm0 = vcmask 7168   ;;  %vm2478_vm3 = vmpackc.low %vm2477_vm11, %vm2476_vm1  ;;  %vm2331_vm1 = vcmp.ge.s32.totalorder %v3989_v18, 2 }
 0xb64   : > { %v2227_v12 = vsel %vm1640_vm5, %v2158_v4, %v2172_v38  ;;  %v2231_v13 = vsel %vm1640_vm5, %v2159_v37, %v2173_v39 }
 0xb65   : > { %2264 = vmatpush.bf16.msra.mxu1 %v2227_v12  ;;  %2277 = vmatpush.bf16.msra.mxu0 %v2231_v13 }
 0xb69   : > { %v2142_v8 = vpop.permute.xlu0 %2141 }
 0xb6a   : > { %v2144_v10 = vpop.permute.xlu1 %2143 }
 0xb6b   : > { %v2147_v40 = vsel %vm4994_vm4, %v2142_v8, %v2144_v10  ;;  %v2148_v41 = vsel %vm4995_vm2, %v2144_v10, %v2146_v9  ;;  %vm2355_vm4 = vcmp.ne.s32.totalorder %v2351_v7, %v3700_v31  ;;  %vm2356_vm2 = vcmp.ne.s32.totalorder %v2352_v28, %v3703_v32 }
 0xb6c   : > { %v2219_v52 = vsel %vm1640_vm5, %v4269_v45, %v2147_v40  ;;  %v2223_v42 = vsel %vm1640_vm5, %v4279_v46, %v2148_v41  ;;  %v2349_v40 = vperm.slane %v4368_v35, 4 }
 0xb6d   : > { %2265 = vmatpush.bf16.msra.mxu1 %v2219_v52  ;;  %2278 = vmatpush.bf16.msra.mxu0 %v2223_v42 }
 0xb6e   : > { %v2358_v52 = vunpack.c.l.b16 %v2349_v40  ;;  %v2359_v18 = vunpack.c.h.b16 %v2349_v40 }
 0xb70   : > { %3249 = vmatmul.msk.bf16.vlgmr.msra.gmra.mxu1 %vm4996_vm13, %v2112_v43  ;;  %3250 = vmatmul.msk.bf16.vlgmr.msra.gmra.mxu0 %vm4997_vm12, %v2112_v43  ;;  %vm2357_vm13 = vmpackc.low %vm2356_vm2, %vm2355_vm4 }
 0xb71   : > { %v2288_v44 = vpop.permute.xlu0 %2287  ;;  %vm2345_vm4 = vmpackc.low %vm2331_vm1, %vm2331_vm1 }
 0xb72   : > { %v2296_v56 = vpop.permute.xlu1 %2295  ;;  %v2347_v42 = vsel %vm2345_vm4, 65537, %v3369_v62 }
 0xb79   : > { %v4356_v24 = vpop.permute.xlu0 %2465 }
 0xb7a   : > { %v2468_v30 = vpop.permute.xlu1 %2467  ;;  %v2470_v8 = vsel %vm2469_vm8, %v2464_v22, %v4356_v24 }
 0xb7b   : > { %v2479_v9 = vunpack.c.l.b16 %v2470_v8  ;;  %v2480_v10 = vunpack.c.h.b16 %v2470_v8  ;;  %v2471_v41 = vsel %vm2469_vm8, %v4356_v24, %v2468_v30 }
 0xb7c   : > { %v2486_v43 = vunpack.c.l.b16 %v2471_v41 }
 0xb7d   : > { %vm2483_vm2 = vcmp.ne.s32.totalorder %v2479_v9, %v3700_v31 }
 0xb81   : > { %v4365_v27 = vpop.permute.xlu0 %2410 }
 0xb82   : > { %v4397_v4 = vpop.permute.xlu1 %2412 }
 0xb89   : > { %v2380_v6 = vpop.permute.xlu0 %2379 }
 0xb8a   : > { %v4419_v39 = vpop.permute.xlu1 %2375 }
 0xb8b   : > { %v2384_v12 = vunpack.c.l.b16 %v4419_v39  ;;  %v2385_v13 = vunpack.c.h.b16 %v4419_v39 }
 0xb8d   : > { %vm2388_vm11 = vcmp.ne.s32.totalorder %v2384_v12, %v3700_v31 }
 0xbed   : > { %v2267_v47 = vpop.f32.mrf.mxu1  ;;  %v2280_v53 = vpop.f32.mrf.mxu0 }
 0xbee   : > { %v2290_v54 = vmul.f32 %v2288_v44, %v2267_v47  ;;  %v2291_v55 = vmul.f32 %v2288_v44, %v2280_v53  ;;  %v2487_v44 = vunpack.c.h.b16 %v2471_v41 }
 0xbf0   : > { %v2298_v45 = vadd.f32 %v2296_v56, %v2290_v54  ;;  %v2299_v57 = vadd.f32 %v2296_v56, %v2291_v55  ;;  %v2350_v54 = vperm.slane %v2347_v42, 0  ;;  %vm2491_vm8 = vcmp.ne.s32.totalorder %v2487_v44, %v3703_v32 }
 0xbf2   : > { %v2300_v46 = vadd.f32 %v2298_v45, %v4001_v23  ;;  %v2301_v58 = vadd.f32 %v2299_v57, %v3999_v14  ;;  %v4352_v23 = vpop.permute.xlu2 %2408  ;;  %v2365_v55 = vunpack.c.l.b16 %v2350_v54  ;;  %v2366_v56 = vunpack.c.h.b16 %v2350_v54 }
 0xbf3   : > { %v2417_v2 = vunpack.c.l.b16 %v4352_v23  ;;  %v2418_v50 = vunpack.c.h.b16 %v4352_v23 }
 0xbf4   : > { %vm2302_vm6 = vcmp.ge.f32.partialorder %v2300_v46, 0.0  ;;  %v2304_v59 = vmul.f32 0.2, %v2300_v46  ;;  %vm2303_vm9 = vcmp.ge.f32.partialorder %v2301_v58, 0.0  ;;  %v2305_v60 = vmul.f32 0.2, %v2301_v58 }
 0xbf5   : > { %v2269_v11 = vpop.f32.mrf.mxu1  ;;  %v2282_v5 = vpop.f32.mrf.mxu0  ;;  %vm2370_vm4 = vcmp.ne.s32.totalorder %v2366_v56, %v3703_v32 }
 0xbf6   : > { %v2306_v15 = vsel %vm2302_vm6, %v2300_v46, %v2304_v59  ;;  %v2307_v63 = vsel %vm2303_vm9, %v2301_v58, %v2305_v60  ;;  %vm2421_vm9 = vcmp.ne.s32.totalorder %v2417_v2, %v3700_v31 }
 0xbf7   : > { %v2308_v16 = vpack.c.bf16 %v2307_v63, %v2306_v15 }
 0xbf9   : > { %v2312_v17 = vunpack.c.h.b16 %v2308_v16  ;;  %v2311_v19 = vunpack.c.l.b16 %v2308_v16 }
 0xbfa   : > { %v4354_v14 = vpop.permute.xlu2 %2377 }
 0xbfb   : > { %v2314_v20 = vpack.c.b16 %v2312_v17, %v2312_v17  ;;  %v2313_v21 = vpack.c.b16 %v2311_v19, %v2311_v19  ;;  %v2383_v33 = vsel %vm2381_vm0, %v4354_v14, %v2380_v6 }
 0xbfc   : > { %v2398_v49 = vunpack.c.l.b16 %v2383_v33  ;;  %v2399_v1 = vunpack.c.h.b16 %v2383_v33 }
 0xbfd   : > { %2317 = vrot.lane.b32.xlu0 %v2314_v20, %s3390_s4  ;;  %2315 = vrot.lane.b32.xlu2 %v2313_v21, %s3390_s4  ;;  %v2382_v20 = vsel %vm2381_vm0, %v4419_v39, %v4354_v14  ;;  %vm4998_vm0 = vcmask 908288  }
 0xbfe   : > { %vm2402_vm12 = vcmp.ne.s32.totalorder %v2398_v49, %v3700_v31  ;;  %vm2403_vm6 = vcmp.ne.s32.totalorder %v2399_v1, %v3703_v32  ;;  %v2391_v21 = vunpack.c.l.b16 %v2382_v20  ;;  %v2392_v22 = vunpack.c.h.b16 %v2382_v20 }
 0xbff   : > { %vm2404_vm14 = vmpackc.low %vm2403_vm6, %vm2402_vm12 }
 0xc57   : > { %v2316_v25 = vpop.permute.xlu2 %2315 }
 0xc58   : > { %v4359_v26 = vsel %vm2319_vm10, 0, %v2316_v25 }
 0xc59   : > { %2757 = vrot.lane.b32.xlu1 %v4359_v26, %s4941_s26  ;;  %v4378_v48 = vsel %vm2478_vm3, %v4359_v26, 0  ;;  %v4395_v3 = vsel %vm2357_vm13, %v4359_v26, 0  ;;  %vm2389_vm3 = vcmp.ne.s32.totalorder %v2385_v13, %v3703_v32  ;;  %vm2484_vm13 = vcmp.ne.s32.totalorder %v2480_v10, %v3703_v32 }
 0xc5a   : > { %vm2390_vm12 = vmpackc.low %vm2389_vm3, %vm2388_vm11  ;;  %vm2369_vm3 = vcmp.ne.s32.totalorder %v2365_v55, %v3700_v31  ;;  %v2569_v60 = vrot.slane %v4359_v26, 4  ;;  %v2589_v14 = vrot.slane %v4378_v48, 4  ;;  %v2550_v10 = vrot.slane %v4395_v3, 4 }
 0xc5b   : > { %vm2485_vm6 = vmpackc.low %vm2484_vm13, %vm2483_vm2  ;;  %v4441_v47 = vsel %vm2390_vm12, %v4359_v26, 0 }
 0xc5c   : > { %vm2371_vm12 = vmpackc.low %vm2370_vm4, %vm2369_vm3  ;;  %vm2746_vm3 = vcmask 924672   ;;  %vm5000_vm4 = vcmask 769024  }
 0xc61   : > { %2512 = vrot.lane.b32.xlu1 %v4359_v26, %s4925_s30 }
 0xc69   : > { %2773 = vrot.lane.b32.xlu1 %v4378_v48, %s3391_s3 }
 0xc6f   : > { %v2318_v51 = vpop.permute.xlu0 %2317 }
 0xc70   : > { %v4389_v61 = vsel %vm2319_vm10, %v2316_v25, %v2318_v51  ;;  %v4392_v0 = vsel %vm2319_vm10, %v2318_v51, 0  ;;  %vm2422_vm10 = vcmp.ne.s32.totalorder %v2418_v50, %v3703_v32 }
 0xc71   : > { %2761 = vrot.lane.b32.xlu0 %v4392_v0, %s4941_s26  ;;  %2740 = vrot.lane.b32.xlu1 %v4395_v3, %s3392_s24  ;;  %v4408_v37 = vsel %vm2404_vm14, %v4392_v0, 0  ;;  %vm2423_vm7 = vmpackc.low %vm2422_vm10, %vm2421_vm9  ;;  %v4446_v53 = vsel %vm2485_vm6, %v4389_v61, 0  ;;  %vm2414_vm9 = vcmask 23552   ;;  %vm2362_vm10 = vcmp.ne.s32.totalorder %v2358_v52, %v3700_v31 }
 0xc72   : > { %2759 = vrot.lane.b32.xlu2 %v4389_v61, %s4941_s26  ;;  %v4411_v38 = vsel %vm2423_vm7, %v4359_v26, 0  ;;  %vm2363_vm14 = vcmp.ne.s32.totalorder %v2359_v18, %v3703_v32  ;;  %vm2490_vm7 = vcmp.ne.s32.totalorder %v2486_v43, %v3700_v31  ;;  %v2415_v62 = vsel %vm2414_vm9, %v4352_v23, %v4365_v27 }
 0xc73   : > { %vm2364_vm1 = vmpackc.low %vm2363_vm14, %vm2362_vm10  ;;  %v2424_v57 = vunpack.c.l.b16 %v2415_v62  ;;  %v2425_v46 = vunpack.c.h.b16 %v2415_v62  ;;  %v2416_v59 = vsel %vm2414_vm9, %v4365_v27, %v4397_v4  ;;  %v4480_v15 = vsel %vm2371_vm12, %v4392_v0, 0 }
 0xc74   : > { %vm2492_vm11 = vmpackc.low %vm2491_vm8, %vm2490_vm7  ;;  %v4463_v58 = vsel %vm2364_vm1, %v4389_v61, 0  ;;  %v2431_v11 = vunpack.c.l.b16 %v2416_v59  ;;  %v2432_v5 = vunpack.c.h.b16 %v2416_v59  ;;  %v2570_v16 = vrot.slane %v4389_v61, 4 }
 0xc75   : > { %v4460_v45 = vsel %vm2492_vm11, %v4392_v0, 0  ;;  %vm2428_vm2 = vcmp.ne.s32.totalorder %v2424_v57, %v3700_v31  ;;  %vm2429_vm13 = vcmp.ne.s32.totalorder %v2425_v46, %v3703_v32  ;;  %v4499_v19 = vrot.slane %v4411_v38, 4 }
 0xc76   : > { %vm2430_vm6 = vmpackc.low %vm2429_vm13, %vm2428_vm2  ;;  %vm2435_vm9 = vcmp.ne.s32.totalorder %v2431_v11, %v3700_v31  ;;  %vm2436_vm10 = vcmp.ne.s32.totalorder %v2432_v5, %v3703_v32  ;;  %v4511_v23 = vrot.slane %v4441_v47, 4  ;;  %vm2395_vm7 = vcmp.ne.s32.totalorder %v2391_v21, %v3700_v31 }
 0xc77   : > { %v4483_v63 = vsel %vm2430_vm6, %v4389_v61, 0  ;;  %vm2437_vm14 = vmpackc.low %vm2436_vm10, %vm2435_vm9  ;;  %vm2396_vm8 = vcmp.ne.s32.totalorder %v2392_v22, %v3703_v32  ;;  %v2551_v25 = vrot.slane %v4463_v58, 4  ;;  %v2571_v31 = vrot.slane %v4392_v0, 4 }
 0xc78   : > { %v2440_v17 = vsel %vm2437_vm14, %v4392_v0, 0  ;;  %vm2397_vm1 = vmpackc.low %vm2396_vm8, %vm2395_vm7  ;;  %v2552_v29 = vrot.slane %v4480_v15, 4  ;;  %vm4999_vm11 = vcmask 1031168   ;;  %v4572_v49 = vrot.slane %v4408_v37, 4 }
 0xc79   : > { %2724 = vrot.lane.b32.xlu1 %v4411_v38, %s4925_s30  ;;  %2619 = vrot.lane.b32.xlu0 %v4389_v61, %s3385_s10  ;;  %v4526_v24 = vsel %vm2397_vm1, %v4389_v61, 0  ;;  %v2525_v28 = vrot.slane %v2440_v17, 4  ;;  %v2524_v1 = vrot.slane %v4483_v63, 4  ;;  %v2591_v4 = vrot.slane %v4460_v45, 4  ;;  %vm5001_vm2 = vmmov %vm5000_vm4 }
 0xc7a   : > { %2617 = vrot.lane.b32.xlu2 %v4359_v26, %s3385_s10  ;;  %vm5002_vm13 = vmmov %vm4999_vm11  ;;  %v2590_v40 = vrot.slane %v4446_v53, 4  ;;  %vm2640_vm12 = vcmask 752640   ;;  %vm2586_vm10 = vcmask 891904   ;;  %vm2544_vm14 = vcmask 1014784  }
 0xc7b   : > { %vm5003_vm6 = vmmov %vm4999_vm11  ;;  %vm5005_vm7 = vcmask 785408   ;;  %vm5007_vm1 = vcmask 1039360  }
 0xc7c   : > { %vm5004_vm9 = vmmov %vm4998_vm0 }
 0xc7d   : > { %vm5006_vm8 = vmmov %vm4998_vm0 }
 0xc81   : > { %2634 = vrot.lane.b32.xlu1 %v4378_v48, %s3393_s29  ;;  %2621 = vrot.lane.b32.xlu0 %v4392_v0, %s3385_s10  ;;  %s3395_s10 = smov 80  }
 0xc82   : > { %2514 = vrot.lane.b32.xlu2 %v4389_v61, %s4925_s30 }
 0xc89   : > { %2516 = vrot.lane.b32.xlu0 %v4392_v0, %s4925_s30  ;;  %2561 = vrot.lane.b32.xlu1 %v4441_v47, %s4941_s26 }
 0xc8a   : > { %2775 = vrot.lane.b32.xlu2 %v4446_v53, %s3391_s3 }
 0xc91   : > { %2777 = vrot.lane.b32.xlu0 %v4460_v45, %s3391_s3  ;;  %2538 = vrot.lane.b32.xlu1 %v4378_v48, %s4926_s2 }
 0xc92   : > { %2742 = vrot.lane.b32.xlu2 %v4463_v58, %s3392_s24 }
 0xc99   : > { %2744 = vrot.lane.b32.xlu0 %v4480_v15, %s3392_s24  ;;  %2716 = vrot.lane.b32.xlu1 %v2569_v60, %s4928_s5 }
 0xc9a   : > { %2726 = vrot.lane.b32.xlu2 %v4483_v63, %s4925_s30 }
 0xca1   : > { %2728 = vrot.lane.b32.xlu0 %v2440_v17, %s4925_s30  ;;  %2574 = vrot.lane.b32.xlu1 %v2570_v16, %s4967_s7  ;;  %s3394_s30 = smov 125  }
 0xca2   : > { %2636 = vrot.lane.b32.xlu2 %v4446_v53, %s3393_s29 }
 0xca9   : > { %2638 = vrot.lane.b32.xlu0 %v4460_v45, %s3393_s29  ;;  %2765 = vrot.lane.b32.xlu1 %v4499_v19, %s4967_s7  ;;  %s5026_s29 = sld [smem:[#allocation17_spill]] }
 0xcaa   : > { %2601 = vrot.lane.b32.xlu2 %v4395_v3, %s4966_s27 }
 0xcb1   : > { %2603 = vrot.lane.b32.xlu0 %v4463_v58, %s4966_s27  ;;  %2749 = vrot.lane.b32.xlu1 %v4511_v23, %s4940_s8 }
 0xcb2   : > { %2580 = vrot.lane.b32.xlu2 %v4411_v38, %s3391_s3  ;;  %v2500_v38 = vrot.slane %v4526_v24, 4 }
 0xcb9   : > { %2582 = vrot.lane.b32.xlu0 %v4483_v63, %s3391_s3  ;;  %2732 = vrot.lane.b32.xlu1 %v2589_v14, %s3394_s30 }
 0xcba   : > { %2563 = vrot.lane.b32.xlu2 %v4526_v24, %s4941_s26 }
 0xcc1   : > { %2605 = vrot.lane.b32.xlu0 %v4480_v15, %s4966_s27  ;;  %2645 = vrot.lane.b32.xlu1 %v2551_v25, %s3395_s10 }
 0xcc2   : > { %2584 = vrot.lane.b32.xlu2 %v2440_v17, %s3391_s3 }
 0xcc9   : > { %2720 = vrot.lane.b32.xlu0 %v2571_v31, %s4928_s5  ;;  %2625 = vrot.lane.b32.xlu1 %v4499_v19, %s3396_s28 }
 0xcca   : > { %2540 = vrot.lane.b32.xlu2 %v4446_v53, %s4926_s2 }
 0xccb   : > { %v2758_v32 = vpop.permute.xlu1 %2757 }
 0xccc   : > { %v4541_v26 = vpop.permute.xlu2 %2759 }
 0xccd   : > { %v4545_v27 = vsel %vm4998_vm0, %v2758_v32, %v4541_v26  ;;  %vm2649_vm0 = vcmask 654336  }
 0xcd1   : > { %2572 = vrot.lane.b32.xlu0 %v2569_v60, %s4967_s7  ;;  %2647 = vrot.lane.b32.xlu1 %v2552_v29, %s3395_s10 }
 0xcd2   : > { %2565 = vrot.lane.b32.xlu2 %v4408_v37, %s4941_s26  ;;  %s3398_s26 = smov 79  }
 0xcd3   : > { %v2513_v34 = vpop.permute.xlu1 %2512 }
 0xcd4   : > { %v2618_v35 = vpop.permute.xlu2 %2617 }
 0xcd9   : > { %2576 = vrot.lane.b32.xlu0 %v2571_v31, %s4967_s7  ;;  %2609 = vrot.lane.b32.xlu1 %v4511_v23, %s3386_s1 }
 0xcda   : > { %2542 = vrot.lane.b32.xlu2 %v4460_v45, %s4926_s2  ;;  %s3397_s2 = smov 108  }
 0xcdb   : > { %v4559_v36 = vpop.permute.xlu1 %2773 }
 0xcdc   : > { %v2515_v6 = vpop.permute.xlu2 %2514 }
 0xcdd   : > { %v4562_v7 = vsel %vm4999_vm11, %v2513_v34, %v2515_v6  ;;  %vm5008_vm11 = vcmask 900096  }
 0xce1   : > { %2769 = vrot.lane.b32.xlu0 %v2525_v28, %s4967_s7  ;;  %2629 = vrot.lane.b32.xlu1 %v2525_v28, %s3396_s28 }
 0xce2   : > { %2718 = vrot.lane.b32.xlu2 %v2570_v16, %s4928_s5 }
 0xce3   : > { %v4567_v30 = vpop.permute.xlu0 %2761  ;;  %v2741_v33 = vpop.permute.xlu1 %2740 }
 0xce4   : > { %v4569_v48 = vpop.permute.xlu2 %2775 }
 0xce5   : > { %v2779_v16 = vsel %vm2586_vm10, %v4559_v36, %v4569_v48 }
 0xce9   : > { %2753 = vrot.lane.b32.xlu0 %v4572_v49, %s4940_s8  ;;  %2592 = vrot.lane.b32.xlu1 %v2589_v14, %s3397_s2 }
 0xcea   : > { %2767 = vrot.lane.b32.xlu2 %v2524_v1, %s4967_s7 }
 0xceb   : > { %v2620_v2 = vpop.permute.xlu0 %2619  ;;  %v2725_v50 = vpop.permute.xlu1 %2724 }
 0xcec   : > { %v4580_v51 = vsel %vm5000_vm4, %v2618_v35, %v2620_v2  ;;  %v4582_v61 = vpop.permute.xlu2 %2742  ;;  %vm5009_vm4 = vmmov %vm5008_vm11 }
 0xced   : > { %v4586_v0 = vsel %vm2746_vm3, %v2741_v33, %v4582_v61 }
 0xcf1   : > { %2736 = vrot.lane.b32.xlu0 %v2591_v4, %s3394_s30  ;;  %2613 = vrot.lane.b32.xlu1 %v4572_v49, %s3386_s1 }
 0xcf2   : > { %2751 = vrot.lane.b32.xlu2 %v2500_v38, %s4940_s8 }
 0xcf3   : > { %v2622_v39 = vpop.permute.xlu0 %2621  ;;  %v2635_v12 = vpop.permute.xlu1 %2634 }
 0xcf4   : > { %v4595_v13 = vsel %vm5001_vm2, %v2620_v2, %v2622_v39  ;;  %v4597_v8 = vpop.permute.xlu2 %2726  ;;  %vm5010_vm2 = vmmov %vm5009_vm4 }
 0xcf5   : > { %v4601_v9 = vsel %vm5002_vm13, %v2725_v50, %v4597_v8  ;;  %vm5011_vm13 = vcmask 916480  }
 0xcf9   : > { %2643 = vrot.lane.b32.xlu0 %v2550_v10, %s3395_s10  ;;  %2555 = vrot.lane.b32.xlu1 %v2551_v25, %s4940_s8 }
 0xcfa   : > { %2734 = vrot.lane.b32.xlu2 %v2590_v40, %s3394_s30 }
 0xcfb   : > { %v2517_v41 = vpop.permute.xlu0 %2516  ;;  %v2562_v52 = vpop.permute.xlu1 %2561 }
 0xcfc   : > { %v4609_v18 = vsel %vm5003_vm6, %v2515_v6, %v2517_v41  ;;  %v2637_v42 = vpop.permute.xlu2 %2636  ;;  %vm2631_vm6 = vcmask 760832  }
 0xcfd   : > { %v4612_v43 = vsel %vm2640_vm12, %v2635_v12, %v2637_v42 }
 0xd01   : > { %2596 = vrot.lane.b32.xlu0 %v2591_v4, %s3397_s2  ;;  %2528 = vrot.lane.b32.xlu1 %v2524_v1, %s3394_s30 }
 0xd02   : > { %2627 = vrot.lane.b32.xlu2 %v2524_v1, %s3396_s28 }
 0xd03   : > { %v2778_v44 = vpop.permute.xlu0 %2777  ;;  %v2539_v53 = vpop.permute.xlu1 %2538 }
 0xd04   : > { %v2602_v54 = vpop.permute.xlu2 %2601  ;;  %v2780_v63 = vsel %vm2586_vm10, %v4569_v48, %v2778_v44 }
 0xd09   : > { %2553 = vrot.lane.b32.xlu0 %v2550_v10, %s4940_s8  ;;  %2502 = vrot.lane.b32.xlu1 %v4511_v23, %s4928_s5 }
 0xd0a   : > { %2611 = vrot.lane.b32.xlu2 %v2500_v38, %s3386_s1  ;;  %s5016_s1 = sld [smem:[#allocation15_spill]] }
 0xd0b   : > { %v4621_v62 = vpop.permute.xlu0 %2744  ;;  %v2717_v55 = vpop.permute.xlu1 %2716 }
 0xd0c   : > { %v2581_v56 = vpop.permute.xlu2 %2580 }
 0xd11   : > { %2526 = vrot.lane.b32.xlu0 %v4499_v19, %s3394_s30  ;;  %2530 = vrot.lane.b32.xlu1 %v2525_v28, %s3394_s30 }
 0xd12   : > { %2594 = vrot.lane.b32.xlu2 %v2590_v40, %s3397_s2 }
 0xd13   : > { %v4627_v45 = vpop.permute.xlu0 %2728  ;;  %v2575_v57 = vpop.permute.xlu1 %2574 }
 0xd14   : > { %v2564_v46 = vpop.permute.xlu2 %2563 }
 0xd15   : > { %v2567_v59 = vsel %vm5004_vm9, %v2562_v52, %v2564_v46  ;;  %vm5012_vm9 = vmmov %vm5011_vm13 }
 0xd19   : > { %2557 = vrot.lane.b32.xlu0 %v2552_v29, %s4940_s8  ;;  %2857 = vrot.lane.b32.xlu1 %v2778_v44, %s3398_s26 }
 0xd1a   : > { %2504 = vrot.lane.b32.xlu2 %v2500_v38, %s4928_s5 }
 0xd1b   : > { %v2639_v60 = vpop.permute.xlu0 %2638  ;;  %v2766_v11 = vpop.permute.xlu1 %2765 }
 0xd1c   : > { %v2585_v5 = vpop.permute.xlu2 %2584  ;;  %v2642_v4 = vsel %vm2640_vm12, %v2637_v42, %v2639_v60  ;;  %vm2532_vm12 = vcmask 1022976  }
 0xd21   : > { %2855 = vrot.lane.b32.xlu0 %v2780_v63, %s3398_s26  ;;  %v2748_v63 = vsel %vm2746_vm3, %v4582_v61, %v4621_v62  ;;  %vm5014_vm3 = vmmov %vm5006_vm8 }
 0xd22   : > { %2853 = vrot.lane.b32.xlu2 %v2779_v16, %s3398_s26 }
 0xd23   : > { %v4640_v15 = vpop.permute.xlu0 %2603  ;;  %v2750_v17 = vpop.permute.xlu1 %2749 }
 0xd24   : > { %v4644_v19 = vsel %vm5005_vm7, %v2602_v54, %v4640_v15  ;;  %v2541_v20 = vpop.permute.xlu2 %2540 }
 0xd25   : > { %v4646_v21 = vsel %vm2544_vm14, %v2539_v53, %v2541_v20 }
 0xd2b   : > { %v2583_v22 = vpop.permute.xlu0 %2582  ;;  %v2733_v23 = vpop.permute.xlu1 %2732 }
 0xd2c   : > { %v4648_v14 = vsel %vm2586_vm10, %v2581_v56, %v2583_v22  ;;  %v4650_v25 = vsel %vm2586_vm10, %v2583_v22, %v2585_v5  ;;  %v2566_v31 = vpop.permute.xlu2 %2565  ;;  %vm5013_vm10 = vmmov %vm5010_vm2 }
 0xd2d   : > { %v2568_v32 = vsel %vm5006_vm8, %v2564_v46, %v2566_v31  ;;  %v2764_v31 = vsel %vm5014_vm3, %v4541_v26, %v4567_v30  ;;  %vm5017_vm8 = vmmov %vm5007_vm1 }
 0xd33   : > { %v4653_v29 = vpop.permute.xlu0 %2605  ;;  %v4655_v34 = vpop.permute.xlu1 %2645 }
 0xd34   : > { %v2543_v35 = vpop.permute.xlu2 %2542 }
 0xd35   : > { %v4657_v36 = vsel %vm2544_vm14, %v2541_v20, %v2543_v35  ;;  %vm5015_vm14 = vcmask 1031168  }
 0xd36   : > { %v2731_v35 = vsel %vm5015_vm14, %v4597_v8, %v4627_v45 }
 0xd3b   : > { %v4659_v6 = vpop.permute.xlu0 %2720  ;;  %v4661_v28 = vpop.permute.xlu1 %2625 }
 0xd3c   : > { %v4663_v33 = vpop.permute.xlu2 %2718 }
 0xd3d   : > { %v2722_v48 = vsel %vm5007_vm1, %v2717_v55, %v4663_v33  ;;  %vm2598_vm1 = vcmask 883712  }
 0xd3e   : > { %v2783_v1 = vsel %vm1640_vm5, %v4441_v47, %v2722_v48 }
 0xd3f   : > { %2829 = vrot.lane.b32.xlu2 %v2783_v1, %s3398_s26 }
 0xd43   : > { %v2573_v2 = vpop.permute.xlu0 %2572  ;;  %v2648_v50 = vpop.permute.xlu1 %2647 }
 0xd44   : > { %v2578_v38 = vsel %vm5008_vm11, %v2573_v2, %v2575_v57  ;;  %v2768_v39 = vpop.permute.xlu2 %2767  ;;  %v2651_v12 = vsel %vm2649_vm0, %v4655_v34, %v2648_v50  ;;  %v2608_v50 = vsel %vm5005_vm7, %v4640_v15, %v4653_v29  ;;  %v2723_v15 = vsel %vm5017_vm8, %v4663_v33, %v4659_v6  ;;  %v2878_v29 = vld [vmem:[%s5018_s6] sm:$0x7]  ;;  %vm5021_vm11 = vmmov %vm5012_vm9 }
 0xd45   : > { %v2771_v10 = vsel %vm5009_vm4, %v2766_v11, %v2768_v39  ;;  %v2714_v40 = vsel %vm1640_vm5, %v2642_v4, %v2651_v12  ;;  %v4677_v41 = vsel %vm1640_vm5, %v2567_v59, %v2578_v38  ;;  %v2786_v12 = vsel %vm1640_vm5, %v4526_v24, %v2723_v15 }
 0xd46   : > { %v2810_v47 = vsel %vm1640_vm5, %v4545_v27, %v2771_v10  ;;  %2923 = vmatpush.bf16.msrb.mxu1 %v2714_v40  ;;  %vm2859_vm4 = vcmask 646144  }
 0xd47   : > { %2847 = vrot.lane.b32.xlu2 %v2810_v47, %s3398_s26 }
 0xd4b   : > { %v2577_v52 = vpop.permute.xlu0 %2576  ;;  %v2610_v42 = vpop.permute.xlu1 %2609 }
 0xd4c   : > { %v2579_v44 = vsel %vm5010_vm2, %v2575_v57, %v2577_v52  ;;  %v2752_v53 = vpop.permute.xlu2 %2751 }
 0xd4d   : > { %v2755_v54 = vsel %vm5011_vm13, %v2750_v17, %v2752_v53  ;;  %v4685_v55 = vsel %vm1640_vm5, %v2568_v32, %v2579_v44  ;;  %vm5023_vm13 = vcmask 588800  }
 0xd4e   : > { %v2801_v56 = vsel %vm1640_vm5, %v4586_v0, %v2755_v54 }
 0xd4f   : > { %2841 = vrot.lane.b32.xlu1 %v2801_v56, %s3398_s26 }
 0xd53   : > { %v2770_v27 = vpop.permute.xlu0 %2769  ;;  %v2630_v46 = vpop.permute.xlu1 %2629 }
 0xd54   : > { %v2816_v59 = vsel %vm1640_vm5, %v4567_v30, %v2770_v27  ;;  %v2735_v60 = vpop.permute.xlu2 %2734  ;;  %v2772_v61 = vsel %vm5013_vm10, %v2768_v39, %v2770_v27 }
 0xd55   : > { %v2738_v57 = vsel %vm2532_vm12, %v2733_v23, %v2735_v60  ;;  %2851 = vrot.lane.b32.xlu0 %v2816_v59, %s3398_s26 }
 0xd56   : > { %v2792_v11 = vsel %vm1640_vm5, %v4601_v9, %v2738_v57 }
 0xd57   : > { %2835 = vrot.lane.b32.xlu1 %v2792_v11, %s3398_s26 }
 0xd5b   : > { %v2754_v0 = vpop.permute.xlu0 %2753  ;;  %v2593_v5 = vpop.permute.xlu1 %2592 }
 0xd5c   : > { %v2756_v16 = vsel %vm5012_vm9, %v2752_v53, %v2754_v0  ;;  %v2807_v17 = vsel %vm1640_vm5, %v4621_v62, %v2754_v0  ;;  %v2628_v20 = vpop.permute.xlu2 %2627 }
 0xd5d   : > { %v2633_v22 = vsel %vm2631_vm6, %v2628_v20, %v2630_v46  ;;  %2845 = vrot.lane.b32.xlu0 %v2807_v17, %s3398_s26  ;;  %v2804_v9 = vsel %vm1640_vm5, %v2748_v63, %v2756_v16  ;;  %v2632_v33 = vsel %vm2631_vm6, %v4661_v28, %v2628_v20 }
 0xd5e   : > { %2843 = vrot.lane.b32.xlu2 %v2804_v9, %s3398_s26  ;;  %v2706_v23 = vsel %vm1640_vm5, %v4595_v13, %v2633_v22  ;;  %v2813_v13 = vsel %vm1640_vm5, %v2764_v31, %v2772_v61  ;;  %v2702_v40 = vsel %vm1640_vm5, %v4580_v51, %v2632_v33 }
 0xd5f   : > { %2924 = vmatpush.bf16.msrb.mxu1 %v2706_v23 }
 0xd63   : > { %v2737_v62 = vpop.permute.xlu0 %2736  ;;  %v2614_v32 = vpop.permute.xlu1 %2613 }
 0xd64   : > { %v2739_v48 = vsel %vm2532_vm12, %v2735_v60, %v2737_v62  ;;  %v2798_v1 = vsel %vm1640_vm5, %v4627_v45, %v2737_v62  ;;  %v2612_v2 = vpop.permute.xlu2 %2611  ;;  %v2309_v45 = vld [vmem:[%s5016_s1] sm:$0xf] }
 0xd65   : > { %v2616_v26 = vsel %vm2010_vm15, %v2612_v2, %v2614_v32  ;;  %2849 = vrot.lane.b32.xlu0 %v2813_v13, %s3398_s26  ;;  %2839 = vrot.lane.b32.xlu1 %v2798_v1, %s3398_s26  ;;  %v2795_v30 = vsel %vm1640_vm5, %v2731_v35, %v2739_v48  ;;  %2885 = vst [vmem:[#allocation1] ss:$4 sm:$0xff] %v2309_v45 }
 0xd66   : > { %2837 = vrot.lane.b32.xlu2 %v2795_v30, %s3398_s26  ;;  %v2698_v8 = vsel %vm1640_vm5, %v2608_v50, %v2616_v26 }
 0xd67   : > { %2925 = vmatpush.bf16.msrb.mxu1 %v2698_v8 }
 0xd6b   : > { %v2644_v4 = vpop.permute.xlu0 %2643  ;;  %v2556_v38 = vpop.permute.xlu1 %2555 }
 0xd6c   : > { %v2650_v39 = vsel %vm2649_vm0, %v2644_v4, %v4655_v34  ;;  %v2615_v34 = vsel %vm2010_vm15, %v2610_v42, %v2612_v2  ;;  %v2595_v24 = vpop.permute.xlu2 %2594  ;;  %vm5019_vm15 = vmmov %vm5012_vm9  ;;  %v2887_v15 = vld.sshfl [vmem:[#allocation1 + $0x8] sm:$0xff pattern:$0x73625140] }
 0xd6d   : > { %2831 = vrot.lane.b32.xlu0 %v2786_v12, %s3398_s26  ;;  %2881 = vperm.xlu1 %3346, %v2878_v29   ;;  %v2710_v10 = vsel %vm1640_vm5, %v4612_v43, %v2650_v39  ;;  %v2789_v43 = vsel %vm1640_vm5, %v4408_v37, %v4659_v6  ;;  %v2599_v28 = vsel %vm2598_vm1, %v2593_v5, %v2595_v24  ;;  %vm5020_vm0 = vmmov %vm5017_vm8 }
 0xd6e   : > { %2506 = vrot.lane.b32.xlu2 %v4572_v49, %s4928_s5  ;;  %2897 = vmatpush.bf16.msra.mxu2 %v2710_v10  ;;  %v2694_v49 = vsel %vm1640_vm5, %v4644_v19, %v2615_v34  ;;  %v2686_v42 = vsel %vm1640_vm5, %v4648_v14, %v2599_v28  ;;  %vm5022_vm2 = vmmov %vm5020_vm0  ;;  %s5025_s5 = sld [smem:[#allocation3_spill]] }
 0xd72   : > { %2898 = vmatpush.bf16.msra.mxu2 %v2702_v40 }
 0xd73   : > { %v2597_v47 = vpop.permute.xlu0 %2596  ;;  %v2529_v44 = vpop.permute.xlu1 %2528 }
 0xd74   : > { %v2600_v52 = vsel %vm2598_vm1, %v2595_v24, %v2597_v47  ;;  %v2505_v56 = vpop.permute.xlu2 %2504  ;;  %s3257_s4 = sshll.u32 %s5025_s5, 3 }
 0xd75   : > { %2833 = vrot.lane.b32.xlu0 %v2789_v43, %s3398_s26  ;;  %v2690_v51 = vsel %vm1640_vm5, %v4650_v25, %v2600_v52  ;;  %s785_s30 = scalar_lea.vmem %s5026_s29, %s3257_s4 }
 0xd76   : > { %2899 = vmatpush.bf16.msra.mxu2 %v2694_v49  ;;  %2926 = vmatpush.bf16.msrb.mxu1 %v2690_v51 }
 0xd7a   : > { %2900 = vmatpush.bf16.msra.mxu2 %v2686_v42  ;;  %2927 = vmatpush.bf16.msrb.mxu1 %v4685_v55 }
 0xd7b   : > { %v2554_v37 = vpop.permute.xlu0 %2553  ;;  %v2503_v53 = vpop.permute.xlu1 %2502 }
 0xd7c   : > { %v2559_v6 = vsel %vm5019_vm15, %v2554_v37, %v2556_v38  ;;  %v2508_v27 = vsel %vm5020_vm0, %v2503_v53, %v2505_v56  ;;  %v2854_v11 = vpop.permute.xlu2 %2853 }
 0xd7d   : > { %v2670_v19 = vsel %vm1640_vm5, %v4646_v21, %v2559_v6  ;;  %v2654_v46 = vsel %vm1640_vm5, %v4395_v3, %v2508_v27 }
 0xd7e   : > { %2901 = vmatpush.bf16.msra.mxu2 %v4677_v41  ;;  %v2886_v41 = vld.sshfl [vmem:[#allocation1] sm:$0xff pattern:$0x73625140] }
 0xd82   : > { %2902 = vmatpush.bf16.msra.mxu2 %v2670_v19 }
 0xd83   : > { %v2527_v25 = vpop.permute.xlu0 %2526  ;;  %v2531_v55 = vpop.permute.xlu1 %2530 }
 0xd84   : > { %v2533_v54 = vsel %vm2532_vm12, %v2527_v25, %v2529_v44  ;;  %v2534_v57 = vsel %vm2532_vm12, %v2529_v44, %v2531_v55  ;;  %vm5024_vm12 = vmmov %vm5023_vm13 }
 0xd85   : > { %v2662_v14 = vsel %vm1640_vm5, %v4562_v7, %v2533_v54  ;;  %v2666_v7 = vsel %vm1640_vm5, %v4609_v18, %v2534_v57 }
 0xd86   : > { %2903 = vmatpush.bf16.msra.mxu2 %v2662_v14 }
 0xd8a   : > { %2904 = vmatpush.bf16.msra.mxu2 %v2654_v46 }
 0xd8b   : > { %v2558_v59 = vpop.permute.xlu0 %2557  ;;  %v2858_v0 = vpop.permute.xlu1 %2857 }
 0xd8c   : > { %v2560_v21 = vsel %vm5021_vm11, %v2556_v38, %v2558_v59 }
 0xd8d   : > { %2905 = vmatmul.bf16.vlgmr.msra.gmra.mxu2 %v2886_v41  ;;  %v2674_v60 = vsel %vm1640_vm5, %v4657_v36, %v2560_v21 }
 0xd8e   : > { %2928 = vmatpush.bf16.msrb.mxu1 %v2674_v60 }
 0xd92   : > { %2929 = vmatpush.bf16.msrb.mxu1 %v2666_v7 }
 0xd93   : > { %v2856_v3 = vpop.permute.xlu0 %2855 }
 0xd94   : > { %v2868_v5 = vsel %vm2859_vm4, %v2854_v11, %v2856_v3  ;;  %v2869_v63 = vsel %vm2859_vm4, %v2856_v3, %v2858_v0 }
 0xd95   : > { %v2892_v16 = vsel %vm1640_vm5, %v2868_v5, 0  ;;  %v2895_v17 = vsel %vm1640_vm5, %v2869_v63, 0 }
 0xd96   : > { %2913 = vmatpush.bf16.msra.mxu3 %v2892_v16  ;;  %2939 = vmatpush.bf16.msrb.mxu0 %v2895_v17 }
 0xd99   : > { %v2830_v36 = vpop.permute.xlu2 %2829 }
 0xda1   : > { %v2848_v20 = vpop.permute.xlu2 %2847 }
 0xdb8   : > { %v2844_v22 = vpop.permute.xlu2 %2843 }
 0xdc0   : > { %v2838_v9 = vpop.permute.xlu2 %2837 }
 0xdc1   : > { %v2842_v62 = vpop.permute.xlu1 %2841 }
 0xdc2   : > { %v2864_v13 = vsel %vm2859_vm4, %v2842_v62, %v2844_v22 }
 0xdc7   : > { %v2852_v18 = vpop.permute.xlu0 %2851 }
 0xdc8   : > { %v2507_v23 = vpop.permute.xlu2 %2506 }
 0xdc9   : > { %v2509_v61 = vsel %vm5022_vm2, %v2505_v56, %v2507_v23  ;;  %v2836_v35 = vpop.permute.xlu1 %2835 }
 0xdca   : > { %v2658_v31 = vsel %vm1640_vm5, %v4463_v58, %v2509_v61  ;;  %v2862_v30 = vsel %vm2859_vm4, %v2836_v35, %v2838_v9 }
 0xdcb   : > { %2930 = vmatpush.bf16.msrb.mxu1 %v2658_v31 }
 0xdce   : > { %2931 = vmatmul.bf16.vlgmr.msrb.gmra.mxu1 %v2886_v41 }
 0xdcf   : > { %v2846_v32 = vpop.permute.xlu0 %2845 }
 0xdd0   : > { %v2865_v50 = vsel %vm2859_vm4, %v2844_v22, %v2846_v32 }
 0xdd7   : > { %v2850_v48 = vpop.permute.xlu0 %2849  ;;  %v2840_v26 = vpop.permute.xlu1 %2839 }
 0xdd8   : > { %v2866_v1 = vsel %vm2859_vm4, %v2848_v20, %v2850_v48  ;;  %v2867_v2 = vsel %vm2859_vm4, %v2850_v48, %v2852_v18  ;;  %v2863_v8 = vsel %vm2859_vm4, %v2838_v9, %v2840_v26 }
 0xdd9   : > { %2914 = vmatpush.bf16.msra.mxu3 %v2866_v1  ;;  %2940 = vmatpush.bf16.msrb.mxu0 %v2867_v2 }
 0xddd   : > { %2915 = vmatpush.bf16.msra.mxu3 %v2864_v13  ;;  %2941 = vmatpush.bf16.msrb.mxu0 %v2865_v50 }
 0xddf   : > { %v2832_v58 = vpop.permute.xlu0 %2831  ;;  %v2882_v33 = vpop.permute.xlu1 %2881 }
 0xde0   : > { %v2860_v45 = vsel %vm2859_vm4, %v2830_v36, %v2832_v58 }
 0xde1   : > { %2916 = vmatpush.bf16.msra.mxu3 %v2862_v30  ;;  %2942 = vmatpush.bf16.msrb.mxu0 %v2863_v8 }
 0xde5   : > { %2917 = vmatpush.bf16.msra.mxu3 %v2860_v45 }
 0xde7   : > { %v2834_v29 = vpop.permute.xlu0 %2833 }
 0xde8   : > { %3251 = vmatmul.msk.bf16.vlgmr.msra.gmra.mxu3 %vm5023_vm13, %v2887_v15  ;;  %v2861_v4 = vsel %vm2859_vm4, %v2832_v58, %v2834_v29 }
 0xde9   : > { %2943 = vmatpush.bf16.msrb.mxu0 %v2861_v4 }
 0xdec   : > { %3252 = vmatmul.msk.bf16.vlgmr.msrb.gmra.mxu0 %vm5024_vm12, %v2887_v15 }
 0xe10   : > { %v2906_v38 = vpop.f32.mrf.mxu2 }
 0xe11   : > { %v2907_v24 = vadd.f32 %v2906_v38, %v2882_v33 }
 0xe18   : > { %v2908_v39 = vpop.f32.mrf.mxu2 }
 0xe4b   : > { %v2932_v12 = vpop.f32.mrf.mxu1 }
 0xe4c   : > { %v2933_v40 = vadd.f32 %v2932_v12, %v2882_v33 }
 0xe53   : > { %v2934_v10 = vpop.f32.mrf.mxu1 }
 0xe69   : > { %v2945_v34 = vpop.f32.mrf.mxu0 }
 0xe6a   : > { %v2946_v47 = vadd.f32 %v2945_v34, %v2933_v40 }
 0xe6b   : > { %v2919_v43 = vpop.f32.mrf.mxu3 }
 0xe6c   : > { %v3254_v52 = vmul.f32 -1.442695, %v2946_v47  ;;  %v2920_v44 = vadd.f32 %v2919_v43, %v2907_v24 }
 0xe6e   : > { %3350 = vpow2.f32 %v3254_v52  ;;  %v3253_v49 = vmul.f32 -1.442695, %v2920_v44 }
 0xe70   : > { %3352 = vpow2.f32 %v3253_v49 }
 0xe71   : > { %v2947_v51 = vpop.f32.mrf.mxu0 }
 0xe73   : > { %v2921_v28 = vpop.f32.mrf.mxu3 }
 0xe74   : > { %v3351_v42 = vpop.eup %3350 }
 0xe75   : > { %v2956_v37 = vadd.f32 1.0, %v3351_v42 }
 0xe76   : > { %v3353_v6 = vpop.eup %3352 }
 0xe77   : > { %3354 = vrcp.f32 %v2956_v37  ;;  %v2955_v53 = vadd.f32 1.0, %v3353_v6  ;;  %v2983_v14 = vand.u32 2147483648, %v2956_v37  ;;  %v2981_v46 = vand.u32 2147483647, %v2956_v37 }
 0xe78   : > { %vm2977_vm9 = vweird.f32 %v2956_v37 }
 0xe79   : > { %3356 = vrcp.f32 %v2955_v53  ;;  %v2968_v21 = vand.u32 2147483648, %v2955_v53  ;;  %v2984_v60 = vor.u32 1.1754944e-38, %v2983_v14  ;;  %v2966_v7 = vand.u32 2147483647, %v2955_v53 }
 0xe7a   : > { %vm2982_vm14 = vcmp.eq.f32.partialorder %v2981_v46, 8.507059e+37  ;;  %vm2962_vm7 = vweird.f32 %v2955_v53 }
 0xe7b   : > { %v2969_v63 = vor.u32 1.1754944e-38, %v2968_v21  ;;  %vm2967_vm1 = vcmp.eq.f32.partialorder %v2966_v7, 8.507059e+37 }
 0xe7d   : > { %v3355_v19 = vpop.eup %3354 }
 0xe7e   : > { %v2973_v25 = vmul.f32 %v3355_v19, %v2956_v37  ;;  %vm2978_vm6 = vweird.f32 %v3355_v19 }
 0xe7f   : > { %v3357_v54 = vpop.eup %3356  ;;  %vm2979_vm10 = vmor %vm2977_vm9, %vm2978_vm6 }
 0xe80   : > { %v2974_v56 = vsub.f32 1.0, %v2973_v25  ;;  %v2958_v27 = vmul.f32 %v3357_v54, %v2955_v53  ;;  %vm2963_vm3 = vweird.f32 %v3357_v54 }
 0xe81   : > { %vm2964_vm8 = vmor %vm2962_vm7, %vm2963_vm3 }
 0xe82   : > { %v2975_v55 = vmul.f32 %v3355_v19, %v2974_v56  ;;  %v2959_v41 = vsub.f32 1.0, %v2958_v27 }
 0xe84   : > { %v2976_v59 = vadd.f32 %v3355_v19, %v2975_v55  ;;  %v2960_v57 = vmul.f32 %v3357_v54, %v2959_v41 }
 0xe86   : > { %v2980_v11 = vsel %vm2979_vm10, %v3355_v19, %v2976_v59  ;;  %v2961_v3 = vadd.f32 %v3357_v54, %v2960_v57 }
 0xe87   : > { %v2985_v0 = vsel %vm2982_vm14, %v2984_v60, %v2980_v11 }
 0xe88   : > { %v2989_v5 = vrot.slane %v2985_v0, 4  ;;  %v2965_v16 = vsel %vm2964_vm8, %v3357_v54, %v2961_v3 }
 0xe89   : > { %v2970_v17 = vsel %vm2967_vm1, %v2969_v63, %v2965_v16 }
 0xe8a   : > { %v2990_v36 = vsel %vm1640_vm5, %v2970_v17, %v2989_v5 }
 0xe8b   : > { %2992 = vst [vmem:[%s785_s30] sm:$0x77] %v2990_v36 }
 0xe8c PF: > { %s5027_s10 = sld [smem:[#allocation2_spill]] }
 0xe92   : > { %s36_s27 = sadd.s32 1, %s5027_s10  }
 0xe93   : > { %p33_p4 = scmp.ge.s32.totalorder %s36_s27, 4  }
 0xe95   :  { %35 = sbr.rel (!%p33_p4) target bundleno = 15 (0xf), region = 154 }

</bundles_post_ra>
